<compile_context>
chip_gen: v6e
topology: v6e:2x2x1
jax: 0.10.0
libtpu: 0.0.40
codegen_flags: <defaults>
</compile_context>

<pallas_src>
import math
import numpy as np
import jax
import jax.numpy as jnp
from jax import lax
from jax.experimental import pallas as pl
from jax.experimental.pallas import tpu as pltpu

# Fourier_MHAtt hardcodes expand(..., 64, HIDDEN_SIZE_HEAD) and multiplies the
# (Lq, Lk) score map elementwise by a (64, HIDDEN_SIZE_HEAD) map, so the
# query/key sequence length and the head dim must both be 64.
B = 2
LX = 64          # query / key / value sequence length (8x8 image grid)
LS = 8           # sequence length of the `s` (language) input
NH = 2           # MULTI_HEAD
DH = 64          # HIDDEN_SIZE_HEAD
H = NH * DH      # HIDDEN_SIZE = 128
NEG = -1e9       # masked_fill value

# Host-side permutation indices (per-head, within the packed 128-lane layout).
_REV_IDX = np.concatenate(
    [h * DH + (DH - np.arange(DH)) % DH for h in range(NH)])      # j -> (D-j)%D
_ROLL_IDX = np.concatenate(
    [h * DH + (np.arange(DH) + DH // 2) % DH for h in range(NH)])  # j -> (j+D/2)%D


# =========================== the fused Pallas kernel ========================

def _fourier_mhatt_kernel(q_ref, k_ref, v_ref, s_ref, madd_ref,
                          wq_ref, wk_ref, wv_ref, wm_ref, wg_ref,
                          bqw_ref, bkv_ref, bm_ref, bg_ref, cs_ref, o_ref):
    f32 = jnp.float32
    wdt = wq_ref.dtype                        # bf16 (fast path) or f32 (check path)
    use_approx = jnp.dtype(wdt) != jnp.dtype(jnp.float32)

    dot = lambda a, b: jnp.dot(a, b, preferred_element_type=f32)
    dot_bt = lambda a, b: lax.dot_general(    # a @ b.T without an explicit transpose
        a, b, (((1,), (1,)), ((), ())), preferred_element_type=f32)

    bb = q_ref.shape[0]
    lx = q_ref.shape[1]

    # ---- fused projections: the whole (sub-)batch as one big-M MXU matmul ----
    xq = q_ref[...].reshape(bb * lx, H).astype(wdt)
    xk = k_ref[...].reshape(bb * lx, H).astype(wdt)
    xv = v_ref[...].reshape(bb * lx, H).astype(wdt)
    # columns per head h: [Wq_h | Wq_rev_h]  -> q and its index-reversed copy
    qw = dot(xq, wq_ref[...]) + bqw_ref[...]          # (bb*LX, 2H) f32
    k = dot(xk, wk_ref[...]) + bkv_ref[0:1, :]        # (bb*LX, H)
    v = dot(xv, wv_ref[...]) + bkv_ref[1:2, :]        # (bb*LX, H)

    # ---- gates: linear_s + seq-mean + per-head linear_ws pre-composed on host ----
    ms = jnp.mean(s_ref[...], axis=1)                 # (bb, H) f32
    glin = dot(ms, wg_ref[...]) + bg_ref[...]         # (bb, 2H): [w_att | w_sft]
    gates = 1.0 / (1.0 + jnp.exp(-glin))              # tiny tensor -> exact sigmoid

    cs = cs_ref[...]                                  # (DH, 2*DH) = [C | S]
    madd_all = madd_ref[...]                          # (bb, 1, LX) additive mask
    scale = 1.0 / math.sqrt(DH)
    inv_d = 1.0 / DH

    atted_rows = []
    for b in range(bb):                               # static unroll (bb <= 2)
        r0 = b * lx
        madd = madd_all[b]                            # (1, LX), hoisted per batch
        head_outs = []
        for h in range(NH):                           # static unroll (NH == 2)
            lo = h * DH
            q_h = qw[r0:r0 + lx, 2 * lo:2 * lo + DH]
            qrev_h = qw[r0:r0 + lx, 2 * lo + DH:2 * lo + 2 * DH]
            k_h = k[r0:r0 + lx, lo:lo + DH]
            v_h = v[r0:r0 + lx, lo:lo + DH]
            w_att = gates[b:b + 1, lo:lo + DH]            # (1, DH)
            w_sft = gates[b:b + 1, H + lo:H + lo + DH]    # (1, DH), fftshift folded

            # G = ([C|S] * [w_sft|w_sft]) @ [C|S]^T / DH   (real, symmetric)
            w2 = jnp.concatenate([w_sft, w_sft], axis=1).astype(wdt)   # (1, 2DH)
            g = dot_bt(cs * w2, cs) * inv_d                            # (DH, DH) f32

            a_rev = dot_bt(qrev_h.astype(wdt), k_h.astype(wdt))        # q P k^T
            a_sp = dot_bt(q_h.astype(wdt), k_h.astype(wdt))            # q k^T
            scores = (dot(a_rev.astype(wdt), g.astype(wdt))            # freq path
                      + a_sp * w_att) * scale + madd                   # + spatial*W
            scores = scores - jnp.max(scores, axis=-1, keepdims=True)
            e = jnp.exp(scores)
            denom = jnp.sum(e, axis=-1, keepdims=True)
            if use_approx:                      # EUP reciprocal in the bf16 fast path
                att = e * pl.reciprocal(denom, approx=True)
            else:                               # exact divide in the f32 check path
                att = e / denom
            head_outs.append(dot(att.astype(wdt), v_h.astype(wdt)))    # (LX, DH)
        atted_rows.append(jnp.concatenate(head_outs, axis=1))          # (LX, H)
    atted = jnp.concatenate(atted_rows, axis=0)                        # (bb*LX, H)

    # single fused linear_merge for all batches/heads
    merged = dot(atted.astype(wdt), wm_ref[...]) + bm_ref[...]
    o_ref[...] = merged.reshape(bb, lx, H)


# ========================= host-side weight packing =========================

def _dft_cos_sin(n):
    idx = np.arange(n)
    ang = 2.0 * np.pi * np.outer(idx, idx) / n
    return (jnp.asarray(np.cos(ang), jnp.float32),
            jnp.asarray(np.sin(ang), jnp.float32))


def _block_diag_per_head(wws):
    row_blocks = []
    for h in range(NH):
        row = [wws if j == h else jnp.zeros((DH, DH), wws.dtype)
               for j in range(NH)]
        row_blocks.append(jnp.concatenate(row, axis=1))
    return jnp.concatenate(row_blocks, axis=0)                 # (H, H)


def prepare_params(params):
    """Fold permutations / compositions into host-side packed weights (f32)."""
    wq, bq = params['q']
    wk, bk = params['k']
    wv, bv = params['v']
    ws, bs = params['s']
    wm, bm = params['m']
    wws, bws = params['ws']

    # Q projection widened with its per-head index-reversed copy (replaces the
    # old separate reversed-K projection).
    wq_rev, bq_rev = wq[:, _REV_IDX], bq[_REV_IDX]
    wq_wide = jnp.concatenate(
        [jnp.concatenate([wq[:, h * DH:(h + 1) * DH],
                          wq_rev[:, h * DH:(h + 1) * DH]], axis=1)
         for h in range(NH)], axis=1)                          # (H, 2H)
    bq_wide = jnp.concatenate(
        [jnp.concatenate([bq[h * DH:(h + 1) * DH],
                          bq_rev[h * DH:(h + 1) * DH]])
         for h in range(NH)])[None, :]                         # (1, 2H)

    # s-path: mean(linear_s(s)) @ linear_ws  ==  mean(s) @ (Ws @ Wws_blockdiag).
    wws_bd = _block_diag_per_head(wws)                         # (H, H)
    w_att_c = jnp.dot(ws, wws_bd)                              # (H, H)
    b_att_c = jnp.dot(bs, wws_bd) + jnp.tile(bws, NH)          # (H,)
    wg = jnp.concatenate([w_att_c, w_att_c[:, _ROLL_IDX]], axis=1)   # (H, 2H)
    bg = jnp.concatenate([b_att_c, b_att_c[_ROLL_IDX]])[None, :]     # (1, 2H)

    cmat, smat = _dft_cos_sin(DH)
    cs = jnp.concatenate([cmat, smat], axis=1)                 # (DH, 2*DH) = [C|S]

    return dict(wq=wq_wide, wk=wk, wv=wv, wm=wm, wg=wg,
                bqw=bq_wide, bkv=jnp.stack([bk, bv], axis=0),
                bm=bm[None, :], bg=bg, cs=cs)


def cast_matmul_weights(packed, dtype):
    """Cast the big MXU weights (not gate weights / biases) to `dtype`."""
    out = dict(packed)
    for name in ('wq', 'wk', 'wv', 'wm', 'cs'):
        out[name] = packed[name].astype(dtype)
    return out


# ============================ pallas_call wrapper ============================

def _num_core_blocks(batch):
    """Batch split across TensorCores: 2 blocks on v7x (2 TC/chip), else 1."""
    try:
        kind = jax.devices()[0].device_kind.lower()
        n = 2 if ('v7' in kind or '7x' in kind) else 1
    except Exception:                                          # pragma: no cover
        n = 1
    if batch % n != 0:
        n = 1
    return n


def fourier_mhatt_forward(packed, v_in, k_in, q_in, mask, s_in):
    b_, l_, h_ = q_in.shape
    assert l_ == DH == 64 and h_ == H, \
        "Fourier_MHAtt requires seq_len == head_dim == 64"
    ls = s_in.shape[1]
    nb = _num_core_blocks(b_)
    bb = b_ // nb
    # additive mask bias (pre-folded; 1.0 marks padded key positions)
    madd = (mask.astype(jnp.float32) * NEG).reshape(b_, 1, l_)

    seq_spec = pl.BlockSpec((bb, l_, h_), lambda b: (b, 0, 0))

    def wspec(shp):
        return pl.BlockSpec(shp, lambda b, _n=len(shp): (0,) * _n)

    # NOTE(perf): in TRAR self-attention v_in is k_in is q_in; in that case the
    # three projection weights could be concatenated into one (128,512) matmul.
    return pl.pallas_call(
        _fourier_mhatt_kernel,
        out_shape=jax.ShapeDtypeStruct((b_, l_, h_), jnp.float32),
        grid=(nb,),
        in_specs=[
            seq_spec,                                           # q
            seq_spec,                                           # k
            seq_spec,                                           # v
            pl.BlockSpec((bb, ls, h_), lambda b: (b, 0, 0)),    # s
            pl.BlockSpec((bb, 1, l_), lambda b: (b, 0, 0)),     # additive mask
            wspec((h_, 2 * h_)),                                # Wq | Wq_rev (wide)
            wspec((h_, h_)),                                    # Wk
            wspec((h_, h_)),                                    # Wv
            wspec((h_, h_)),                                    # Wm (merge)
            wspec((h_, 2 * h_)),                                # composed gate W
            wspec((1, 2 * h_)),                                 # q-wide bias
            wspec((2, h_)),                                     # bk, bv
            wspec((1, h_)),                                     # bm
            wspec((1, 2 * h_)),                                 # composed gate bias
            wspec((DH, 2 * DH)),                                # [C | S]
        ],
        out_specs=seq_spec,
        compiler_params=pltpu.CompilerParams(
            dimension_semantics=("parallel",)),
    )(q_in, k_in, v_in, s_in, madd,
      packed['wq'], packed['wk'], packed['wv'], packed['wm'], packed['wg'],
      packed['bqw'], packed['bkv'], packed['bm'], packed['bg'], packed['cs'])


# ======================= pure-JAX reference (checking) =======================

def ref_fourier_mhatt(params, v_in, k_in, q_in, mask, s_in):
    hp = lax.Precision.HIGHEST
    lin = lambda t, wb: jnp.dot(t, wb[0], precision=hp) + wb[1]

    def split(t):
        b_, l_, _ = t.shape
        return t.reshape(b_, l_, NH, DH).transpose(0, 2, 1, 3)

    def merge(t):
        b_, _, l_, _ = t.shape
        return t.transpose(0, 2, 1, 3).reshape(b_, l_, H)

    s = split(lin(s_in, params['s']))                          # (B, NH, LS, DH)
    w_s = jnp.mean(s, axis=2, keepdims=True)                   # AdaptiveAvgPool2d
    w_s = jnp.broadcast_to(w_s, (s.shape[0], NH, LX, DH))      # .expand(...)
    weight = jax.nn.sigmoid(lin(w_s, params['ws']))            # (B, NH, 64, DH)

    v = split(lin(v_in, params['v']))
    k = split(lin(k_in, params['k']))
    q = split(lin(q_in, params['q']))

    qf = jnp.fft.fft2(q, norm='ortho')
    kf = jnp.fft.fft2(k, norm='ortho')
    sc = jnp.einsum('bhld,bhmd->bhlm', qf, kf, precision=hp) / math.sqrt(DH)
    sc = jnp.fft.fftshift(sc, axes=(-2, -1)) * weight
    sc = jnp.fft.ifft2(jnp.fft.ifftshift(sc, axes=(-2, -1)), norm='ortho')
    scores = jnp.real(sc)
    scores = scores + (jnp.einsum('bhld,bhmd->bhlm', q, k, precision=hp)
                       / math.sqrt(DH)) * weight
    scores = jnp.where(mask[:, None, None, :] > 0.5, NEG, scores)
    att = jax.nn.softmax(scores, axis=-1)
    out = jnp.einsum('bhlm,bhmd->bhld', att, v, precision=hp)
    return lin(merge(out), params['m'])


# ======================= deterministic parameter init =======================

def init_linear(key, din, dout):
    kw, kb = jax.random.split(key)
    w = jax.random.normal(kw, (din, dout), jnp.float32) / math.sqrt(din)
    b = jax.random.normal(kb, (dout,), jnp.float32) * 0.01
    return (w, b)


def init_params(key):
    ks = jax.random.split(key, 6)
    return {'v': init_linear(ks[0], H, H), 'k': init_linear(ks[1], H, H),
            'q': init_linear(ks[2], H, H), 'm': init_linear(ks[3], H, H),
            's': init_linear(ks[4], H, H), 'ws': init_linear(ks[5], DH, DH)}


# ================================= main ======================================

if __name__ == "__main__":
    root = jax.random.PRNGKey(0)
    kp, kq, kk, kv, ks_in = jax.random.split(root, 5)
    params = init_params(kp)

    q_in = jax.random.normal(kq, (B, LX, H), jnp.float32)
    k_in = jax.random.normal(kk, (B, LX, H), jnp.float32)
    v_in = jax.random.normal(kv, (B, LX, H), jnp.float32)
    s_in = jax.random.normal(ks_in, (B, LS, H), jnp.float32)
    # 1.0 marks padded key positions (torch bool mask -> masked_fill)
    mask = jnp.zeros((B, LX), jnp.float32).at[1, LX - 4:].set(1.0)

    packed_f32 = prepare_params(params)                 # one-time host packing
    packed_bf16 = cast_matmul_weights(packed_f32, jnp.bfloat16)

    fwd = jax.jit(fourier_mhatt_forward)
    ref = ref_fourier_mhatt(params, v_in, k_in, q_in, mask, s_in)

    # (1) f32 kernel run: tight check of the FFT-collapse algebra + plumbing.
    out_f32 = fwd(packed_f32, v_in, k_in, q_in, mask, s_in)
    jax.block_until_ready(out_f32)
    err32 = float(jnp.max(jnp.abs(out_f32 - ref)))
    assert np.isfinite(err32) and err32 < 2e-3, \
        f"f32 kernel mismatch vs FFT reference: {err32}"

    # (2) bf16 fast path: looser tolerance accounts for bf16 weights/activations
    #     and the approximate EUP reciprocal (softmax / gates accumulate in f32).
    out_bf16 = fwd(packed_bf16, v_in, k_in, q_in, mask, s_in)
    jax.block_until_ready(out_bf16)
    err16 = float(jnp.max(jnp.abs(out_bf16 - ref)))
    err16_mean = float(jnp.mean(jnp.abs(out_bf16 - ref)))
    assert np.isfinite(err16) and err16 < 5e-2 and err16_mean < 1e-2, \
        f"bf16 kernel mismatch vs FFT reference: max={err16} mean={err16_mean}"

    print("KERNEL_OK")
</pallas_src>

<mosaic_0001>
module attributes {stable_mosaic.version = 11 : i64} {
  func.func @_fourier_mhatt_kernel(%arg0: i32, %arg1: memref<2x64x128xf32, #tpu.memory_space<vmem>>, %arg2: memref<2x64x128xf32, #tpu.memory_space<vmem>>, %arg3: memref<2x64x128xf32, #tpu.memory_space<vmem>>, %arg4: memref<2x8x128xf32, #tpu.memory_space<vmem>>, %arg5: memref<2x1x64xf32, #tpu.memory_space<vmem>>, %arg6: memref<128x256xf32, #tpu.memory_space<vmem>>, %arg7: memref<128x128xf32, #tpu.memory_space<vmem>>, %arg8: memref<128x128xf32, #tpu.memory_space<vmem>>, %arg9: memref<128x128xf32, #tpu.memory_space<vmem>>, %arg10: memref<128x256xf32, #tpu.memory_space<vmem>>, %arg11: memref<1x256xf32, #tpu.memory_space<vmem>>, %arg12: memref<2x128xf32, #tpu.memory_space<vmem>>, %arg13: memref<1x128xf32, #tpu.memory_space<vmem>>, %arg14: memref<1x256xf32, #tpu.memory_space<vmem>>, %arg15: memref<64x128xf32, #tpu.memory_space<vmem>>, %arg16: memref<2x64x128xf32, #tpu.memory_space<vmem>>) attributes {dimension_semantics = [#tpu.dimension_semantics<parallel>], iteration_bounds = array<i64: 1>, scalar_prefetch = 0 : i64, scratch_operands = 0 : i64, tpu.core_type = #tpu.core_type<tc>, window_params = [{transform_indices = @transform_0, window_bounds = array<i64: 2, 64, 128>}, {transform_indices = @transform_1, window_bounds = array<i64: 2, 64, 128>}, {transform_indices = @transform_2, window_bounds = array<i64: 2, 64, 128>}, {transform_indices = @transform_3, window_bounds = array<i64: 2, 8, 128>}, {transform_indices = @transform_4, window_bounds = array<i64: 2, 1, 64>}, {pipeline_mode = #tpu.pipeline_mode<synchronous>, transform_indices = @transform_5, window_bounds = array<i64: 128, 256>}, {pipeline_mode = #tpu.pipeline_mode<synchronous>, transform_indices = @transform_6, window_bounds = array<i64: 128, 128>}, {pipeline_mode = #tpu.pipeline_mode<synchronous>, transform_indices = @transform_7, window_bounds = array<i64: 128, 128>}, {pipeline_mode = #tpu.pipeline_mode<synchronous>, transform_indices = @transform_8, window_bounds = array<i64: 128, 128>}, {pipeline_mode = #tpu.pipeline_mode<synchronous>, transform_indices = @transform_9, window_bounds = array<i64: 128, 256>}, {pipeline_mode = #tpu.pipeline_mode<synchronous>, transform_indices = @transform_10, window_bounds = array<i64: 1, 256>}, {pipeline_mode = #tpu.pipeline_mode<synchronous>, transform_indices = @transform_11, window_bounds = array<i64: 2, 128>}, {pipeline_mode = #tpu.pipeline_mode<synchronous>, transform_indices = @transform_12, window_bounds = array<i64: 1, 128>}, {pipeline_mode = #tpu.pipeline_mode<synchronous>, transform_indices = @transform_13, window_bounds = array<i64: 1, 256>}, {pipeline_mode = #tpu.pipeline_mode<synchronous>, transform_indices = @transform_14, window_bounds = array<i64: 64, 128>}, {transform_indices = @transform_15, window_bounds = array<i64: 2, 64, 128>}]} {
    %c0 = arith.constant 0 : index
    %c0_0 = arith.constant 0 : index
    %c0_1 = arith.constant 0 : index
    %0 = vector.load %arg1[%c0, %c0_0, %c0_1] : memref<2x64x128xf32, #tpu.memory_space<vmem>>, vector<2x64x128xf32>
    %1 = vector.shape_cast %0 : vector<2x64x128xf32> to vector<128x128xf32>
    %c0_2 = arith.constant 0 : index
    %c0_3 = arith.constant 0 : index
    %c0_4 = arith.constant 0 : index
    %2 = vector.load %arg2[%c0_2, %c0_3, %c0_4] : memref<2x64x128xf32, #tpu.memory_space<vmem>>, vector<2x64x128xf32>
    %3 = vector.shape_cast %2 : vector<2x64x128xf32> to vector<128x128xf32>
    %c0_5 = arith.constant 0 : index
    %c0_6 = arith.constant 0 : index
    %c0_7 = arith.constant 0 : index
    %4 = vector.load %arg3[%c0_5, %c0_6, %c0_7] : memref<2x64x128xf32, #tpu.memory_space<vmem>>, vector<2x64x128xf32>
    %5 = vector.shape_cast %4 : vector<2x64x128xf32> to vector<128x128xf32>
    %c0_8 = arith.constant 0 : index
    %c0_9 = arith.constant 0 : index
    %6 = vector.load %arg6[%c0_8, %c0_9] : memref<128x256xf32, #tpu.memory_space<vmem>>, vector<128x256xf32>
    %cst = arith.constant dense<0.000000e+00> : vector<128x256xf32>
    %7 = tpu.matmul %1, %6, %cst {dimension_numbers = #tpu.dot_dimension_numbers<[1], [0], [0], [1], [0, 0, 1, 1], [], []>} : vector<128x128xf32>, vector<128x256xf32>, vector<128x256xf32> -> vector<128x256xf32>
    %c0_10 = arith.constant 0 : index
    %c0_11 = arith.constant 0 : index
    %8 = vector.load %arg11[%c0_10, %c0_11] : memref<1x256xf32, #tpu.memory_space<vmem>>, vector<1x256xf32>
    %9 = vector.broadcast %8 : vector<1x256xf32> to vector<128x256xf32>
    %10 = arith.addf %7, %9 : vector<128x256xf32>
    %c0_12 = arith.constant 0 : index
    %c0_13 = arith.constant 0 : index
    %11 = vector.load %arg7[%c0_12, %c0_13] : memref<128x128xf32, #tpu.memory_space<vmem>>, vector<128x128xf32>
    %cst_14 = arith.constant dense<0.000000e+00> : vector<128x128xf32>
    %12 = tpu.matmul %3, %11, %cst_14 {dimension_numbers = #tpu.dot_dimension_numbers<[1], [0], [0], [1], [0, 0, 1, 1], [], []>} : vector<128x128xf32>, vector<128x128xf32>, vector<128x128xf32> -> vector<128x128xf32>
    %c0_15 = arith.constant 0 : index
    %c0_16 = arith.constant 0 : index
    %13 = vector.load %arg12[%c0_15, %c0_16] : memref<2x128xf32, #tpu.memory_space<vmem>>, vector<1x128xf32>
    %14 = vector.broadcast %13 : vector<1x128xf32> to vector<128x128xf32>
    %15 = arith.addf %12, %14 : vector<128x128xf32>
    %c0_17 = arith.constant 0 : index
    %c0_18 = arith.constant 0 : index
    %16 = vector.load %arg8[%c0_17, %c0_18] : memref<128x128xf32, #tpu.memory_space<vmem>>, vector<128x128xf32>
    %cst_19 = arith.constant dense<0.000000e+00> : vector<128x128xf32>
    %17 = tpu.matmul %5, %16, %cst_19 {dimension_numbers = #tpu.dot_dimension_numbers<[1], [0], [0], [1], [0, 0, 1, 1], [], []>} : vector<128x128xf32>, vector<128x128xf32>, vector<128x128xf32> -> vector<128x128xf32>
    %c1 = arith.constant 1 : index
    %c0_20 = arith.constant 0 : index
    %18 = vector.load %arg12[%c1, %c0_20] : memref<2x128xf32, #tpu.memory_space<vmem>>, vector<1x128xf32>
    %19 = vector.broadcast %18 : vector<1x128xf32> to vector<128x128xf32>
    %20 = arith.addf %17, %19 : vector<128x128xf32>
    %c0_21 = arith.constant 0 : index
    %c0_22 = arith.constant 0 : index
    %c0_23 = arith.constant 0 : index
    %21 = vector.load %arg4[%c0_21, %c0_22, %c0_23] : memref<2x8x128xf32, #tpu.memory_space<vmem>>, vector<2x8x128xf32>
    %cst_24 = arith.constant dense<0.000000e+00> : vector<2x128xf32>
    %22 = vector.multi_reduction <add>, %21, %cst_24 [1] : vector<2x8x128xf32> to vector<2x128xf32>
    %cst_25 = arith.constant 8.000000e+00 : f32
    %23 = vector.broadcast %cst_25 : f32 to vector<2x128xf32>
    %24 = arith.divf %22, %23 : vector<2x128xf32>
    %c0_26 = arith.constant 0 : index
    %c0_27 = arith.constant 0 : index
    %25 = vector.load %arg10[%c0_26, %c0_27] : memref<128x256xf32, #tpu.memory_space<vmem>>, vector<128x256xf32>
    %cst_28 = arith.constant dense<0.000000e+00> : vector<2x256xf32>
    %26 = tpu.matmul %24, %25, %cst_28 {dimension_numbers = #tpu.dot_dimension_numbers<[1], [0], [0], [1], [0, 0, 1, 1], [], []>} : vector<2x128xf32>, vector<128x256xf32>, vector<2x256xf32> -> vector<2x256xf32>
    %c0_29 = arith.constant 0 : index
    %c0_30 = arith.constant 0 : index
    %27 = vector.load %arg14[%c0_29, %c0_30] : memref<1x256xf32, #tpu.memory_space<vmem>>, vector<1x256xf32>
    %28 = vector.broadcast %27 : vector<1x256xf32> to vector<2x256xf32>
    %29 = arith.addf %26, %28 : vector<2x256xf32>
    %cst_31 = arith.constant 0.000000e+00 : f32
    %30 = vector.broadcast %cst_31 : f32 to vector<2x256xf32>
    %31 = arith.subf %30, %29 : vector<2x256xf32>
    %32 = math.exp %31 : vector<2x256xf32>
    %cst_32 = arith.constant 1.000000e+00 : f32
    %33 = vector.broadcast %cst_32 : f32 to vector<2x256xf32>
    %34 = arith.addf %33, %32 : vector<2x256xf32>
    %cst_33 = arith.constant 1.000000e+00 : f32
    %35 = vector.broadcast %cst_33 : f32 to vector<2x256xf32>
    %36 = arith.divf %35, %34 : vector<2x256xf32>
    %c0_34 = arith.constant 0 : index
    %c0_35 = arith.constant 0 : index
    %37 = vector.load %arg15[%c0_34, %c0_35] : memref<64x128xf32, #tpu.memory_space<vmem>>, vector<64x128xf32>
    %c0_36 = arith.constant 0 : index
    %c0_37 = arith.constant 0 : index
    %c0_38 = arith.constant 0 : index
    %38 = vector.load %arg5[%c0_36, %c0_37, %c0_38] : memref<2x1x64xf32, #tpu.memory_space<vmem>>, vector<2x1x64xf32>
    %39 = vector.extract_strided_slice %38 {offsets = [0, 0, 0], sizes = [1, 1, 64], strides = [1, 1, 1]} : vector<2x1x64xf32> to vector<1x1x64xf32>
    %40 = vector.shape_cast %39 : vector<1x1x64xf32> to vector<1x64xf32>
    %41 = vector.extract_strided_slice %10 {offsets = [0, 0], sizes = [64, 64], strides = [1, 1]} : vector<128x256xf32> to vector<64x64xf32>
    %42 = vector.extract_strided_slice %10 {offsets = [0, 64], sizes = [64, 64], strides = [1, 1]} : vector<128x256xf32> to vector<64x64xf32>
    %43 = vector.extract_strided_slice %15 {offsets = [0, 0], sizes = [64, 64], strides = [1, 1]} : vector<128x128xf32> to vector<64x64xf32>
    %44 = vector.extract_strided_slice %20 {offsets = [0, 0], sizes = [64, 64], strides = [1, 1]} : vector<128x128xf32> to vector<64x64xf32>
    %45 = vector.extract_strided_slice %36 {offsets = [0, 0], sizes = [1, 64], strides = [1, 1]} : vector<2x256xf32> to vector<1x64xf32>
    %46 = vector.extract_strided_slice %36 {offsets = [0, 128], sizes = [1, 64], strides = [1, 1]} : vector<2x256xf32> to vector<1x64xf32>
    %47 = tpu.concatenate %46, %46 in 1 : vector<1x64xf32>, vector<1x64xf32> -> vector<1x128xf32>
    %48 = vector.broadcast %47 : vector<1x128xf32> to vector<64x128xf32>
    %49 = arith.mulf %37, %48 : vector<64x128xf32>
    %cst_39 = arith.constant dense<0.000000e+00> : vector<64x64xf32>
    %50 = tpu.matmul %49, %37, %cst_39 {dimension_numbers = #tpu.dot_dimension_numbers<[1], [1], [0], [0], [0, 0, 1, 0], [], []>} : vector<64x128xf32>, vector<64x128xf32>, vector<64x64xf32> -> vector<64x64xf32>
    %cst_40 = arith.constant 1.562500e-02 : f32
    %51 = vector.broadcast %cst_40 : f32 to vector<64x64xf32>
    %52 = arith.mulf %50, %51 : vector<64x64xf32>
    %cst_41 = arith.constant dense<0.000000e+00> : vector<64x64xf32>
    %53 = tpu.matmul %42, %43, %cst_41 {dimension_numbers = #tpu.dot_dimension_numbers<[1], [1], [0], [0], [0, 0, 1, 0], [], []>} : vector<64x64xf32>, vector<64x64xf32>, vector<64x64xf32> -> vector<64x64xf32>
    %cst_42 = arith.constant dense<0.000000e+00> : vector<64x64xf32>
    %54 = tpu.matmul %41, %43, %cst_42 {dimension_numbers = #tpu.dot_dimension_numbers<[1], [1], [0], [0], [0, 0, 1, 0], [], []>} : vector<64x64xf32>, vector<64x64xf32>, vector<64x64xf32> -> vector<64x64xf32>
    %cst_43 = arith.constant dense<0.000000e+00> : vector<64x64xf32>
    %55 = tpu.matmul %53, %52, %cst_43 {dimension_numbers = #tpu.dot_dimension_numbers<[1], [0], [0], [1], [0, 0, 1, 1], [], []>} : vector<64x64xf32>, vector<64x64xf32>, vector<64x64xf32> -> vector<64x64xf32>
    %56 = vector.broadcast %45 : vector<1x64xf32> to vector<64x64xf32>
    %57 = arith.mulf %54, %56 : vector<64x64xf32>
    %58 = arith.addf %55, %57 : vector<64x64xf32>
    %cst_44 = arith.constant 1.250000e-01 : f32
    %59 = vector.broadcast %cst_44 : f32 to vector<64x64xf32>
    %60 = arith.mulf %58, %59 : vector<64x64xf32>
    %61 = vector.broadcast %40 : vector<1x64xf32> to vector<64x64xf32>
    %62 = arith.addf %60, %61 : vector<64x64xf32>
    %cst_45 = arith.constant dense<0xFF800000> : vector<64xf32>
    %63 = vector.multi_reduction <maximumf>, %62, %cst_45 [1] : vector<64x64xf32> to vector<64xf32>
    %64 = vector.shape_cast %63 : vector<64xf32> to vector<64x1xf32>
    %65 = vector.broadcast %64 : vector<64x1xf32> to vector<64x64xf32>
    %66 = arith.subf %62, %65 : vector<64x64xf32>
    %67 = math.exp %66 : vector<64x64xf32>
    %cst_46 = arith.constant dense<0.000000e+00> : vector<64xf32>
    %68 = vector.multi_reduction <add>, %67, %cst_46 [1] : vector<64x64xf32> to vector<64xf32>
    %69 = vector.shape_cast %68 : vector<64xf32> to vector<64x1xf32>
    %70 = vector.broadcast %69 : vector<64x1xf32> to vector<64x64xf32>
    %71 = arith.divf %67, %70 : vector<64x64xf32>
    %cst_47 = arith.constant dense<0.000000e+00> : vector<64x64xf32>
    %72 = tpu.matmul %71, %44, %cst_47 {dimension_numbers = #tpu.dot_dimension_numbers<[1], [0], [0], [1], [0, 0, 1, 1], [], []>} : vector<64x64xf32>, vector<64x64xf32>, vector<64x64xf32> -> vector<64x64xf32>
    %73 = vector.extract_strided_slice %10 {offsets = [0, 128], sizes = [64, 64], strides = [1, 1]} : vector<128x256xf32> to vector<64x64xf32>
    %74 = vector.extract_strided_slice %10 {offsets = [0, 192], sizes = [64, 64], strides = [1, 1]} : vector<128x256xf32> to vector<64x64xf32>
    %75 = vector.extract_strided_slice %15 {offsets = [0, 64], sizes = [64, 64], strides = [1, 1]} : vector<128x128xf32> to vector<64x64xf32>
    %76 = vector.extract_strided_slice %20 {offsets = [0, 64], sizes = [64, 64], strides = [1, 1]} : vector<128x128xf32> to vector<64x64xf32>
    %77 = vector.extract_strided_slice %36 {offsets = [0, 64], sizes = [1, 64], strides = [1, 1]} : vector<2x256xf32> to vector<1x64xf32>
    %78 = vector.extract_strided_slice %36 {offsets = [0, 192], sizes = [1, 64], strides = [1, 1]} : vector<2x256xf32> to vector<1x64xf32>
    %79 = tpu.concatenate %78, %78 in 1 : vector<1x64xf32>, vector<1x64xf32> -> vector<1x128xf32>
    %80 = vector.broadcast %79 : vector<1x128xf32> to vector<64x128xf32>
    %81 = arith.mulf %37, %80 : vector<64x128xf32>
    %cst_48 = arith.constant dense<0.000000e+00> : vector<64x64xf32>
    %82 = tpu.matmul %81, %37, %cst_48 {dimension_numbers = #tpu.dot_dimension_numbers<[1], [1], [0], [0], [0, 0, 1, 0], [], []>} : vector<64x128xf32>, vector<64x128xf32>, vector<64x64xf32> -> vector<64x64xf32>
    %cst_49 = arith.constant 1.562500e-02 : f32
    %83 = vector.broadcast %cst_49 : f32 to vector<64x64xf32>
    %84 = arith.mulf %82, %83 : vector<64x64xf32>
    %cst_50 = arith.constant dense<0.000000e+00> : vector<64x64xf32>
    %85 = tpu.matmul %74, %75, %cst_50 {dimension_numbers = #tpu.dot_dimension_numbers<[1], [1], [0], [0], [0, 0, 1, 0], [], []>} : vector<64x64xf32>, vector<64x64xf32>, vector<64x64xf32> -> vector<64x64xf32>
    %cst_51 = arith.constant dense<0.000000e+00> : vector<64x64xf32>
    %86 = tpu.matmul %73, %75, %cst_51 {dimension_numbers = #tpu.dot_dimension_numbers<[1], [1], [0], [0], [0, 0, 1, 0], [], []>} : vector<64x64xf32>, vector<64x64xf32>, vector<64x64xf32> -> vector<64x64xf32>
    %cst_52 = arith.constant dense<0.000000e+00> : vector<64x64xf32>
    %87 = tpu.matmul %85, %84, %cst_52 {dimension_numbers = #tpu.dot_dimension_numbers<[1], [0], [0], [1], [0, 0, 1, 1], [], []>} : vector<64x64xf32>, vector<64x64xf32>, vector<64x64xf32> -> vector<64x64xf32>
    %88 = vector.broadcast %77 : vector<1x64xf32> to vector<64x64xf32>
    %89 = arith.mulf %86, %88 : vector<64x64xf32>
    %90 = arith.addf %87, %89 : vector<64x64xf32>
    %cst_53 = arith.constant 1.250000e-01 : f32
    %91 = vector.broadcast %cst_53 : f32 to vector<64x64xf32>
    %92 = arith.mulf %90, %91 : vector<64x64xf32>
    %93 = vector.broadcast %40 : vector<1x64xf32> to vector<64x64xf32>
    %94 = arith.addf %92, %93 : vector<64x64xf32>
    %cst_54 = arith.constant dense<0xFF800000> : vector<64xf32>
    %95 = vector.multi_reduction <maximumf>, %94, %cst_54 [1] : vector<64x64xf32> to vector<64xf32>
    %96 = vector.shape_cast %95 : vector<64xf32> to vector<64x1xf32>
    %97 = vector.broadcast %96 : vector<64x1xf32> to vector<64x64xf32>
    %98 = arith.subf %94, %97 : vector<64x64xf32>
    %99 = math.exp %98 : vector<64x64xf32>
    %cst_55 = arith.constant dense<0.000000e+00> : vector<64xf32>
    %100 = vector.multi_reduction <add>, %99, %cst_55 [1] : vector<64x64xf32> to vector<64xf32>
    %101 = vector.shape_cast %100 : vector<64xf32> to vector<64x1xf32>
    %102 = vector.broadcast %101 : vector<64x1xf32> to vector<64x64xf32>
    %103 = arith.divf %99, %102 : vector<64x64xf32>
    %cst_56 = arith.constant dense<0.000000e+00> : vector<64x64xf32>
    %104 = tpu.matmul %103, %76, %cst_56 {dimension_numbers = #tpu.dot_dimension_numbers<[1], [0], [0], [1], [0, 0, 1, 1], [], []>} : vector<64x64xf32>, vector<64x64xf32>, vector<64x64xf32> -> vector<64x64xf32>
    %105 = tpu.concatenate %72, %104 in 1 : vector<64x64xf32>, vector<64x64xf32> -> vector<64x128xf32>
    %106 = vector.extract_strided_slice %38 {offsets = [1, 0, 0], sizes = [1, 1, 64], strides = [1, 1, 1]} : vector<2x1x64xf32> to vector<1x1x64xf32>
    %107 = vector.shape_cast %106 : vector<1x1x64xf32> to vector<1x64xf32>
    %108 = vector.extract_strided_slice %10 {offsets = [64, 0], sizes = [64, 64], strides = [1, 1]} : vector<128x256xf32> to vector<64x64xf32>
    %109 = vector.extract_strided_slice %10 {offsets = [64, 64], sizes = [64, 64], strides = [1, 1]} : vector<128x256xf32> to vector<64x64xf32>
    %110 = vector.extract_strided_slice %15 {offsets = [64, 0], sizes = [64, 64], strides = [1, 1]} : vector<128x128xf32> to vector<64x64xf32>
    %111 = vector.extract_strided_slice %20 {offsets = [64, 0], sizes = [64, 64], strides = [1, 1]} : vector<128x128xf32> to vector<64x64xf32>
    %112 = vector.extract_strided_slice %36 {offsets = [1, 0], sizes = [1, 64], strides = [1, 1]} : vector<2x256xf32> to vector<1x64xf32>
    %113 = vector.extract_strided_slice %36 {offsets = [1, 128], sizes = [1, 64], strides = [1, 1]} : vector<2x256xf32> to vector<1x64xf32>
    %114 = tpu.concatenate %113, %113 in 1 : vector<1x64xf32>, vector<1x64xf32> -> vector<1x128xf32>
    %115 = vector.broadcast %114 : vector<1x128xf32> to vector<64x128xf32>
    %116 = arith.mulf %37, %115 : vector<64x128xf32>
    %cst_57 = arith.constant dense<0.000000e+00> : vector<64x64xf32>
    %117 = tpu.matmul %116, %37, %cst_57 {dimension_numbers = #tpu.dot_dimension_numbers<[1], [1], [0], [0], [0, 0, 1, 0], [], []>} : vector<64x128xf32>, vector<64x128xf32>, vector<64x64xf32> -> vector<64x64xf32>
    %cst_58 = arith.constant 1.562500e-02 : f32
    %118 = vector.broadcast %cst_58 : f32 to vector<64x64xf32>
    %119 = arith.mulf %117, %118 : vector<64x64xf32>
    %cst_59 = arith.constant dense<0.000000e+00> : vector<64x64xf32>
    %120 = tpu.matmul %109, %110, %cst_59 {dimension_numbers = #tpu.dot_dimension_numbers<[1], [1], [0], [0], [0, 0, 1, 0], [], []>} : vector<64x64xf32>, vector<64x64xf32>, vector<64x64xf32> -> vector<64x64xf32>
    %cst_60 = arith.constant dense<0.000000e+00> : vector<64x64xf32>
    %121 = tpu.matmul %108, %110, %cst_60 {dimension_numbers = #tpu.dot_dimension_numbers<[1], [1], [0], [0], [0, 0, 1, 0], [], []>} : vector<64x64xf32>, vector<64x64xf32>, vector<64x64xf32> -> vector<64x64xf32>
    %cst_61 = arith.constant dense<0.000000e+00> : vector<64x64xf32>
    %122 = tpu.matmul %120, %119, %cst_61 {dimension_numbers = #tpu.dot_dimension_numbers<[1], [0], [0], [1], [0, 0, 1, 1], [], []>} : vector<64x64xf32>, vector<64x64xf32>, vector<64x64xf32> -> vector<64x64xf32>
    %123 = vector.broadcast %112 : vector<1x64xf32> to vector<64x64xf32>
    %124 = arith.mulf %121, %123 : vector<64x64xf32>
    %125 = arith.addf %122, %124 : vector<64x64xf32>
    %cst_62 = arith.constant 1.250000e-01 : f32
    %126 = vector.broadcast %cst_62 : f32 to vector<64x64xf32>
    %127 = arith.mulf %125, %126 : vector<64x64xf32>
    %128 = vector.broadcast %107 : vector<1x64xf32> to vector<64x64xf32>
    %129 = arith.addf %127, %128 : vector<64x64xf32>
    %cst_63 = arith.constant dense<0xFF800000> : vector<64xf32>
    %130 = vector.multi_reduction <maximumf>, %129, %cst_63 [1] : vector<64x64xf32> to vector<64xf32>
    %131 = vector.shape_cast %130 : vector<64xf32> to vector<64x1xf32>
    %132 = vector.broadcast %131 : vector<64x1xf32> to vector<64x64xf32>
    %133 = arith.subf %129, %132 : vector<64x64xf32>
    %134 = math.exp %133 : vector<64x64xf32>
    %cst_64 = arith.constant dense<0.000000e+00> : vector<64xf32>
    %135 = vector.multi_reduction <add>, %134, %cst_64 [1] : vector<64x64xf32> to vector<64xf32>
    %136 = vector.shape_cast %135 : vector<64xf32> to vector<64x1xf32>
    %137 = vector.broadcast %136 : vector<64x1xf32> to vector<64x64xf32>
    %138 = arith.divf %134, %137 : vector<64x64xf32>
    %cst_65 = arith.constant dense<0.000000e+00> : vector<64x64xf32>
    %139 = tpu.matmul %138, %111, %cst_65 {dimension_numbers = #tpu.dot_dimension_numbers<[1], [0], [0], [1], [0, 0, 1, 1], [], []>} : vector<64x64xf32>, vector<64x64xf32>, vector<64x64xf32> -> vector<64x64xf32>
    %140 = vector.extract_strided_slice %10 {offsets = [64, 128], sizes = [64, 64], strides = [1, 1]} : vector<128x256xf32> to vector<64x64xf32>
    %141 = vector.extract_strided_slice %10 {offsets = [64, 192], sizes = [64, 64], strides = [1, 1]} : vector<128x256xf32> to vector<64x64xf32>
    %142 = vector.extract_strided_slice %15 {offsets = [64, 64], sizes = [64, 64], strides = [1, 1]} : vector<128x128xf32> to vector<64x64xf32>
    %143 = vector.extract_strided_slice %20 {offsets = [64, 64], sizes = [64, 64], strides = [1, 1]} : vector<128x128xf32> to vector<64x64xf32>
    %144 = vector.extract_strided_slice %36 {offsets = [1, 64], sizes = [1, 64], strides = [1, 1]} : vector<2x256xf32> to vector<1x64xf32>
    %145 = vector.extract_strided_slice %36 {offsets = [1, 192], sizes = [1, 64], strides = [1, 1]} : vector<2x256xf32> to vector<1x64xf32>
    %146 = tpu.concatenate %145, %145 in 1 : vector<1x64xf32>, vector<1x64xf32> -> vector<1x128xf32>
    %147 = vector.broadcast %146 : vector<1x128xf32> to vector<64x128xf32>
    %148 = arith.mulf %37, %147 : vector<64x128xf32>
    %cst_66 = arith.constant dense<0.000000e+00> : vector<64x64xf32>
    %149 = tpu.matmul %148, %37, %cst_66 {dimension_numbers = #tpu.dot_dimension_numbers<[1], [1], [0], [0], [0, 0, 1, 0], [], []>} : vector<64x128xf32>, vector<64x128xf32>, vector<64x64xf32> -> vector<64x64xf32>
    %cst_67 = arith.constant 1.562500e-02 : f32
    %150 = vector.broadcast %cst_67 : f32 to vector<64x64xf32>
    %151 = arith.mulf %149, %150 : vector<64x64xf32>
    %cst_68 = arith.constant dense<0.000000e+00> : vector<64x64xf32>
    %152 = tpu.matmul %141, %142, %cst_68 {dimension_numbers = #tpu.dot_dimension_numbers<[1], [1], [0], [0], [0, 0, 1, 0], [], []>} : vector<64x64xf32>, vector<64x64xf32>, vector<64x64xf32> -> vector<64x64xf32>
    %cst_69 = arith.constant dense<0.000000e+00> : vector<64x64xf32>
    %153 = tpu.matmul %140, %142, %cst_69 {dimension_numbers = #tpu.dot_dimension_numbers<[1], [1], [0], [0], [0, 0, 1, 0], [], []>} : vector<64x64xf32>, vector<64x64xf32>, vector<64x64xf32> -> vector<64x64xf32>
    %cst_70 = arith.constant dense<0.000000e+00> : vector<64x64xf32>
    %154 = tpu.matmul %152, %151, %cst_70 {dimension_numbers = #tpu.dot_dimension_numbers<[1], [0], [0], [1], [0, 0, 1, 1], [], []>} : vector<64x64xf32>, vector<64x64xf32>, vector<64x64xf32> -> vector<64x64xf32>
    %155 = vector.broadcast %144 : vector<1x64xf32> to vector<64x64xf32>
    %156 = arith.mulf %153, %155 : vector<64x64xf32>
    %157 = arith.addf %154, %156 : vector<64x64xf32>
    %cst_71 = arith.constant 1.250000e-01 : f32
    %158 = vector.broadcast %cst_71 : f32 to vector<64x64xf32>
    %159 = arith.mulf %157, %158 : vector<64x64xf32>
    %160 = vector.broadcast %107 : vector<1x64xf32> to vector<64x64xf32>
    %161 = arith.addf %159, %160 : vector<64x64xf32>
    %cst_72 = arith.constant dense<0xFF800000> : vector<64xf32>
    %162 = vector.multi_reduction <maximumf>, %161, %cst_72 [1] : vector<64x64xf32> to vector<64xf32>
    %163 = vector.shape_cast %162 : vector<64xf32> to vector<64x1xf32>
    %164 = vector.broadcast %163 : vector<64x1xf32> to vector<64x64xf32>
    %165 = arith.subf %161, %164 : vector<64x64xf32>
    %166 = math.exp %165 : vector<64x64xf32>
    %cst_73 = arith.constant dense<0.000000e+00> : vector<64xf32>
    %167 = vector.multi_reduction <add>, %166, %cst_73 [1] : vector<64x64xf32> to vector<64xf32>
    %168 = vector.shape_cast %167 : vector<64xf32> to vector<64x1xf32>
    %169 = vector.broadcast %168 : vector<64x1xf32> to vector<64x64xf32>
    %170 = arith.divf %166, %169 : vector<64x64xf32>
    %cst_74 = arith.constant dense<0.000000e+00> : vector<64x64xf32>
    %171 = tpu.matmul %170, %143, %cst_74 {dimension_numbers = #tpu.dot_dimension_numbers<[1], [0], [0], [1], [0, 0, 1, 1], [], []>} : vector<64x64xf32>, vector<64x64xf32>, vector<64x64xf32> -> vector<64x64xf32>
    %172 = tpu.concatenate %139, %171 in 1 : vector<64x64xf32>, vector<64x64xf32> -> vector<64x128xf32>
    %173 = tpu.concatenate %105, %172 in 0 : vector<64x128xf32>, vector<64x128xf32> -> vector<128x128xf32>
    %c0_75 = arith.constant 0 : index
    %c0_76 = arith.constant 0 : index
    %174 = vector.load %arg9[%c0_75, %c0_76] : memref<128x128xf32, #tpu.memory_space<vmem>>, vector<128x128xf32>
    %cst_77 = arith.constant dense<0.000000e+00> : vector<128x128xf32>
    %175 = tpu.matmul %173, %174, %cst_77 {dimension_numbers = #tpu.dot_dimension_numbers<[1], [0], [0], [1], [0, 0, 1, 1], [], []>} : vector<128x128xf32>, vector<128x128xf32>, vector<128x128xf32> -> vector<128x128xf32>
    %c0_78 = arith.constant 0 : index
    %c0_79 = arith.constant 0 : index
    %176 = vector.load %arg13[%c0_78, %c0_79] : memref<1x128xf32, #tpu.memory_space<vmem>>, vector<1x128xf32>
    %177 = vector.broadcast %176 : vector<1x128xf32> to vector<128x128xf32>
    %178 = arith.addf %175, %177 : vector<128x128xf32>
    %179 = vector.shape_cast %178 : vector<128x128xf32> to vector<2x64x128xf32>
    %c0_80 = arith.constant 0 : index
    %c0_81 = arith.constant 0 : index
    %c0_82 = arith.constant 0 : index
    %180 = vector.load %arg16[%c0_80, %c0_81, %c0_82] : memref<2x64x128xf32, #tpu.memory_space<vmem>>, vector<2x64x128xf32>
    tpu.vector_store %arg16[%c0_80, %c0_81, %c0_82], %179 {strides = array<i32>} : memref<2x64x128xf32, #tpu.memory_space<vmem>>, vector<2x64x128xf32>,
    return
  }
  func.func @transform_0(%arg0: i32) -> (i32, i32, i32) {
    %c0_i32 = arith.constant 0 : i32
    %c0_i32_0 = arith.constant 0 : i32
    %c0_i32_1 = arith.constant 0 : i32
    return %arg0, %c0_i32, %c0_i32_0 : i32, i32, i32
  }
  func.func @transform_1(%arg0: i32) -> (i32, i32, i32) {
    %c0_i32 = arith.constant 0 : i32
    %c0_i32_0 = arith.constant 0 : i32
    %c0_i32_1 = arith.constant 0 : i32
    return %arg0, %c0_i32, %c0_i32_0 : i32, i32, i32
  }
  func.func @transform_2(%arg0: i32) -> (i32, i32, i32) {
    %c0_i32 = arith.constant 0 : i32
    %c0_i32_0 = arith.constant 0 : i32
    %c0_i32_1 = arith.constant 0 : i32
    return %arg0, %c0_i32, %c0_i32_0 : i32, i32, i32
  }
  func.func @transform_3(%arg0: i32) -> (i32, i32, i32) {
    %c0_i32 = arith.constant 0 : i32
    %c0_i32_0 = arith.constant 0 : i32
    %c0_i32_1 = arith.constant 0 : i32
    return %arg0, %c0_i32, %c0_i32_0 : i32, i32, i32
  }
  func.func @transform_4(%arg0: i32) -> (i32, i32, i32) {
    %c0_i32 = arith.constant 0 : i32
    %c0_i32_0 = arith.constant 0 : i32
    %c0_i32_1 = arith.constant 0 : i32
    return %arg0, %c0_i32, %c0_i32_0 : i32, i32, i32
  }
  func.func @transform_5(%arg0: i32) -> (i32, i32) {
    %c0_i32 = arith.constant 0 : i32
    %c0_i32_0 = arith.constant 0 : i32
    %c0_i32_1 = arith.constant 0 : i32
    return %c0_i32, %c0_i32_0 : i32, i32
  }
  func.func @transform_6(%arg0: i32) -> (i32, i32) {
    %c0_i32 = arith.constant 0 : i32
    %c0_i32_0 = arith.constant 0 : i32
    %c0_i32_1 = arith.constant 0 : i32
    return %c0_i32, %c0_i32_0 : i32, i32
  }
  func.func @transform_7(%arg0: i32) -> (i32, i32) {
    %c0_i32 = arith.constant 0 : i32
    %c0_i32_0 = arith.constant 0 : i32
    %c0_i32_1 = arith.constant 0 : i32
    return %c0_i32, %c0_i32_0 : i32, i32
  }
  func.func @transform_8(%arg0: i32) -> (i32, i32) {
    %c0_i32 = arith.constant 0 : i32
    %c0_i32_0 = arith.constant 0 : i32
    %c0_i32_1 = arith.constant 0 : i32
    return %c0_i32, %c0_i32_0 : i32, i32
  }
  func.func @transform_9(%arg0: i32) -> (i32, i32) {
    %c0_i32 = arith.constant 0 : i32
    %c0_i32_0 = arith.constant 0 : i32
    %c0_i32_1 = arith.constant 0 : i32
    return %c0_i32, %c0_i32_0 : i32, i32
  }
  func.func @transform_10(%arg0: i32) -> (i32, i32) {
    %c0_i32 = arith.constant 0 : i32
    %c0_i32_0 = arith.constant 0 : i32
    %c0_i32_1 = arith.constant 0 : i32
    return %c0_i32, %c0_i32_0 : i32, i32
  }
  func.func @transform_11(%arg0: i32) -> (i32, i32) {
    %c0_i32 = arith.constant 0 : i32
    %c0_i32_0 = arith.constant 0 : i32
    %c0_i32_1 = arith.constant 0 : i32
    return %c0_i32, %c0_i32_0 : i32, i32
  }
  func.func @transform_12(%arg0: i32) -> (i32, i32) {
    %c0_i32 = arith.constant 0 : i32
    %c0_i32_0 = arith.constant 0 : i32
    %c0_i32_1 = arith.constant 0 : i32
    return %c0_i32, %c0_i32_0 : i32, i32
  }
  func.func @transform_13(%arg0: i32) -> (i32, i32) {
    %c0_i32 = arith.constant 0 : i32
    %c0_i32_0 = arith.constant 0 : i32
    %c0_i32_1 = arith.constant 0 : i32
    return %c0_i32, %c0_i32_0 : i32, i32
  }
  func.func @transform_14(%arg0: i32) -> (i32, i32) {
    %c0_i32 = arith.constant 0 : i32
    %c0_i32_0 = arith.constant 0 : i32
    %c0_i32_1 = arith.constant 0 : i32
    return %c0_i32, %c0_i32_0 : i32, i32
  }
  func.func @transform_15(%arg0: i32) -> (i32, i32, i32) {
    %c0_i32 = arith.constant 0 : i32
    %c0_i32_0 = arith.constant 0 : i32
    %c0_i32_1 = arith.constant 0 : i32
    return %arg0, %c0_i32, %c0_i32_0 : i32, i32, i32
  }
}

</mosaic_0001>

<bundles_post_ra>
// kernel: fourier_mhatt_forward.1
= control target key start
LH: loop header
LB: loop body
LE: loop exit
PB: predicated region body
PF: predicated region fallthrough
CT: control target
= control target key end

     0   :  { %20 = vsyncpa [#allocation3], 0  ;;  %s7902_s0 = inlined_call_operand.hbm [shape: f32[2,64,128], index: 0, kind: input, shape index: {}]   ;;  %s7903_s1 = inlined_call_operand.hbm [shape: f32[2,64,128], index: 1, kind: input, shape index: {}]   ;;  %s7904_s2 = inlined_call_operand.hbm [shape: f32[2,64,128], index: 2, kind: input, shape index: {}]   ;;  %s7905_s3 = inlined_call_operand.vmem [shape: f32[2,8,128], index: 3, kind: input, shape index: {}]   ;;  %s7906_s4 = inlined_call_operand.vmem [shape: f32[2,1,64], index: 4, kind: input, shape index: {}]   ;;  %s7907_s5 = inlined_call_operand.hbm [shape: f32[128,256], index: 5, kind: input, shape index: {}]   ;;  %s7908_s6 = inlined_call_operand.hbm [shape: f32[128,128], index: 6, kind: input, shape index: {}]   ;;  %s7909_s7 = inlined_call_operand.hbm [shape: f32[128,128], index: 7, kind: input, shape index: {}]   ;;  %s7910_s8 = inlined_call_operand.hbm [shape: f32[128,128], index: 8, kind: input, shape index: {}]   ;;  %s7911_s9 = inlined_call_operand.hbm [shape: f32[128,256], index: 9, kind: input, shape index: {}]   ;;  %s7912_s10 = inlined_call_operand.vmem [shape: f32[1,256], index: 10, kind: input, shape index: {}]   ;;  %s7913_s11 = inlined_call_operand.vmem [shape: f32[2,128], index: 11, kind: input, shape index: {}]   ;;  %s7914_s12 = inlined_call_operand.vmem [shape: f32[1,128], index: 12, kind: input, shape index: {}]   ;;  %s7915_s13 = inlined_call_operand.hbm [shape: f32[1,256], index: 13, kind: input, shape index: {}]   ;;  %s7916_s14 = inlined_call_operand.hbm [shape: f32[64,128], index: 14, kind: input, shape index: {}]   ;;  %s7917_s15 = inlined_call_operand.hbm [shape: f32[2,64,128], index: 15, kind: output, shape index: {}]  }
   0x1   :  { %21 = vsyncpa [#allocation6], 0 }
   0x2   :  { %22 = vsyncpa [#allocation9], 0 }
   0x3   :  { %23 = vsyncpa [#allocation12], 0 }
   0x4   :  { %24 = vsyncpa [#allocation15], 0 }
   0x5   :  { %25 = vsyncpa [#allocation18], 0 }
   0x6   :  { %26 = vsyncpa [#allocation4], 0  ;;  %s6280_s18 = smov [#allocation5]   ;;  %s6281_s20 = smov [#allocation8]  }
   0x7   :  { %s44_s19 = sshll.u32 %s6280_s18, 4  ;;  %s72_s21 = sshll.u32 %s6281_s20, 4  ;;  %s45_s19 = int_to_ptr.vmem [resolvable:$true] %s44_s19  ;;  %s73_s21 = int_to_ptr.vmem [resolvable:$true] %s72_s21 }
   0x8   :  { %s6054_s22 = scalar_lea.vmem %s45_s19, 2048  ;;  %p6059_p1 = scmp.lt.s32.totalorder %s45_s19, %s45_s19 }
   0x9   :  { %p6055_p0 = scmp.ne.s32.totalorder %s45_s19, %s6054_s22  ;;  %p6060_p2 = scmp.lt.s32.totalorder %s6054_s22, %s6054_s22 }
   0xb   :  { %p6061_p3 = por %p6060_p2, %p6059_p1 }
   0xd   :  { %p6062_p4 = pnand %p6061_p3, %p6055_p0 }
   0xf   :  { %6065 = shalt.err (!%p6062_p4)
}
  0x10   :  { %s6282_s23 = smov 128   ;;  %s6283_s24 = smov 8  }
  0x11   :  { %50 = dma.hbm_to_vmem [thread:$0]  %s7903_s1, 2048, %s45_s19, [#allocation6], %s6282_s23, %s6282_s23, %s6283_s24  }
  0x12   :  { %s6074_s27 = scalar_lea.vmem %s73_s21, 4096  ;;  %p6079_p6 = scmp.lt.s32.totalorder %s73_s21, %s73_s21 }
  0x13   :  { %p6075_p5 = scmp.ne.s32.totalorder %s73_s21, %s6074_s27  ;;  %p6080_p7 = scmp.lt.s32.totalorder %s6074_s27, %s6074_s27 }
  0x15   :  { %p6081_p8 = por %p6080_p7, %p6079_p6 }
  0x17   :  { %p6082_p9 = pnand %p6081_p8, %p6075_p5 }
  0x19   :  { %6085 = shalt.err (!%p6082_p9)
}
  0x1a   :  { %s6284_s28 = smov 256   ;;  %s6285_s29 = smov 16  }
  0x1b   :  { %78 = dma.hbm_to_vmem [thread:$0]  %s7907_s5, 4096, %s73_s21, [#allocation9], %s6284_s28, %s6284_s28, %s6285_s29  }
  0x1c   :  { %s6286_s17 = smov [#allocation11]   ;;  %s6287_s20 = smov [#allocation14]  }
  0x1d   :  { %s96_s18 = sshll.u32 %s6286_s17, 4  ;;  %s120_s22 = sshll.u32 %s6287_s20, 4  ;;  %s97_s18 = int_to_ptr.vmem [resolvable:$true] %s96_s18  ;;  %s121_s22 = int_to_ptr.vmem [resolvable:$true] %s120_s22 }
  0x1e   :  { %s6094_s1 = scalar_lea.vmem %s97_s18, 2048  ;;  %p6099_p11 = scmp.lt.s32.totalorder %s97_s18, %s97_s18 }
  0x1f   :  { %p6095_p10 = scmp.ne.s32.totalorder %s97_s18, %s6094_s1  ;;  %p6100_p12 = scmp.lt.s32.totalorder %s6094_s1, %s6094_s1 }
  0x21   :  { %p6101_p13 = por %p6100_p12, %p6099_p11 }
  0x23   :  { %p6102_p0 = pnand %p6101_p13, %p6095_p10 }
  0x25   :  { %6105 = shalt.err (!%p6102_p0)
}
  0x26   :  { %102 = dma.hbm_to_vmem [thread:$0]  %s7909_s7, 2048, %s97_s18, [#allocation12], %s6282_s23, %s6282_s23, %s6283_s24  }
  0x27   :  { %s6114_s5 = scalar_lea.vmem %s121_s22, 4096  ;;  %p6119_p2 = scmp.lt.s32.totalorder %s121_s22, %s121_s22 }
  0x28   :  { %p6115_p1 = scmp.ne.s32.totalorder %s121_s22, %s6114_s5  ;;  %p6120_p3 = scmp.lt.s32.totalorder %s6114_s5, %s6114_s5 }
  0x2a   :  { %p6121_p4 = por %p6120_p3, %p6119_p2 }
  0x2c   :  { %p6122_p5 = pnand %p6121_p4, %p6115_p1 }
  0x2e   :  { %6125 = shalt.err (!%p6122_p5)
}
  0x2f   :  { %126 = dma.hbm_to_vmem [thread:$0]  %s7911_s9, 4096, %s121_s22, [#allocation15], %s6284_s28, %s6284_s28, %s6285_s29  }
  0x30   :  { %s6288_s27 = smov [#allocation2]   ;;  %s6289_s16 = smov [#allocation7]  }
  0x31   :  { %s32_s30 = sshll.u32 %s6288_s27, 4  ;;  %s56_s17 = sshll.u32 %s6289_s16, 4  ;;  %s33_s30 = int_to_ptr.vmem [resolvable:$true] %s32_s30  ;;  %s57_s17 = int_to_ptr.vmem [resolvable:$true] %s56_s17 }
  0x32   :  { %s6134_s20 = scalar_lea.vmem %s33_s30, 2048  ;;  %p6139_p7 = scmp.lt.s32.totalorder %s33_s30, %s33_s30 }
  0x33   :  { %p6135_p6 = scmp.ne.s32.totalorder %s33_s30, %s6134_s20  ;;  %p6140_p8 = scmp.lt.s32.totalorder %s6134_s20, %s6134_s20 }
  0x35   :  { %p6141_p9 = por %p6140_p8, %p6139_p7 }
  0x37   :  { %p6142_p10 = pnand %p6141_p9, %p6135_p6 }
  0x39   :  { %6145 = shalt.err (!%p6142_p10)
}
  0x3a   :  { %38 = dma.hbm_to_vmem [thread:$0]  %s7902_s0, 2048, %s33_s30, [#allocation3], %s6282_s23, %s6282_s23, %s6283_s24  }
  0x3b   :  { %s6154_s9 = scalar_lea.vmem %s57_s17, 2048  ;;  %p6159_p12 = scmp.lt.s32.totalorder %s57_s17, %s57_s17 }
  0x3c   :  { %p6155_p11 = scmp.ne.s32.totalorder %s57_s17, %s6154_s9  ;;  %p6160_p13 = scmp.lt.s32.totalorder %s6154_s9, %s6154_s9 }
  0x3e   :  { %p6161_p0 = por %p6160_p13, %p6159_p12 }
  0x40   :  { %p6162_p1 = pnand %p6161_p0, %p6155_p11 }
  0x42   :  { %6165 = shalt.err (!%p6162_p1)
}
  0x43   :  { %62 = dma.hbm_to_vmem [thread:$0]  %s7904_s2, 2048, %s57_s17, [#allocation6], %s6282_s23, %s6282_s23, %s6283_s24  }
  0x44   :  { %s6290_s22 = smov [#allocation10]   ;;  %s6291_s19 = smov [#allocation13]  }
  0x45   :  { %s84_s1 = sshll.u32 %s6290_s22, 4  ;;  %s108_s25 = sshll.u32 %s6291_s19, 4  ;;  %s85_s1 = int_to_ptr.vmem [resolvable:$true] %s84_s1  ;;  %s109_s25 = int_to_ptr.vmem [resolvable:$true] %s108_s25 }
  0x46   :  { %s6174_s0 = scalar_lea.vmem %s85_s1, 2048  ;;  %p6179_p3 = scmp.lt.s32.totalorder %s85_s1, %s85_s1 }
  0x47   :  { %p6175_p2 = scmp.ne.s32.totalorder %s85_s1, %s6174_s0  ;;  %p6180_p4 = scmp.lt.s32.totalorder %s6174_s0, %s6174_s0 }
  0x49   :  { %p6181_p5 = por %p6180_p4, %p6179_p3 }
  0x4b   :  { %p6182_p6 = pnand %p6181_p5, %p6175_p2 }
  0x4d   :  { %6185 = shalt.err (!%p6182_p6)
}
  0x4e   :  { %90 = dma.hbm_to_vmem [thread:$0]  %s7908_s6, 2048, %s85_s1, [#allocation9], %s6282_s23, %s6282_s23, %s6283_s24  }
  0x4f   :  { %s6194_s2 = scalar_lea.vmem %s109_s25, 2048  ;;  %p6199_p8 = scmp.lt.s32.totalorder %s109_s25, %s109_s25 }
  0x50   :  { %p6195_p7 = scmp.ne.s32.totalorder %s109_s25, %s6194_s2  ;;  %p6200_p9 = scmp.lt.s32.totalorder %s6194_s2, %s6194_s2 }
  0x52   :  { %p6201_p10 = por %p6200_p9, %p6199_p8 }
  0x54   :  { %p6202_p11 = pnand %p6201_p10, %p6195_p7 }
  0x56   :  { %6205 = shalt.err (!%p6202_p11)
}
  0x57   :  { %114 = dma.hbm_to_vmem [thread:$0]  %s7910_s8, 2048, %s109_s25, [#allocation12], %s6282_s23, %s6282_s23, %s6283_s24  }
  0x58   :  { %s6292_s30 = smov [#allocation16]   ;;  %s6293_s17 = smov [#allocation17]  }
  0x59   :  { %s139_s16 = sshll.u32 %s6292_s30, 4  ;;  %s148_s20 = sshll.u32 %s6293_s17, 4  ;;  %s140_s16 = int_to_ptr.vmem [resolvable:$true] %s139_s16  ;;  %s149_s20 = int_to_ptr.vmem [resolvable:$true] %s148_s20 }
  0x5a   :  { %s6214_s6 = scalar_lea.vmem %s140_s16, 32  ;;  %p6219_p13 = scmp.lt.s32.totalorder %s140_s16, %s140_s16 }
  0x5b   :  { %p6215_p12 = scmp.ne.s32.totalorder %s140_s16, %s6214_s6  ;;  %p6220_p0 = scmp.lt.s32.totalorder %s6214_s6, %s6214_s6 }
  0x5d   :  { %p6221_p1 = por %p6220_p0, %p6219_p13 }
  0x5f   :  { %p6222_p2 = pnand %p6221_p1, %p6215_p12 }
  0x61   :  { %6225 = shalt.err (!%p6222_p2)
}
  0x62   :  { %142 = dma.hbm_to_vmem [thread:$0]  %s7915_s13, 32, %s140_s16, [#allocation15]  }
  0x63   :  { %s6234_s9 = scalar_lea.vmem %s149_s20, 1024  ;;  %p6239_p4 = scmp.lt.s32.totalorder %s149_s20, %s149_s20 }
  0x64   :  { %p6235_p3 = scmp.ne.s32.totalorder %s149_s20, %s6234_s9  ;;  %p6240_p5 = scmp.lt.s32.totalorder %s6234_s9, %s6234_s9 }
  0x66   :  { %p6241_p6 = por %p6240_p5, %p6239_p4 }
  0x68   :  { %p6242_p7 = pnand %p6241_p6, %p6235_p3 }
  0x6a   :  { %6245 = shalt.err (!%p6242_p7)
}
  0x6b   :  { %154 = dma.hbm_to_vmem [thread:$0]  %s7916_s14, 1024, %s149_s20, [#allocation18], %s6282_s23, %s6282_s23, %s6283_s24  }
  0x6c   :  { %6266 = dma.done.wait [#allocation3], 2048  }
  0x6d   :  { %6267 = vsyncadd [#allocation3], 4294965248 }
  0x6e   :  { %6268 = dma.done.wait [#allocation6], 4096  }
  0x6f   :  { %6269 = vsyncadd [#allocation6], 4294963200 }
  0x70   :  { %6270 = dma.done.wait [#allocation9], 6144  }
  0x71   :  { %6271 = vsyncadd [#allocation9], 4294961152 }
  0x72   :  { %6272 = dma.done.wait [#allocation12], 4096  }
  0x73   :  { %6273 = vsyncadd [#allocation12], 4294963200 }
  0x74   :  { %6274 = dma.done.wait [#allocation15], 4128  }
  0x75   :  { %6275 = vsyncadd [#allocation15], 4294963168 }
  0x76   :  { %6276 = dma.done.wait [#allocation18], 1024  }
  0x77   :  { %6277 = vsyncadd [#allocation18], 4294966272  ;;  %v6294_v0 = vmov 0.0   ;;  %v264_v1 = vld [vmem:[#allocation8 + $0xf8] sm:$0xff]  ;;  %v263_v2 = vld [vmem:[#allocation8 + $0xf0] sm:$0xff]  ;;  %vm833_vm0 = vcmask 1041409  }
  0x78   :  { %341 = vmatprep.mubr.f32.mxu0 %v6294_v0  ;;  %389 = vmatprep.mubr.f32.mxu1 %v6294_v0  ;;  %v262_v3 = vld [vmem:[#allocation8 + $0xe8] sm:$0xff]  ;;  %v261_v4 = vld [vmem:[#allocation8 + $0xe0] sm:$0xff]  ;;  %v260_v5 = vld [vmem:[#allocation8 + $0xd8] sm:$0xff]  ;;  %vm933_vm1 = vcmask 523264  }
  0x79   :  { %277 = vmatprep.subr.mxu0 %v264_v1  ;;  %5811 = vmatprep.subr.mxu1 %v264_v1  ;;  %v259_v6 = vld [vmem:[#allocation8 + $0xd0] sm:$0xff]  ;;  %v258_v7 = vld [vmem:[#allocation8 + $0xc8] sm:$0xff]  ;;  %v257_v8 = vld [vmem:[#allocation8 + $0xc0] sm:$0xff] }
  0x7a   :  { %278 = vmatpush1.msra.mxu0 %v263_v2  ;;  %5827 = vmatpush1.msra.mxu1 %v263_v2  ;;  %v256_v9 = vld [vmem:[#allocation8 + $0xb8] sm:$0xff]  ;;  %v255_v10 = vld [vmem:[#allocation8 + $0xb0] sm:$0xff]  ;;  %v254_v11 = vld [vmem:[#allocation8 + $0xa8] sm:$0xff] }
  0x7b   :  { %279 = vmatprep.subr.mxu0 %v262_v3  ;;  %5812 = vmatprep.subr.mxu1 %v262_v3  ;;  %v253_v12 = vld [vmem:[#allocation8 + $0xa0] sm:$0xff]  ;;  %v252_v13 = vld [vmem:[#allocation8 + $0x98] sm:$0xff]  ;;  %v251_v14 = vld [vmem:[#allocation8 + $0x90] sm:$0xff] }
  0x7c   :  { %280 = vmatpush1.msra.mxu0 %v261_v4  ;;  %5828 = vmatpush1.msra.mxu1 %v261_v4  ;;  %v250_v15 = vld [vmem:[#allocation8 + $0x88] sm:$0xff]  ;;  %v249_v16 = vld [vmem:[#allocation8 + $0x80] sm:$0xff]  ;;  %v248_v17 = vld [vmem:[#allocation8 + $0x78] sm:$0xff] }
  0x7d   :  { %281 = vmatprep.subr.mxu0 %v260_v5  ;;  %5813 = vmatprep.subr.mxu1 %v260_v5  ;;  %v247_v18 = vld [vmem:[#allocation8 + $0x70] sm:$0xff]  ;;  %v246_v19 = vld [vmem:[#allocation8 + $0x68] sm:$0xff]  ;;  %v245_v20 = vld [vmem:[#allocation8 + $0x60] sm:$0xff] }
  0x7e   :  { %282 = vmatpush1.msra.mxu0 %v259_v6  ;;  %5829 = vmatpush1.msra.mxu1 %v259_v6  ;;  %v244_v21 = vld [vmem:[#allocation8 + $0x58] sm:$0xff]  ;;  %v243_v22 = vld [vmem:[#allocation8 + $0x50] sm:$0xff]  ;;  %v242_v23 = vld [vmem:[#allocation8 + $0x48] sm:$0xff] }
  0x7f   :  { %283 = vmatprep.subr.mxu0 %v258_v7  ;;  %5814 = vmatprep.subr.mxu1 %v258_v7  ;;  %v241_v24 = vld [vmem:[#allocation8 + $0x40] sm:$0xff]  ;;  %v240_v25 = vld [vmem:[#allocation8 + $0x38] sm:$0xff]  ;;  %v239_v26 = vld [vmem:[#allocation8 + $0x30] sm:$0xff] }
  0x80   :  { %284 = vmatpush1.msra.mxu0 %v257_v8  ;;  %5830 = vmatpush1.msra.mxu1 %v257_v8  ;;  %v238_v27 = vld [vmem:[#allocation8 + $0x28] sm:$0xff]  ;;  %v237_v28 = vld [vmem:[#allocation8 + $0x20] sm:$0xff]  ;;  %v236_v29 = vld [vmem:[#allocation8 + $0x18] sm:$0xff] }
  0x81   :  { %285 = vmatprep.subr.mxu0 %v256_v9  ;;  %5815 = vmatprep.subr.mxu1 %v256_v9  ;;  %v235_v30 = vld [vmem:[#allocation8 + $0x10] sm:$0xff]  ;;  %v234_v31 = vld [vmem:[#allocation8 + $0x8] sm:$0xff]  ;;  %v233_v32 = vld [vmem:[#allocation8] sm:$0xff] }
  0x82   :  { %286 = vmatpush1.msra.mxu0 %v255_v10  ;;  %5831 = vmatpush1.msra.mxu1 %v255_v10  ;;  %v185_v33 = vld [vmem:[#allocation2] sm:$0xff]  ;;  %v818_v34 = vld [vmem:[#allocation14 + $0xf8] sm:$0xff]  ;;  %v817_v35 = vld [vmem:[#allocation14 + $0xf0] sm:$0xff] }
  0x83   :  { %287 = vmatprep.subr.mxu0 %v254_v11  ;;  %5816 = vmatprep.subr.mxu1 %v254_v11  ;;  %v770_v36 = vld [vmem:[%s7905_s3] sm:$0xff]  ;;  %v771_v37 = vld [vmem:[%s7905_s3 + $0x8] sm:$0xff]  ;;  %v453_v41 = vld [vmem:[#allocation10 + $0x78] sm:$0xff] }
  0x84   :  { %288 = vmatpush1.msra.mxu0 %v253_v12  ;;  %5832 = vmatpush1.msra.mxu1 %v253_v12  ;;  %v816_v38 = vld [vmem:[#allocation14 + $0xe8] sm:$0xff]  ;;  %v193_v39 = vld [vmem:[#allocation2 + $0x40] sm:$0xff]  ;;  %v814_v43 = vld [vmem:[#allocation14 + $0xd8] sm:$0xff]  ;;  %v772_v44 = vrot.slane %v770_v36, 4  ;;  %v778_v45 = vrot.slane %v771_v37, 4 }
  0x85   :  { %289 = vmatprep.subr.mxu0 %v252_v13  ;;  %5817 = vmatprep.subr.mxu1 %v252_v13  ;;  %v815_v40 = vld [vmem:[#allocation14 + $0xe0] sm:$0xff]  ;;  %v186_v42 = vld [vmem:[#allocation2 + $0x8] sm:$0xff]  ;;  %v813_v46 = vld [vmem:[#allocation14 + $0xd0] sm:$0xff] }
  0x86   :  { %290 = vmatpush1.msra.mxu0 %v251_v14  ;;  %5833 = vmatpush1.msra.mxu1 %v251_v14  ;;  %v812_v47 = vld [vmem:[#allocation14 + $0xc8] sm:$0xff]  ;;  %v811_v48 = vld [vmem:[#allocation14 + $0xc0] sm:$0xff]  ;;  %v452_v49 = vld [vmem:[#allocation10 + $0x70] sm:$0xff]  ;;  %v773_v52 = vadd.f32 %v772_v44, %v770_v36  ;;  %v779_v53 = vadd.f32 %v778_v45, %v771_v37 }
  0x87   :  { %291 = vmatprep.subr.mxu0 %v250_v15  ;;  %5818 = vmatprep.subr.mxu1 %v250_v15  ;;  %v187_v50 = vld [vmem:[#allocation2 + $0x10] sm:$0xff]  ;;  %v810_v51 = vld [vmem:[#allocation14 + $0xb8] sm:$0xff]  ;;  %v808_v55 = vld [vmem:[#allocation14 + $0xa8] sm:$0xff] }
  0x88   :  { %292 = vmatpush1.msra.mxu0 %v249_v16  ;;  %5834 = vmatpush1.msra.mxu1 %v249_v16  ;;  %v809_v54 = vld [vmem:[#allocation14 + $0xb0] sm:$0xff]  ;;  %v807_v56 = vld [vmem:[#allocation14 + $0xa0] sm:$0xff]  ;;  %v188_v57 = vld [vmem:[#allocation2 + $0x18] sm:$0xff]  ;;  %v774_v59 = vrot.slane %v773_v52, 2  ;;  %v780_v60 = vrot.slane %v779_v53, 2 }
  0x89   :  { %293 = vmatprep.subr.mxu0 %v248_v17  ;;  %5819 = vmatprep.subr.mxu1 %v248_v17  ;;  %v806_v58 = vld [vmem:[#allocation14 + $0x98] sm:$0xff]  ;;  %v805_v61 = vld [vmem:[#allocation14 + $0x90] sm:$0xff]  ;;  %v804_v62 = vld [vmem:[#allocation14 + $0x88] sm:$0xff] }
  0x8a   :  { %294 = vmatpush1.msra.mxu0 %v247_v18  ;;  %5835 = vmatpush1.msra.mxu1 %v247_v18  ;;  %v194_v63 = vld [vmem:[#allocation2 + $0x48] sm:$0xff]  ;;  %v803_v1 = vld [vmem:[#allocation14 + $0x80] sm:$0xff]  ;;  %v802_v4 = vld [vmem:[#allocation14 + $0x78] sm:$0xff]  ;;  %v775_v5 = vadd.f32 %v774_v59, %v773_v52  ;;  %v781_v6 = vadd.f32 %v780_v60, %v779_v53 }
  0x8b   :  { %295 = vmatprep.subr.mxu0 %v246_v19  ;;  %5820 = vmatprep.subr.mxu1 %v246_v19  ;;  %v451_v2 = vld [vmem:[#allocation10 + $0x68] sm:$0xff]  ;;  %v189_v3 = vld [vmem:[#allocation2 + $0x20] sm:$0xff]  ;;  %v801_v7 = vld [vmem:[#allocation14 + $0x70] sm:$0xff] }
  0x8c   :  { %296 = vmatpush1.msra.mxu0 %v245_v20  ;;  %5836 = vmatpush1.msra.mxu1 %v245_v20  ;;  %v800_v8 = vld [vmem:[#allocation14 + $0x68] sm:$0xff]  ;;  %v799_v9 = vld [vmem:[#allocation14 + $0x60] sm:$0xff]  ;;  %v798_v12 = vld [vmem:[#allocation14 + $0x58] sm:$0xff]  ;;  %v776_v13 = vrot.slane %v775_v5, 1  ;;  %v782_v14 = vrot.slane %v781_v6, 1 }
  0x8d   :  { %297 = vmatprep.subr.mxu0 %v244_v21  ;;  %5821 = vmatprep.subr.mxu1 %v244_v21  ;;  %v450_v10 = vld [vmem:[#allocation10 + $0x60] sm:$0xff]  ;;  %v190_v11 = vld [vmem:[#allocation2 + $0x28] sm:$0xff]  ;;  %v797_v15 = vld [vmem:[#allocation14 + $0x50] sm:$0xff] }
  0x8e   :  { %298 = vmatpush1.msra.mxu0 %v243_v22  ;;  %5837 = vmatpush1.msra.mxu1 %v243_v22  ;;  %v796_v16 = vld [vmem:[#allocation14 + $0x48] sm:$0xff]  ;;  %v795_v17 = vld [vmem:[#allocation14 + $0x40] sm:$0xff]  ;;  %v191_v18 = vld [vmem:[#allocation2 + $0x30] sm:$0xff]  ;;  %v777_v20 = vadd.f32 %v776_v13, %v775_v5  ;;  %v783_v21 = vadd.f32 %v782_v14, %v781_v6 }
  0x8f   :  { %299 = vmatprep.subr.mxu0 %v242_v23  ;;  %5822 = vmatprep.subr.mxu1 %v242_v23  ;;  %v794_v19 = vld [vmem:[#allocation14 + $0x38] sm:$0xff]  ;;  %v793_v22 = vld [vmem:[#allocation14 + $0x30] sm:$0xff]  ;;  %v792_v23 = vld [vmem:[#allocation14 + $0x28] sm:$0xff] }
  0x90   :  { %300 = vmatpush1.msra.mxu0 %v241_v24  ;;  %5838 = vmatpush1.msra.mxu1 %v241_v24  ;;  %v195_v24 = vld [vmem:[#allocation2 + $0x50] sm:$0xff]  ;;  %v196_v36 = vld [vmem:[#allocation2 + $0x58] sm:$0xff]  ;;  %v447_v37 = vld [vmem:[#allocation10 + $0x48] sm:$0xff] }
  0x91   :  { %301 = vmatprep.subr.mxu0 %v240_v25  ;;  %5823 = vmatprep.subr.mxu1 %v240_v25  ;;  %v791_v25 = vld [vmem:[#allocation14 + $0x20] sm:$0xff]  ;;  %v199_v45 = vld [vmem:[#allocation2 + $0x70] sm:$0xff]  ;;  %v202_v52 = vld [vmem:[#allocation5 + $0x8] sm:$0xff] }
  0x92   :  { %302 = vmatpush1.msra.mxu0 %v239_v26  ;;  %5839 = vmatpush1.msra.mxu1 %v239_v26  ;;  %v449_v26 = vld [vmem:[#allocation10 + $0x58] sm:$0xff]  ;;  %v442_v44 = vld [vmem:[#allocation10 + $0x20] sm:$0xff]  ;;  %v203_v53 = vld [vmem:[#allocation5 + $0x10] sm:$0xff] }
  0x93   :  { %303 = vmatprep.subr.mxu0 %v238_v27  ;;  %5824 = vmatprep.subr.mxu1 %v238_v27  ;;  %v192_v27 = vld [vmem:[#allocation2 + $0x38] sm:$0xff]  ;;  %v618_v59 = vld [vmem:[#allocation11 + $0x70] sm:$0xff]  ;;  %v617_v60 = vld [vmem:[#allocation11 + $0x68] sm:$0xff] }
  0x94   :  { %304 = vmatpush1.msra.mxu0 %v237_v28  ;;  %5840 = vmatpush1.msra.mxu1 %v237_v28  ;;  %v790_v28 = vld [vmem:[#allocation14 + $0x18] sm:$0xff]  ;;  %v610_v6 = vld [vmem:[#allocation11 + $0x30] sm:$0xff] }
  0x95   :  { %305 = vmatprep.subr.mxu0 %v236_v29  ;;  %5825 = vmatprep.subr.mxu1 %v236_v29  ;;  %v785_v29 = vmul.f32 0.125, %v777_v20  ;;  %v611_v5 = vld [vmem:[#allocation11 + $0x38] sm:$0xff]  ;;  %v606_v14 = vld [vmem:[#allocation11 + $0x10] sm:$0xff]  ;;  %v218_v20 = vld [vmem:[#allocation7 + $0x8] sm:$0xff] }
  0x96   :  { %306 = vmatpush1.msra.mxu0 %v235_v30  ;;  %5841 = vmatpush1.msra.mxu1 %v235_v30  ;;  %v786_v30 = vmul.f32 0.125, %v783_v21  ;;  %v607_v13 = vld [vmem:[#allocation11 + $0x18] sm:$0xff]  ;;  %v219_v21 = vld [vmem:[#allocation7 + $0x10] sm:$0xff] }
  0x97   :  { %307 = vmatprep.subr.mxu0 %v234_v31  ;;  %5826 = vmatprep.subr.mxu1 %v234_v31  ;;  %v789_v31 = vld [vmem:[#allocation14 + $0x10] sm:$0xff] }
  0x98   :  { %308 = vmatpush1.msra.mxu0 %v233_v32  ;;  %5842 = vmatpush1.msra.mxu1 %v233_v32  ;;  %v788_v32 = vld [vmem:[#allocation14 + $0x8] sm:$0xff] }
  0x99   :  { %342 = vmatmul.mubr.f32.vlgmr.msra.gmra.mxu0 %v185_v33  ;;  %836 = vmatprep.subr.mxu0 %v818_v34  ;;  %v787_v33 = vld [vmem:[#allocation14] sm:$0xff]  ;;  %v448_v34 = vld [vmem:[#allocation10 + $0x50] sm:$0xff] }
  0x9a   :  { %837 = vmatpush1.msra.mxu0 %v817_v35  ;;  %347 = vmatprep.mubr.f32.mxu0 %v6294_v0  ;;  %v834_v35 = vsel %vm833_vm0, %v786_v30, %v785_v29  ;;  %v265_v30 = vld [vmem:[%s7912_s10] sm:$0x3]  ;;  %s6295_s10 = smov 64  }
  0x9b   :  { %838 = vmatprep.subr.mxu0 %v816_v38  ;;  %390 = vmatmul.mubr.f32.vlgmr.msra.gmra.mxu1 %v193_v39  ;;  %v446_v38 = vld [vmem:[#allocation10 + $0x40] sm:$0xff] }
  0x9c   :  { %839 = vmatpush1.msra.mxu0 %v815_v40  ;;  %5083 = vmatprep.subr.mxu1 %v453_v41  ;;  %v197_v39 = vld [vmem:[#allocation2 + $0x60] sm:$0xff]  ;;  %v445_v40 = vld [vmem:[#allocation10 + $0x38] sm:$0xff] }
  0x9d   :  { %348 = vmatmul.mubr.f32.gmra.mxu0 %v186_v42  ;;  %840 = vmatprep.subr.mxu0 %v814_v43  ;;  %v198_v42 = vld [vmem:[#allocation2 + $0x68] sm:$0xff] }
  0x9e   :  { %841 = vmatpush1.msra.mxu0 %v813_v46  ;;  %353 = vmatprep.mubr.f32.mxu0 %v6294_v0  ;;  %v443_v43 = vld [vmem:[#allocation10 + $0x28] sm:$0xff]  ;;  %v441_v46 = vld [vmem:[#allocation10 + $0x18] sm:$0xff] }
  0x9f   :  { %842 = vmatprep.subr.mxu0 %v812_v47  ;;  %5084 = vmatpush3.msra.mxu1 %v453_v41  ;;  %v444_v41 = vld [vmem:[#allocation10 + $0x30] sm:$0xff] }
  0xa0   :  { %843 = vmatpush1.msra.mxu0 %v811_v48  ;;  %5085 = vmatprep.subr.mxu1 %v452_v49  ;;  %v440_v47 = vld [vmem:[#allocation10 + $0x10] sm:$0xff]  ;;  %v200_v48 = vld [vmem:[#allocation2 + $0x78] sm:$0xff] }
  0xa1   :  { %354 = vmatmul.mubr.f32.gmra.mxu0 %v187_v50  ;;  %844 = vmatprep.subr.mxu0 %v810_v51  ;;  %v201_v50 = vld [vmem:[#allocation5] sm:$0xff] }
  0xa2   :  { %845 = vmatpush1.msra.mxu0 %v809_v54  ;;  %359 = vmatprep.mubr.f32.mxu0 %v6294_v0  ;;  %v438_v51 = vld [vmem:[#allocation10] sm:$0xff]  ;;  %v204_v54 = vld [vmem:[#allocation5 + $0x18] sm:$0xff] }
  0xa3   :  { %846 = vmatprep.subr.mxu0 %v808_v55  ;;  %395 = vmatprep.mubr.f32.mxu1 %v6294_v0  ;;  %v205_v55 = vld [vmem:[#allocation5 + $0x20] sm:$0xff] }
  0xa4   :  { %847 = vmatpush1.msra.mxu0 %v807_v56  ;;  %5086 = vmatpush3.msra.mxu1 %v452_v49  ;;  %v439_v49 = vld [vmem:[#allocation10 + $0x8] sm:$0xff]  ;;  %v207_v56 = vld [vmem:[#allocation5 + $0x30] sm:$0xff] }
  0xa5   :  { %360 = vmatmul.mubr.f32.gmra.mxu0 %v188_v57  ;;  %848 = vmatprep.subr.mxu0 %v806_v58  ;;  %v208_v57 = vld [vmem:[#allocation5 + $0x38] sm:$0xff] }
  0xa6   :  { %849 = vmatpush1.msra.mxu0 %v805_v61  ;;  %365 = vmatprep.mubr.f32.mxu0 %v6294_v0  ;;  %v619_v58 = vld [vmem:[#allocation11 + $0x78] sm:$0xff]  ;;  %v616_v61 = vld [vmem:[#allocation11 + $0x60] sm:$0xff] }
  0xa7   :  { %850 = vmatprep.subr.mxu0 %v804_v62  ;;  %396 = vmatmul.mubr.f32.gmra.mxu1 %v194_v63  ;;  %v615_v62 = vld [vmem:[#allocation11 + $0x58] sm:$0xff]  ;;  %v614_v63 = vld [vmem:[#allocation11 + $0x50] sm:$0xff] }
  0xa8   :  { %851 = vmatpush1.msra.mxu0 %v803_v1  ;;  %5087 = vmatprep.subr.mxu1 %v451_v2  ;;  %v613_v1 = vld [vmem:[#allocation11 + $0x48] sm:$0xff] }
  0xa9   :  { %366 = vmatmul.mubr.f32.gmra.mxu0 %v189_v3  ;;  %852 = vmatprep.subr.mxu0 %v802_v4  ;;  %v209_v3 = vld [vmem:[#allocation5 + $0x40] sm:$0xff]  ;;  %v210_v4 = vld [vmem:[#allocation5 + $0x48] sm:$0xff] }
  0xaa   :  { %853 = vmatpush1.msra.mxu0 %v801_v7  ;;  %371 = vmatprep.mubr.f32.mxu0 %v6294_v0  ;;  %v211_v7 = vld [vmem:[#allocation5 + $0x50] sm:$0xff] }
  0xab   :  { %854 = vmatprep.subr.mxu0 %v800_v8  ;;  %5088 = vmatpush3.msra.mxu1 %v451_v2  ;;  %v612_v2 = vld [vmem:[#allocation11 + $0x40] sm:$0xff]  ;;  %v212_v8 = vld [vmem:[#allocation5 + $0x58] sm:$0xff] }
  0xac   :  { %855 = vmatpush1.msra.mxu0 %v799_v9  ;;  %5089 = vmatprep.subr.mxu1 %v450_v10  ;;  %v609_v9 = vld [vmem:[#allocation11 + $0x28] sm:$0xff] }
  0xad   :  { %372 = vmatmul.mubr.f32.gmra.mxu0 %v190_v11  ;;  %856 = vmatprep.subr.mxu0 %v798_v12  ;;  %v213_v11 = vld [vmem:[#allocation5 + $0x60] sm:$0xff]  ;;  %v214_v12 = vld [vmem:[#allocation5 + $0x68] sm:$0xff] }
  0xae   :  { %857 = vmatpush1.msra.mxu0 %v797_v15  ;;  %377 = vmatprep.mubr.f32.mxu0 %v6294_v0  ;;  %v215_v15 = vld [vmem:[#allocation5 + $0x70] sm:$0xff] }
  0xaf   :  { %858 = vmatprep.subr.mxu0 %v796_v16  ;;  %401 = vmatprep.mubr.f32.mxu1 %v6294_v0  ;;  %v216_v16 = vld [vmem:[#allocation5 + $0x78] sm:$0xff] }
  0xb0   :  { %859 = vmatpush1.msra.mxu0 %v795_v17  ;;  %5090 = vmatpush3.msra.mxu1 %v450_v10  ;;  %v608_v10 = vld [vmem:[#allocation11 + $0x20] sm:$0xff]  ;;  %v605_v17 = vld [vmem:[#allocation11 + $0x8] sm:$0xff] }
  0xb1   :  { %378 = vmatmul.mubr.f32.gmra.mxu0 %v191_v18  ;;  %860 = vmatprep.subr.mxu0 %v794_v19  ;;  %v604_v18 = vld [vmem:[#allocation11] sm:$0xff] }
  0xb2   :  { %861 = vmatpush1.msra.mxu0 %v793_v22  ;;  %383 = vmatprep.mubr.f32.mxu0 %v6294_v0  ;;  %v217_v19 = vld [vmem:[#allocation7] sm:$0xff]  ;;  %v220_v22 = vld [vmem:[#allocation7 + $0x18] sm:$0xff] }
  0xb3   :  { %862 = vmatprep.subr.mxu0 %v792_v23  ;;  %402 = vmatmul.mubr.f32.gmra.mxu1 %v195_v24  ;;  %v221_v23 = vld [vmem:[#allocation7 + $0x20] sm:$0xff]  ;;  %v222_v24 = vld [vmem:[#allocation7 + $0x28] sm:$0xff] }
  0xb4   :  { %863 = vmatpush1.msra.mxu0 %v791_v25  ;;  %5091 = vmatprep.subr.mxu1 %v449_v26  ;;  %v223_v25 = vld [vmem:[#allocation7 + $0x30] sm:$0xff] }
  0xb5   :  { %384 = vmatmul.mubr.f32.gmra.mxu0 %v192_v27  ;;  %864 = vmatprep.subr.mxu0 %v790_v28  ;;  %v267_v27 = vlaneseq }
  0xb6   :  { %865 = vmatpush1.msra.mxu0 %v789_v31  ;;  %900 = vmatprep.mubr.f32.mxu0 %v6294_v0 }
  0xb7   :  { %866 = vmatprep.subr.mxu0 %v788_v32  ;;  %5092 = vmatpush3.msra.mxu1 %v449_v26  ;;  %v224_v26 = vld [vmem:[#allocation7 + $0x38] sm:$0xff]  ;;  %v268_v28 = vshrl.u32 %v267_v27, 7  ;;  %v6560_v27 = vld [vmem:[#allocation17 + $0x8] sm:$0xff] }
  0xb8   :  { %867 = vmatpush1.msra.mxu0 %v787_v33  ;;  %5093 = vmatprep.subr.mxu1 %v448_v34 }
  0xb9   :  { %901 = vmatmul.mubr.f32.vlgmr.msra.gmra.mxu0 %v834_v35  ;;  %407 = vmatprep.mubr.f32.mxu1 %v6294_v0  ;;  %v6451_v29 = vsub.s32 0, %v268_v28  ;;  %v6456_v31 = vsub.s32 1, %v268_v28 }
  0xba   :  { %5094 = vmatpush3.msra.mxu1 %v448_v34 }
  0xbb   :  { %408 = vmatmul.mubr.f32.gmra.mxu1 %v196_v36  ;;  %5095 = vmatprep.subr.mxu1 %v447_v37  ;;  %v6459_v32 = vrot.slane %v265_v30, %v6451_v29  ;;  %v6462_v33 = vrot.slane %v265_v30, %v6456_v31 }
  0xbc   :  { %5096 = vmatpush3.msra.mxu1 %v447_v37  ;;  %413 = vmatprep.mubr.f32.mxu1 %v6294_v0 }
  0xbd   :  { %5097 = vmatprep.subr.mxu1 %v446_v38  ;;  %7927 = vst [vmem:[#allocation27_spill] sm:$0xff] %v6462_v33 }
  0xbe   :  { %5098 = vmatpush3.msra.mxu1 %v446_v38 }
  0xbf   :  { %414 = vmatmul.mubr.f32.gmra.mxu1 %v197_v39  ;;  %5099 = vmatprep.subr.mxu1 %v445_v40 }
  0xc0   :  { %5100 = vmatpush3.msra.mxu1 %v445_v40  ;;  %419 = vmatprep.mubr.f32.mxu1 %v6294_v0 }
  0xc1   :  { %5101 = vmatprep.subr.mxu1 %v444_v41 }
  0xc2   :  { %5102 = vmatpush3.msra.mxu1 %v444_v41 }
  0xc3   :  { %420 = vmatmul.mubr.f32.gmra.mxu1 %v198_v42  ;;  %5103 = vmatprep.subr.mxu1 %v443_v43 }
  0xc4   :  { %5104 = vmatpush3.msra.mxu1 %v443_v43  ;;  %425 = vmatprep.mubr.f32.mxu1 %v6294_v0 }
  0xc5   :  { %5105 = vmatprep.subr.mxu1 %v442_v44 }
  0xc6   :  { %5106 = vmatpush3.msra.mxu1 %v442_v44 }
  0xc7   :  { %426 = vmatmul.mubr.f32.gmra.mxu1 %v199_v45  ;;  %5107 = vmatprep.subr.mxu1 %v441_v46 }
  0xc8   :  { %5108 = vmatpush3.msra.mxu1 %v441_v46  ;;  %431 = vmatprep.mubr.f32.mxu1 %v6294_v0  ;;  %v206_v0 = vld [vmem:[#allocation5 + $0x28] sm:$0xff] }
  0xc9   :  { %5109 = vmatprep.subr.mxu1 %v440_v47 }
  0xca   :  { %5110 = vmatpush3.msra.mxu1 %v440_v47 }
  0xcb   :  { %432 = vmatmul.mubr.f32.gmra.mxu1 %v200_v48  ;;  %5111 = vmatprep.subr.mxu1 %v439_v49 }
  0xcc   :  { %5112 = vmatpush3.msra.mxu1 %v439_v49  ;;  %5115 = vmatprep.mubr.f32.mxu1 %v201_v50 }
  0xcd   :  { %5113 = vmatprep.subr.mxu1 %v438_v51 }
  0xce   :  { %5114 = vmatpush3.msra.mxu1 %v438_v51  ;;  %v6494_v51 = vld [vmem:[#allocation17 + $0x38] sm:$0xff] }
  0xcf   :  { %5116 = vmatmul.mubr.f32.vlgmr.msra.gmra.mxu1 %v202_v52  ;;  %5139 = vmatprep.subr.mxu1 %v619_v58  ;;  %v6496_v52 = vld [vmem:[#allocation17 + $0x30] sm:$0xff] }
  0xd0   :  { %5118 = vmatprep.mubr.f32.mxu1 %v203_v53  ;;  %5140 = vmatpush3.msra.mxu1 %v619_v58  ;;  %v227_v58 = vld [vmem:[#allocation7 + $0x50] sm:$0xff] }
  0xd1   :  { %5141 = vmatprep.subr.mxu1 %v618_v59 }
  0xd2   :  { %5142 = vmatpush3.msra.mxu1 %v618_v59 }
  0xd3   :  { %5119 = vmatmul.mubr.f32.gmra.mxu1 %v204_v54  ;;  %5143 = vmatprep.subr.mxu1 %v617_v60 }
  0xd4   :  { %5121 = vmatprep.mubr.f32.mxu1 %v205_v55  ;;  %5144 = vmatpush3.msra.mxu1 %v617_v60  ;;  %v225_v55 = vld [vmem:[#allocation7 + $0x40] sm:$0xff] }
  0xd5   :  { %5145 = vmatprep.subr.mxu1 %v616_v61 }
  0xd6   :  { %5146 = vmatpush3.msra.mxu1 %v616_v61  ;;  %v6510_v61 = vld [vmem:[#allocation17 + $0x28] sm:$0xff] }
  0xd7   :  { %5122 = vmatmul.mubr.f32.gmra.mxu1 %v206_v0  ;;  %5147 = vmatprep.subr.mxu1 %v615_v62 }
  0xd8   :  { %5124 = vmatprep.mubr.f32.mxu1 %v207_v56  ;;  %5148 = vmatpush3.msra.mxu1 %v615_v62  ;;  %v228_v62 = vld [vmem:[#allocation7 + $0x58] sm:$0xff] }
  0xd9   :  { %5149 = vmatprep.subr.mxu1 %v614_v63 }
  0xda   :  { %5150 = vmatpush3.msra.mxu1 %v614_v63 }
  0xdb   :  { %5125 = vmatmul.mubr.f32.gmra.mxu1 %v208_v57  ;;  %5151 = vmatprep.subr.mxu1 %v613_v1  ;;  %v226_v57 = vld [vmem:[#allocation7 + $0x48] sm:$0xff] }
  0xdc   :  { %5152 = vmatpush3.msra.mxu1 %v613_v1  ;;  %5127 = vmatprep.mubr.f32.mxu1 %v209_v3  ;;  %v229_v1 = vld [vmem:[#allocation7 + $0x60] sm:$0xff] }
  0xdd   :  { %5153 = vmatprep.subr.mxu1 %v612_v2 }
  0xde   :  { %5154 = vmatpush3.msra.mxu1 %v612_v2 }
  0xdf   :  { %5128 = vmatmul.mubr.f32.gmra.mxu1 %v210_v4  ;;  %5155 = vmatprep.subr.mxu1 %v611_v5  ;;  %v6521_v4 = vld [vmem:[#allocation17 + $0x20] sm:$0xff] }
  0xe0   :  { %5156 = vmatpush3.msra.mxu1 %v611_v5  ;;  %5130 = vmatprep.mubr.f32.mxu1 %v211_v7  ;;  %v230_v5 = vld [vmem:[#allocation7 + $0x68] sm:$0xff] }
  0xe1   :  { %5157 = vmatprep.subr.mxu1 %v610_v6 }
  0xe2   :  { %5158 = vmatpush3.msra.mxu1 %v610_v6 }
  0xe3   :  { %5131 = vmatmul.mubr.f32.gmra.mxu1 %v212_v8  ;;  %5159 = vmatprep.subr.mxu1 %v609_v9  ;;  %v231_v8 = vld [vmem:[#allocation7 + $0x70] sm:$0xff] }
  0xe4   :  { %5160 = vmatpush3.msra.mxu1 %v609_v9  ;;  %5133 = vmatprep.mubr.f32.mxu1 %v213_v11 }
  0xe5   :  { %5161 = vmatprep.subr.mxu1 %v608_v10 }
  0xe6   :  { %5162 = vmatpush3.msra.mxu1 %v608_v10 }
  0xe7   :  { %5134 = vmatmul.mubr.f32.gmra.mxu1 %v214_v12  ;;  %5163 = vmatprep.subr.mxu1 %v607_v13  ;;  %v6533_v12 = vld [vmem:[#allocation17 + $0x18] sm:$0xff] }
  0xe8   :  { %5164 = vmatpush3.msra.mxu1 %v607_v13  ;;  %5136 = vmatprep.mubr.f32.mxu1 %v215_v15 }
  0xe9   :  { %5165 = vmatprep.subr.mxu1 %v606_v14 }
  0xea   :  { %5166 = vmatpush3.msra.mxu1 %v606_v14  ;;  %v819_v14 = vld [vmem:[#allocation16] sm:$0x3] }
  0xeb   :  { %5137 = vmatmul.mubr.f32.gmra.mxu1 %v216_v16  ;;  %5167 = vmatprep.subr.mxu1 %v605_v17 }
  0xec   :  { %5168 = vmatpush3.msra.mxu1 %v605_v17  ;;  %5171 = vmatprep.mubr.f32.mxu1 %v217_v19  ;;  %v824_v19 = vrot.slane %v819_v14, %v6451_v29 }
  0xed   :  { %5169 = vmatprep.subr.mxu1 %v604_v18 }
  0xee   :  { %5170 = vmatpush3.msra.mxu1 %v604_v18 }
  0xef   :  { %5172 = vmatmul.mubr.f32.vlgmr.msra.gmra.mxu1 %v218_v20  ;;  %5195 = vmatprep.subr.mxu1 %v6494_v51  ;;  %v6548_v20 = vld [vmem:[#allocation17 + $0x10] sm:$0xff] }
  0xf0   :  { %5174 = vmatprep.mubr.f32.mxu1 %v219_v21  ;;  %5196 = vmatpush3.xpose.msra.mxu1 %v6494_v51 }
  0xf1   :  { %5197 = vmatprep.subr.mxu1 %v6496_v52 }
  0xf3   :  { %5175 = vmatmul.mubr.f32.gmra.mxu1 %v220_v22 }
  0xf4   :  { %5177 = vmatprep.mubr.f32.mxu1 %v221_v23  ;;  %5198 = vmatpush3.xpose.msra.mxu1 %v6496_v52 }
  0xf5   :  { %5199 = vmatprep.subr.mxu1 %v6510_v61 }
  0xf7   :  { %5178 = vmatmul.mubr.f32.gmra.mxu1 %v222_v24  ;;  %v828_v24 = vrot.slane %v819_v14, %v6456_v31  ;;  %v232_v14 = vld [vmem:[#allocation7 + $0x78] sm:$0xff] }
  0xf8   :  { %5180 = vmatprep.mubr.f32.mxu1 %v223_v25  ;;  %5200 = vmatpush3.xpose.msra.mxu1 %v6510_v61 }
  0xf9   :  { %5201 = vmatprep.subr.mxu1 %v6521_v4 }
  0xfb   :  { %5181 = vmatmul.mubr.f32.gmra.mxu1 %v224_v26 }
  0xfc   :  { %5183 = vmatprep.mubr.f32.mxu1 %v225_v55  ;;  %5202 = vmatpush3.xpose.msra.mxu1 %v6521_v4 }
  0xfd   :  { %5203 = vmatprep.subr.mxu1 %v6533_v12 }
  0xff   :  { %5184 = vmatmul.mubr.f32.gmra.mxu1 %v226_v57 }
 0x100   :  { %5186 = vmatprep.mubr.f32.mxu1 %v227_v58  ;;  %5204 = vmatpush3.xpose.msra.mxu1 %v6533_v12 }
 0x101   :  { %5205 = vmatprep.subr.mxu1 %v6548_v20 }
 0x103   :  { %5187 = vmatmul.mubr.f32.gmra.mxu1 %v228_v62 }
 0x104   :  { %5189 = vmatprep.mubr.f32.mxu1 %v229_v1  ;;  %5206 = vmatpush3.xpose.msra.mxu1 %v6548_v20 }
 0x105   :  { %5207 = vmatprep.subr.mxu1 %v6560_v27 }
 0x107   :  { %5190 = vmatmul.mubr.f32.gmra.mxu1 %v230_v5 }
 0x108   :  { %5192 = vmatprep.mubr.f32.mxu1 %v231_v8  ;;  %5208 = vmatpush3.xpose.msra.mxu1 %v6560_v27 }
 0x10b   :  { %5193 = vmatmul.mubr.f32.gmra.mxu1 %v232_v14 }
 0x159   :  { %v343_v34 = vpop.f32.mrf.mxu0 }
 0x15a   :  { %v6465_v35 = vadd.f32 %v343_v34, %v6459_v32 }
 0x15b   :  { %v345_v36 = vpop.f32.mrf.mxu0  ;;  %v391_v37 = vpop.f32.mrf.mxu1 }
 0x15c   :  { %v6468_v38 = vadd.f32 %v345_v36, %v6462_v33  ;;  %v6471_v39 = vadd.f32 %v391_v37, %v6459_v32 }
 0x15d   :  { %v349_v40 = vpop.f32.mrf.mxu0  ;;  %v6484_v47 = vpop.f32.mrf.mxu1 }
 0x15e   :  { %v6474_v41 = vadd.f32 %v349_v40, %v6459_v32  ;;  %7928 = vst [vmem:[#allocation28_spill] sm:$0xff] %v6484_v47 }
 0x15f   :  { %v351_v42 = vpop.f32.mrf.mxu0 }
 0x160   :  { %v6477_v43 = vadd.f32 %v351_v42, %v6462_v33  ;;  %1070 = vrot.lane.b32.xlu1 %v6474_v41, %s6295_s10  ;;  %v6569_v42 = vld [vmem:[#allocation17] sm:$0xff] }
 0x161   :  { %v355_v44 = vpop.f32.mrf.mxu0  ;;  %5209 = vmatprep.subr.mxu1 %v6569_v42 }
 0x162   :  { %v6482_v45 = vadd.f32 %v355_v44, %v6459_v32  ;;  %5210 = vmatpush3.xpose.msra.mxu1 %v6569_v42 }
 0x163   :  { %v357_v46 = vpop.f32.mrf.mxu0 }
 0x164   :  { %v6487_v48 = vadd.f32 %v357_v46, %v6462_v33  ;;  %1072 = vrot.lane.b32.xlu1 %v6482_v45, %s6295_s10 }
 0x165   :  { %v361_v49 = vpop.f32.mrf.mxu0 }
 0x166   :  { %v6492_v50 = vadd.f32 %v361_v49, %v6459_v32 }
 0x167   :  { %v363_v53 = vpop.f32.mrf.mxu0  ;;  %v397_v54 = vpop.f32.mrf.mxu1 }
 0x168   :  { %v6500_v0 = vadd.f32 %v363_v53, %v6462_v33  ;;  %v6503_v56 = vadd.f32 %v397_v54, %v6459_v32 }
 0x169   :  { %v367_v59 = vpop.f32.mrf.mxu0  ;;  %v6523_v7 = vpop.f32.mrf.mxu1 }
 0x16a   :  { %v6508_v60 = vadd.f32 %v367_v59, %v6459_v32  ;;  %7929 = vst [vmem:[#allocation29_spill] sm:$0xff] %v6523_v7 }
 0x16b   :  { %v369_v63 = vpop.f32.mrf.mxu0 }
 0x16c   :  { %v6513_v2 = vadd.f32 %v369_v63, %v6462_v33  ;;  %1076 = vrot.lane.b32.xlu1 %v6508_v60, %s6295_s10 }
 0x16d   :  { %v6518_v3 = vpop.f32.mrf.mxu0 }
 0x16f   :  { %v375_v6 = vpop.f32.mrf.mxu0 }
 0x170   :  { %v6526_v9 = vadd.f32 %v375_v6, %v6462_v33 }
 0x171   :  { %v379_v10 = vpop.f32.mrf.mxu0 }
 0x172   :  { %v6531_v11 = vadd.f32 %v379_v10, %v6459_v32 }
 0x173   :  { %v381_v13 = vpop.f32.mrf.mxu0  ;;  %v403_v15 = vpop.f32.mrf.mxu1 }
 0x174   :  { %v6536_v16 = vadd.f32 %v381_v13, %v6462_v33  ;;  %1080 = vrot.lane.b32.xlu1 %v6531_v11, %s6295_s10  ;;  %v6541_v17 = vadd.f32 %v403_v15, %v6459_v32 }
 0x175   :  { %v6544_v18 = vpop.f32.mrf.mxu0  ;;  %v6550_v22 = vpop.f32.mrf.mxu1 }
 0x176   :  { %7930 = vst [vmem:[#allocation30_spill] sm:$0xff] %v6550_v22 }
 0x177   :  { %v387_v21 = vpop.f32.mrf.mxu0 }
 0x178   :  { %v6553_v23 = vadd.f32 %v387_v21, %v6462_v33 }
 0x179   :  { %v902_v25 = vpop.f32.mrf.mxu0 }
 0x17a   :  { %v6558_v26 = vadd.f32 %v902_v25, %v824_v19 }
 0x17b   :  { %v904_v28 = vpop.f32.mrf.mxu0  ;;  %v409_v30 = vpop.f32.mrf.mxu1 }
 0x17c   :  { %v905_v34 = vadd.f32 %v904_v28, %v828_v24  ;;  %v6563_v36 = vadd.f32 %v409_v30, %v6459_v32  ;;  %v4470_v24 = vld [vmem:[%s7913_s11] ss:$0 sm:$0xff] }
 0x17d   :  { %v6566_v37 = vpop.f32.mrf.mxu1 }
 0x17e   :  { %7931 = vst [vmem:[#allocation31_spill] sm:$0xff] %v6566_v37  ;;  %v908_v40 = vsub.f32 0.0, %v905_v34 }
 0x17f   :  { %v415_v44 = vpop.f32.mrf.mxu1 }
 0x180   :  { %v911_v46 = vmul.f32 1.442695, %v908_v40  ;;  %v6572_v49 = vadd.f32 %v415_v44, %v6459_v32 }
 0x181   :  { %v6575_v53 = vpop.f32.mrf.mxu1 }
 0x182   :  { %7932 = vst [vmem:[#allocation32_spill] sm:$0xff] %v6575_v53  ;;  %5900 = vpow2.f32 %v911_v46 }
 0x183   :  { %v421_v54 = vpop.f32.mrf.mxu1 }
 0x184   :  { %v6579_v55 = vadd.f32 %v421_v54, %v6459_v32 }
 0x185   :  { %v6582_v57 = vpop.f32.mrf.mxu1 }
 0x186   :  { %7933 = vst [vmem:[#allocation33_spill] sm:$0xff] %v6582_v57 }
 0x187   :  { %v427_v58 = vpop.f32.mrf.mxu1 }
 0x188   :  { %v6585_v59 = vadd.f32 %v427_v58, %v6459_v32 }
 0x189   :  { %v6587_v62 = vpop.f32.mrf.mxu1 }
 0x18a   :  { %7934 = vst [vmem:[#allocation34_spill] sm:$0xff] %v6585_v59  ;;  %7935 = vst [vmem:[#allocation35_spill] sm:$0xff] %v6587_v62 }
 0x18b   :  { %v433_v63 = vpop.f32.mrf.mxu1 }
 0x18c   :  { %v6590_v1 = vadd.f32 %v433_v63, %v6459_v32  ;;  %v6632_v63 = vadd.f32 %v6518_v3, %v6459_v32 }
 0x18d   :  { %v6592_v5 = vpop.f32.mrf.mxu1 }
 0x18e   :  { %7936 = vst [vmem:[#allocation36_spill] sm:$0xff] %v6590_v1  ;;  %7937 = vst [vmem:[#allocation37_spill] sm:$0xff] %v6592_v5 }
 0x18f   :  { %v5901_v6 = vpop.eup %5900  ;;  %v5117_v8 = vpop.f32.mrf.mxu1 }
 0x190   :  { %v914_v10 = vadd.f32 1.0, %v5901_v6  ;;  %v6650_v3 = vadd.f32 %v5117_v8, %v4470_v24 }
 0x191   :  { %v525_v13 = vpop.f32.mrf.mxu1 }
 0x192   :  { %5902 = vrcp.f32 %v914_v10  ;;  %v6644_v10 = vadd.f32 %v6544_v18, %v6459_v32  ;;  %v6656_v14 = vadd.f32 %v4470_v24, %v525_v13 }
 0x193   :  { %v5120_v15 = vpop.f32.mrf.mxu1 }
 0x194   :  { %v6626_v58 = vadd.f32 %v5120_v15, %v4470_v24 }
 0x195   :  { %v535_v19 = vpop.f32.mrf.mxu1 }
 0x196   :  { %v6638_v6 = vadd.f32 %v4470_v24, %v535_v19 }
 0x197   :  { %v5123_v21 = vpop.f32.mrf.mxu1 }
 0x198   :  { %v6606_v46 = vadd.f32 %v5123_v21, %v4470_v24 }
 0x199   :  { %v545_v25 = vpop.f32.mrf.mxu1 }
 0x19a   :  { %v6616_v54 = vadd.f32 %v4470_v24, %v545_v25 }
 0x19b   :  { %v5126_v28 = vpop.f32.mrf.mxu1 }
 0x19c   :  { %v561_v30 = vadd.f32 %v5126_v28, %v4470_v24 }
 0x19d   :  { %v555_v34 = vpop.f32.mrf.mxu1 }
 0x19e   :  { %5223 = vmatprep.subr.msk.mxu0 %vm933_vm1, %v561_v30  ;;  %v6598_v40 = vadd.f32 %v4470_v24, %v555_v34  ;;  %5251 = vmatprep.subr.msk.mxu1 %vm933_vm1, %v561_v30 }
 0x19f   :  { %v6601_v44 = vpop.eup %5902  ;;  %5224 = vmatpush3.xpose.msk.msra.mxu0 %vm933_vm1, %v561_v30  ;;  %v6667_v32 = vpop.f32.mrf.mxu1 }
 0x1a0   :  { %930 = vrot.lane.b32.xlu0 %v6601_v44, %s6295_s10  ;;  %5225 = vmatprep.subr.msk.mxu0 %vm933_vm1, %v6598_v40 }
 0x1a1   :  { %1892 = vrot.lane.b32.xlu1 %v6598_v40, %s6295_s10  ;;  %v6669_v18 = vpop.f32.mrf.mxu1 }
 0x1a3   :  { %5226 = vmatpush3.xpose.msk.msra.mxu0 %vm933_vm1, %v6598_v40  ;;  %v6671_v8 = vpop.f32.mrf.mxu1 }
 0x1a4   :  { %1068 = vrot.lane.b32.xlu0 %v6465_v35, %s6295_s10  ;;  %5227 = vmatprep.subr.msk.mxu0 %vm933_vm1, %v6606_v46 }
 0x1a5   :  { %1890 = vrot.lane.b32.xlu1 %v6606_v46, %s6295_s10  ;;  %v6673_v13 = vpop.f32.mrf.mxu1 }
 0x1a7   :  { %5228 = vmatpush3.xpose.msk.msra.mxu0 %vm933_vm1, %v6606_v46  ;;  %v6675_v15 = vpop.f32.mrf.mxu1 }
 0x1a8   :  { %1074 = vrot.lane.b32.xlu0 %v6492_v50, %s6295_s10  ;;  %5229 = vmatprep.subr.msk.mxu0 %vm933_vm1, %v6616_v54 }
 0x1a9   :  { %v6677_v19 = vpop.f32.mrf.mxu1 }
 0x1ab   :  { %5230 = vmatpush3.xpose.msk.msra.mxu0 %vm933_vm1, %v6616_v54  ;;  %v6679_v21 = vpop.f32.mrf.mxu1 }
 0x1ac   :  { %1078 = vrot.lane.b32.xlu0 %v6632_v63, %s6295_s10  ;;  %5231 = vmatprep.subr.msk.mxu0 %vm933_vm1, %v6626_v58 }
 0x1ad   :  { %v6690_v62 = vpop.f32.mrf.mxu1 }
 0x1af   :  { %5232 = vmatpush3.xpose.msk.msra.mxu0 %vm933_vm1, %v6626_v58  ;;  %v6697_v7 = vpop.f32.mrf.mxu1 }
 0x1b0   :  { %1082 = vrot.lane.b32.xlu0 %v6644_v10, %s6295_s10  ;;  %5233 = vmatprep.subr.msk.mxu0 %vm933_vm1, %v6638_v6 }
 0x1b3   :  { %5234 = vmatpush3.xpose.msk.msra.mxu0 %vm933_vm1, %v6638_v6 }
 0x1b4   :  { %5235 = vmatprep.subr.msk.mxu0 %vm933_vm1, %v6650_v3  ;;  %1894 = vrot.lane.b32.xlu0 %v561_v30, %s6295_s10 }
 0x1b7   :  { %5236 = vmatpush3.xpose.msk.msra.mxu0 %vm933_vm1, %v6650_v3 }
 0x1b8   :  { %5237 = vmatprep.subr.msk.mxu0 %vm933_vm1, %v6656_v14 }
 0x1bb   :  { %5238 = vmatpush3.xpose.msk.msra.mxu0 %vm933_vm1, %v6656_v14 }
 0x1d2   :  { %v1071_v24 = vpop.permute.xlu1 %1070 }
 0x1d6   :  { %v1073_v22 = vpop.permute.xlu1 %1072 }
 0x1de   :  { %v1077_v33 = vpop.permute.xlu1 %1076 }
 0x212   :  { %v6681_v25 = vpop.permute.xlu0 %930 }
 0x213   :  { %v6686_v28 = vsel %vm933_vm1, %v6601_v44, %v6681_v25 }
 0x214   :  { %v938_v34 = vrot.slane %v6686_v28, %v6451_v29 }
 0x216   :  { %v1069_v5 = vpop.permute.xlu0 %1068  ;;  %v939_v53 = vmul.f32 %v938_v34, %v6569_v42  ;;  %v940_v57 = vmul.f32 %v938_v34, %v6560_v27  ;;  %v941_v37 = vmul.f32 %v938_v34, %v6548_v20 }
 0x217   :  { %5239 = vmatprep.mubr.msk.f32.mxu0 %vm933_vm1, %v1069_v5  ;;  %v942_v5 = vmul.f32 %v938_v34, %v6533_v12 }
 0x218   :  { %5211 = vmatprep.mubr.f32.mxu1 %v939_v53  ;;  %5240 = vmatmul.mubr.msk.f32.vlgmr.msra.gmra.mxu0 %vm933_vm1, %v1071_v24  ;;  %v943_v53 = vmul.f32 %v938_v34, %v6521_v4  ;;  %v691_v24 = vpop.f32.mrf.mxu1 }
 0x219   :  { %5212 = vmatmul.mubr.f32.vlgmr.msra.gmra.mxu1 %v940_v57  ;;  %5242 = vmatprep.mubr.msk.f32.mxu0 %vm933_vm1, %v1073_v22  ;;  %v1081_v57 = vpop.permute.xlu1 %1080 }
 0x21a   :  { %5252 = vmatpush3.xpose.msk.msra.mxu1 %vm933_vm1, %v561_v30  ;;  %5214 = vmatprep.mubr.f32.mxu1 %v941_v37  ;;  %v1075_v47 = vpop.permute.xlu0 %1074  ;;  %v944_v37 = vmul.f32 %v938_v34, %v6510_v61  ;;  %v5176_v30 = vpop.f32.mrf.mxu1 }
 0x21b   :  { %5253 = vmatprep.subr.msk.mxu1 %vm933_vm1, %v6598_v40 }
 0x21c   :  { %5243 = vmatmul.mubr.msk.f32.gmra.mxu0 %vm933_vm1, %v1075_v47  ;;  %v945_v47 = vmul.f32 %v938_v34, %v6496_v52 }
 0x21d   :  { %5215 = vmatmul.mubr.f32.gmra.mxu1 %v942_v5  ;;  %5245 = vmatprep.mubr.msk.f32.mxu0 %vm933_vm1, %v1077_v33  ;;  %v701_v5 = vpop.f32.mrf.mxu1 }
 0x21e   :  { %5254 = vmatpush3.xpose.msk.msra.mxu1 %vm933_vm1, %v6598_v40  ;;  %5217 = vmatprep.mubr.f32.mxu1 %v943_v53  ;;  %v1079_v22 = vpop.permute.xlu0 %1078  ;;  %v946_v40 = vmul.f32 %v938_v34, %v6494_v51 }
 0x21f   :  { %5255 = vmatprep.subr.msk.mxu1 %vm933_vm1, %v6606_v46 }
 0x220   :  { %5246 = vmatmul.mubr.msk.f32.gmra.mxu0 %vm933_vm1, %v1079_v22 }
 0x221   :  { %5218 = vmatmul.mubr.f32.gmra.mxu1 %v944_v37  ;;  %5248 = vmatprep.mubr.msk.f32.mxu0 %vm933_vm1, %v1081_v57 }
 0x222   :  { %5256 = vmatpush3.xpose.msk.msra.mxu1 %vm933_vm1, %v6606_v46  ;;  %5220 = vmatprep.mubr.f32.mxu1 %v945_v47  ;;  %v1083_v33 = vpop.permute.xlu0 %1082  ;;  %v5179_v46 = vpop.f32.mrf.mxu1 }
 0x223   :  { %5257 = vmatprep.subr.msk.mxu1 %vm933_vm1, %v6616_v54 }
 0x224   :  { %5249 = vmatmul.mubr.msk.f32.gmra.mxu0 %vm933_vm1, %v1083_v33  ;;  %v711_v34 = vpop.f32.mrf.mxu1 }
 0x225   :  { %5221 = vmatmul.mubr.f32.gmra.mxu1 %v946_v40 }
 0x226   :  { %5258 = vmatpush3.xpose.msk.msra.mxu1 %vm933_vm1, %v6616_v54  ;;  %5267 = vmatprep.mubr.msk.f32.mxu1 %vm933_vm1, %v6465_v35  ;;  %v4471_v35 = vld [vmem:[%s7913_s11 + $0x1] ss:$0 sm:$0xff]  ;;  %v5182_v53 = vpop.f32.mrf.mxu1 }
 0x227   :  { %5259 = vmatprep.subr.msk.mxu1 %vm933_vm1, %v6626_v58  ;;  %v6742_v22 = vadd.f32 %v5182_v53, %v4471_v35  ;;  %v6751_v47 = vadd.f32 %v5179_v46, %v4471_v35  ;;  %v6756_v33 = vadd.f32 %v4471_v35, %v711_v34  ;;  %v6762_v40 = vadd.f32 %v5176_v30, %v4471_v35 }
 0x228   :  { %v721_v37 = vpop.f32.mrf.mxu1 }
 0x229   :  { %v6746_v57 = vadd.f32 %v4471_v35, %v721_v37  ;;  %7938 = vst [vmem:[#allocation38_spill] sm:$0xff] %v6762_v40 }
 0x22a   :  { %5260 = vmatpush3.xpose.msk.msra.mxu1 %vm933_vm1, %v6626_v58 }
 0x22b   :  { %5261 = vmatprep.subr.msk.mxu1 %vm933_vm1, %v6638_v6 }
 0x22e   :  { %5262 = vmatpush3.xpose.msk.msra.mxu1 %vm933_vm1, %v6638_v6 }
 0x22f   :  { %5263 = vmatprep.subr.msk.mxu1 %vm933_vm1, %v6650_v3 }
 0x232   :  { %5264 = vmatpush3.xpose.msk.msra.mxu1 %vm933_vm1, %v6650_v3 }
 0x233   :  { %5265 = vmatprep.subr.msk.mxu1 %vm933_vm1, %v6656_v14 }
 0x236   :  { %5266 = vmatpush3.xpose.msk.msra.mxu1 %vm933_vm1, %v6656_v14 }
 0x237   :  { %5307 = vmatprep.subr.mxu1 %v6742_v22 }
 0x239   :  { %5268 = vmatmul.mubr.msk.f32.vlgmr.msra.gmra.mxu1 %vm933_vm1, %v6474_v41  ;;  %v6768_v41 = vadd.f32 %v4471_v35, %v701_v5 }
 0x23a   :  { %5270 = vmatprep.mubr.msk.f32.mxu1 %vm933_vm1, %v6482_v45  ;;  %5308 = vmatpush3.msra.mxu1 %v6742_v22  ;;  %v6775_v45 = vadd.f32 %v6697_v7, %v4471_v35  ;;  %v6795_v7 = vpop.f32.mrf.mxu1 }
 0x23b   :  { %5309 = vmatprep.subr.mxu1 %v6746_v57  ;;  %7939 = vst [vmem:[#allocation39_spill] sm:$0xff] %v6768_v41  ;;  %7942 = vst [vmem:[#allocation42_spill] sm:$0xff] %v6795_v7 }
 0x23c   :  { %5310 = vmatpush3.msra.mxu1 %v6746_v57  ;;  %7940 = vst [vmem:[#allocation40_spill] sm:$0xff] %v6775_v45 }
 0x23d   :  { %5271 = vmatmul.mubr.msk.f32.gmra.mxu1 %vm933_vm1, %v6492_v50  ;;  %5311 = vmatprep.subr.mxu1 %v6751_v47  ;;  %v6781_v50 = vadd.f32 %v4471_v35, %v691_v24 }
 0x23e   :  { %5273 = vmatprep.mubr.msk.f32.mxu1 %vm933_vm1, %v6508_v60  ;;  %5312 = vmatpush3.msra.mxu1 %v6751_v47  ;;  %v6789_v60 = vpop.permute.xlu0 %1894 }
 0x23f   :  { %5313 = vmatprep.subr.mxu1 %v6756_v33  ;;  %7941 = vst [vmem:[#allocation41_spill] sm:$0xff] %v6781_v50 }
 0x240   :  { %5314 = vmatpush3.msra.mxu1 %v6756_v33 }
 0x241   :  { %5274 = vmatmul.mubr.msk.f32.gmra.mxu1 %vm933_vm1, %v6632_v63  ;;  %5315 = vmatprep.subr.mxu1 %v6762_v40 }
 0x242   :  { %5276 = vmatprep.mubr.msk.f32.mxu1 %vm933_vm1, %v6531_v11  ;;  %5316 = vmatpush3.msra.mxu1 %v6762_v40  ;;  %v6797_v11 = vpop.f32.mrf.mxu1 }
 0x243   :  { %5317 = vmatprep.subr.mxu1 %v6768_v41  ;;  %7943 = vst [vmem:[#allocation43_spill] sm:$0xff] %v6797_v11 }
 0x244   :  { %5318 = vmatpush3.msra.mxu1 %v6768_v41  ;;  %v6799_v63 = vpop.f32.mrf.mxu1 }
 0x245   :  { %5277 = vmatmul.mubr.msk.f32.gmra.mxu1 %vm933_vm1, %v6644_v10  ;;  %5319 = vmatprep.subr.mxu1 %v6775_v45  ;;  %7944 = vst [vmem:[#allocation44_spill] sm:$0xff] %v6799_v63 }
 0x246   :  { %5320 = vmatpush3.msra.mxu1 %v6775_v45  ;;  %v6801_v10 = vpop.f32.mrf.mxu1 }
 0x247   :  { %5321 = vmatprep.subr.mxu1 %v6781_v50  ;;  %7945 = vst [vmem:[#allocation45_spill] sm:$0xff] %v6801_v10 }
 0x248   :  { %5322 = vmatpush3.msra.mxu1 %v6781_v50  ;;  %v6803_v24 = vpop.f32.mrf.mxu1 }
 0x249   :  { %5363 = vmatprep.subr.msk.mxu1 %vm933_vm1, %v6789_v60  ;;  %7946 = vst [vmem:[#allocation46_spill] sm:$0xff] %v6803_v24 }
 0x24a   :  { %v6805_v30 = vpop.f32.mrf.mxu1 }
 0x24b   :  { %7947 = vst [vmem:[#allocation47_spill] sm:$0xff] %v6805_v30 }
 0x24c   :  { %v6807_v5 = vpop.f32.mrf.mxu1 }
 0x24d   :  { %7948 = vst [vmem:[#allocation48_spill] sm:$0xff] %v6807_v5 }
 0x24e   :  { %v6809_v46 = vpop.f32.mrf.mxu1 }
 0x24f   :  { %7949 = vst [vmem:[#allocation49_spill] sm:$0xff] %v6809_v46 }
 0x2d8   :  { %v5241_v34 = vpop.f32.mrf.mxu0 }
 0x2d9   :  { %v5213_v35 = vpop.f32.mrf.mxu1 }
 0x2da   :  { %v1190_v53 = vpop.f32.mrf.mxu0  ;;  %v1053_v59 = vmul.f32 0.015625, %v5213_v35 }
 0x2db   :  { %v1013_v37 = vpop.f32.mrf.mxu1  ;;  %5295 = vmatprep.mubr.msk.f32.mxu0 %vm933_vm1, %v1190_v53 }
 0x2dc   :  { %v5244_v46 = vpop.f32.mrf.mxu0 }
 0x2dd   :  { %v5216_v7 = vpop.f32.mrf.mxu1 }
 0x2de   :  { %v1055_v41 = vmul.f32 0.015625, %v5216_v7  ;;  %v1200_v53 = vpop.f32.mrf.mxu0 }
 0x2df   :  { %v1023_v11 = vpop.f32.mrf.mxu1 }
 0x2e0   :  { %v1054_v1 = vmul.f32 0.015625, %v1023_v11  ;;  %v6846_v11 = vpop.permute.xlu1 %1892 }
 0x2e1   :  { %v5219_v45 = vpop.f32.mrf.mxu1 }
 0x2e2   :  { %v1057_v30 = vmul.f32 0.015625, %v5219_v45 }
 0x2e3   :  { %v1033_v63 = vpop.f32.mrf.mxu1 }
 0x2e4   :  { %v1056_v5 = vmul.f32 0.015625, %v1033_v63 }
 0x2e5   :  { %v5222_v50 = vpop.f32.mrf.mxu1 }
 0x2e6   :  { %v1059_v10 = vmul.f32 0.015625, %v5222_v50  ;;  %v5247_v50 = vpop.f32.mrf.mxu0 }
 0x2e7   :  { %v1043_v40 = vpop.f32.mrf.mxu1 }
 0x2e8   :  { %v1058_v24 = vmul.f32 0.015625, %v1043_v40  ;;  %5279 = vmatprep.subr.mxu0 %v1059_v10  ;;  %v1052_v40 = vmul.f32 0.015625, %v1013_v37  ;;  %v1210_v45 = vpop.f32.mrf.mxu0 }
 0x2e9   :  { %5280 = vmatpush3.msra.mxu0 %v1059_v10 }
 0x2ea   :  { %5281 = vmatprep.subr.mxu0 %v1058_v24 }
 0x2eb   :  { %5282 = vmatpush3.msra.mxu0 %v1058_v24  ;;  %v6855_v24 = vpop.permute.xlu1 %1890 }
 0x2ec   :  { %5283 = vmatprep.subr.mxu0 %v1057_v30 }
 0x2ed   :  { %5284 = vmatpush3.msra.mxu0 %v1057_v30 }
 0x2ee   :  { %5285 = vmatprep.subr.mxu0 %v1056_v5 }
 0x2ef   :  { %5286 = vmatpush3.msra.mxu0 %v1056_v5 }
 0x2f0   :  { %5287 = vmatprep.subr.mxu0 %v1055_v41 }
 0x2f1   :  { %5288 = vmatpush3.msra.mxu0 %v1055_v41  ;;  %v5250_v41 = vpop.f32.mrf.mxu0 }
 0x2f2   :  { %5289 = vmatprep.subr.mxu0 %v1054_v1 }
 0x2f3   :  { %5290 = vmatpush3.msra.mxu0 %v1054_v1  ;;  %v6820_v1 = vsel %vm933_vm1, %v6681_v25, %v6601_v44  ;;  %v1220_v7 = vpop.f32.mrf.mxu0 }
 0x2f4   :  { %5291 = vmatprep.subr.mxu0 %v1053_v59 }
 0x2f5   :  { %5292 = vmatpush3.msra.mxu0 %v1053_v59  ;;  %v1734_v59 = vrot.slane %v6820_v1, %v6451_v29 }
 0x2f6   :  { %5293 = vmatprep.subr.mxu0 %v1052_v40 }
 0x2f7   :  { %5294 = vmatpush3.msra.mxu0 %v1052_v40  ;;  %v1735_v44 = vmul.f32 %v1734_v59, %v6569_v42  ;;  %v1736_v25 = vmul.f32 %v1734_v59, %v6560_v27  ;;  %v1737_v63 = vmul.f32 %v1734_v59, %v6548_v20  ;;  %v1738_v10 = vmul.f32 %v1734_v59, %v6533_v12 }
 0x2f8   :  { %5296 = vmatmul.mubr.msk.f32.vlgmr.msra.gmra.mxu0 %vm933_vm1, %v5241_v34  ;;  %5335 = vmatprep.subr.mxu0 %v6494_v51 }
 0x2f9   :  { %5298 = vmatprep.mubr.msk.f32.mxu0 %vm933_vm1, %v1200_v53  ;;  %5336 = vmatpush3.xpose.msra.mxu0 %v6494_v51 }
 0x2fa   :  { %5337 = vmatprep.subr.mxu0 %v6496_v52 }
 0x2fc   :  { %5299 = vmatmul.mubr.msk.f32.gmra.mxu0 %vm933_vm1, %v5244_v46 }
 0x2fd   :  { %5301 = vmatprep.mubr.msk.f32.mxu0 %vm933_vm1, %v1210_v45  ;;  %5338 = vmatpush3.xpose.msra.mxu0 %v6496_v52 }
 0x2fe   :  { %5339 = vmatprep.subr.mxu0 %v6510_v61 }
 0x300   :  { %5302 = vmatmul.mubr.msk.f32.gmra.mxu0 %vm933_vm1, %v5247_v50 }
 0x301   :  { %5304 = vmatprep.mubr.msk.f32.mxu0 %vm933_vm1, %v1220_v7  ;;  %5340 = vmatpush3.xpose.msra.mxu0 %v6510_v61  ;;  %v6880_v7 = vld [vmem:[%s7906_s4] ss:$0 sm:$0xff] }
 0x302   :  { %5341 = vmatprep.subr.mxu0 %v6521_v4 }
 0x304   :  { %5305 = vmatmul.mubr.msk.f32.gmra.mxu0 %vm933_vm1, %v5250_v41 }
 0x305   :  { %5342 = vmatpush3.xpose.msra.mxu0 %v6521_v4  ;;  %5351 = vmatprep.mubr.f32.mxu0 %v1735_v44 }
 0x306   :  { %5343 = vmatprep.subr.mxu0 %v6533_v12 }
 0x309   :  { %5344 = vmatpush3.xpose.msra.mxu0 %v6533_v12  ;;  %v907_v12 = vsub.f32 0.0, %v6558_v26 }
 0x30a   :  { %5345 = vmatprep.subr.mxu0 %v6548_v20 }
 0x30b   :  { %v909_v30 = vmul.f32 1.442695, %v907_v12 }
 0x30d   :  { %5346 = vmatpush3.xpose.msra.mxu0 %v6548_v20  ;;  %v1740_v20 = vmul.f32 %v1734_v59, %v6510_v61  ;;  %5904 = vpow2.f32 %v909_v30  ;;  %v5269_v61 = vpop.f32.mrf.mxu1 }
 0x30e   :  { %5347 = vmatprep.subr.mxu0 %v6560_v27 }
 0x311   :  { %5348 = vmatpush3.xpose.msra.mxu0 %v6560_v27  ;;  %v1741_v27 = vmul.f32 %v1734_v59, %v6496_v52  ;;  %v1311_v52 = vpop.f32.mrf.mxu1 }
 0x312   :  { %5349 = vmatprep.subr.mxu0 %v6569_v42 }
 0x313   :  { %v5272_v34 = vpop.f32.mrf.mxu1 }
 0x315   :  { %5350 = vmatpush3.xpose.msra.mxu0 %v6569_v42  ;;  %v1739_v42 = vmul.f32 %v1734_v59, %v6521_v4  ;;  %v1742_v4 = vmul.f32 %v1734_v59, %v6494_v51  ;;  %v1321_v35 = vpop.f32.mrf.mxu1 }
 0x316   :  { %5391 = vmatprep.subr.msk.mxu0 %vm933_vm1, %v6789_v60 }
 0x317   :  { %v5275_v53 = vpop.f32.mrf.mxu1 }
 0x318   :  { %5352 = vmatmul.mubr.f32.vlgmr.msra.gmra.mxu0 %v1736_v25 }
 0x319   :  { %5354 = vmatprep.mubr.f32.mxu0 %v1737_v63  ;;  %5392 = vmatpush3.xpose.msk.msra.mxu0 %vm933_vm1, %v6789_v60  ;;  %v1331_v45 = vpop.f32.mrf.mxu1 }
 0x31a   :  { %5393 = vmatprep.subr.msk.mxu0 %vm933_vm1, %v6846_v11  ;;  %v5905_v5 = vpop.eup %5904 }
 0x31b   :  { %v913_v46 = vadd.f32 1.0, %v5905_v5 }
 0x31c   :  { %5355 = vmatmul.mubr.f32.gmra.mxu0 %v1738_v10 }
 0x31d   :  { %5357 = vmatprep.mubr.f32.mxu0 %v1739_v42  ;;  %5394 = vmatpush3.xpose.msk.msra.mxu0 %vm933_vm1, %v6846_v11  ;;  %5906 = vrcp.f32 %v913_v46  ;;  %v5278_v42 = vpop.f32.mrf.mxu1 }
 0x31e   :  { %5395 = vmatprep.subr.msk.mxu0 %vm933_vm1, %v6855_v24 }
 0x320   :  { %5358 = vmatmul.mubr.f32.gmra.mxu0 %v1740_v20 }
 0x321   :  { %5360 = vmatprep.mubr.f32.mxu0 %v1741_v27  ;;  %5396 = vmatpush3.xpose.msk.msra.mxu0 %vm933_vm1, %v6855_v24 }
 0x324   :  { %5361 = vmatmul.mubr.f32.gmra.mxu0 %v1742_v4 }
 0x325   :  { %5407 = vmatprep.mubr.msk.f32.mxu0 %vm933_vm1, %v6468_v38 }
 0x32a   :  { %v6869_v37 = vpop.eup %5906 }
 0x32b   :  { %7950 = vst [vmem:[#allocation50_spill] sm:$0xff] %v6869_v37  ;;  %v6873_v51 = vrot.slane %v6869_v37, %v6451_v29 }
 0x32d   :  { %v1355_v40 = vmul.f32 %v5269_v61, %v6873_v51  ;;  %v1354_v26 = vmul.f32 %v6873_v51, %v1311_v52  ;;  %v1357_v44 = vmul.f32 %v5272_v34, %v6873_v51  ;;  %v1356_v10 = vmul.f32 %v6873_v51, %v1321_v35 }
 0x32e   :  { %v1359_v12 = vmul.f32 %v5275_v53, %v6873_v51  ;;  %v1358_v34 = vmul.f32 %v6873_v51, %v1331_v45 }
 0x3b8   :  { %v5297_v50 = vpop.f32.mrf.mxu0 }
 0x3b9   :  { %v1458_v41 = vadd.f32 %v5297_v50, %v1355_v40  ;;  %v1341_v50 = vpop.f32.mrf.mxu1 }
 0x3ba   :  { %v1452_v59 = vpop.f32.mrf.mxu0  ;;  %v1360_v45 = vmul.f32 %v6873_v51, %v1341_v50 }
 0x3bb   :  { %v1492_v25 = vmul.f32 0.125, %v1458_v41  ;;  %v1453_v63 = vadd.f32 %v1452_v59, %v1354_v26 }
 0x3bc   :  { %v5300_v29 = vpop.f32.mrf.mxu0 }
 0x3bd   :  { %v1491_v20 = vmul.f32 0.125, %v1453_v63  ;;  %v1468_v27 = vadd.f32 %v5300_v29, %v1357_v44  ;;  %v1506_v4 = vadd.f32 %v6880_v7, %v1492_v25  ;;  %v1361_v44 = vmul.f32 %v5278_v42, %v6873_v51 }
 0x3be   :  { %v1462_v30 = vpop.f32.mrf.mxu0 }
 0x3bf   :  { %v1494_v5 = vmul.f32 0.125, %v1468_v27  ;;  %v1463_v46 = vadd.f32 %v1462_v30, %v1356_v10  ;;  %v1516_v61 = vsel %vm933_vm1, %v1506_v4, -inf  ;;  %v1505_v52 = vadd.f32 %v6880_v7, %v1491_v20 }
 0x3c0   :  { %v5303_v40 = vpop.f32.mrf.mxu0  ;;  %1517 = vmax.xlane.f32.xlu0 %v1516_v61 }
 0x3c1   :  { %v1493_v35 = vmul.f32 0.125, %v1463_v46  ;;  %v1478_v26 = vadd.f32 %v5303_v40, %v1359_v12  ;;  %v1513_v41 = vsel %vm933_vm1, %v1505_v52, -inf  ;;  %v6891_v59 = vadd.f32 %v6880_v7, %v1494_v5 }
 0x3c2   :  { %v1472_v53 = vpop.f32.mrf.mxu0  ;;  %1514 = vmax.xlane.f32.xlu1 %v1513_v41 }
 0x3c3   :  { %v1496_v25 = vmul.f32 0.125, %v1478_v26  ;;  %v1473_v63 = vadd.f32 %v1472_v53, %v1358_v34  ;;  %v1507_v29 = vadd.f32 %v6880_v7, %v1493_v35  ;;  %v1522_v20 = vsel %vm933_vm1, %v6891_v59, -inf }
 0x3c4   :  { %v5306_v10 = vpop.f32.mrf.mxu0 }
 0x3c5   :  { %v1495_v27 = vmul.f32 0.125, %v1473_v63  ;;  %v1488_v12 = vadd.f32 %v5306_v10, %v1361_v44  ;;  %v1519_v30 = vsel %vm933_vm1, %v1507_v29, -inf  ;;  %v1510_v5 = vadd.f32 %v6880_v7, %v1496_v25 }
 0x3c6   :  { %v1482_v46 = vpop.f32.mrf.mxu0  ;;  %1523 = vmax.xlane.f32.xlu1 %v1522_v20  ;;  %1520 = vmax.xlane.f32.xlu0 %v1519_v30 }
 0x3c7   :  { %v1498_v42 = vmul.f32 0.125, %v1488_v12  ;;  %v1483_v61 = vadd.f32 %v1482_v46, %v1360_v45  ;;  %v1509_v34 = vadd.f32 %v6880_v7, %v1495_v27  ;;  %v1528_v50 = vsel %vm933_vm1, %v1510_v5, -inf }
 0x3c9   :  { %v1497_v40 = vmul.f32 0.125, %v1483_v61  ;;  %v1525_v35 = vsel %vm933_vm1, %v1509_v34, -inf  ;;  %v1512_v26 = vadd.f32 %v6880_v7, %v1498_v42 }
 0x3ca   :  { %1529 = vmax.xlane.f32.xlu1 %v1528_v50  ;;  %1526 = vmax.xlane.f32.xlu0 %v1525_v35 }
 0x3cb   :  { %v1511_v41 = vadd.f32 %v6880_v7, %v1497_v40  ;;  %v1534_v53 = vsel %vm933_vm1, %v1512_v26, -inf }
 0x3cd   :  { %v1531_v44 = vsel %vm933_vm1, %v1511_v41, -inf }
 0x3ce   :  { %1535 = vmax.xlane.f32.xlu1 %v1534_v53  ;;  %1532 = vmax.xlane.f32.xlu0 %v1531_v44 }
 0x3df   :  { %1886 = vrot.lane.b32.xlu1 %v6626_v58, %s6295_s10 }
 0x3e4   :  { %1888 = vrot.lane.b32.xlu0 %v6616_v54, %s6295_s10 }
 0x449   :  { %v1518_v25 = vpop.xlane.xlu0 %1517 }
 0x44a   :  { %v1538_v63 = vsub.f32 %v1506_v4, %v1518_v25 }
 0x44b   :  { %v1515_v45 = vpop.xlane.xlu1 %1514 }
 0x44c   :  { %v1547_v10 = vmul.f32 1.442695, %v1538_v63  ;;  %v1537_v20 = vsub.f32 %v1505_v52, %v1515_v45 }
 0x44e   :  { %5908 = vpow2.f32 %v1547_v10  ;;  %v1545_v27 = vmul.f32 1.442695, %v1537_v20 }
 0x44f   :  { %v1524_v12 = vpop.xlane.xlu1 %1523  ;;  %v1521_v30 = vpop.xlane.xlu0 %1520 }
 0x450   :  { %5910 = vpow2.f32 %v1545_v27  ;;  %v1540_v53 = vsub.f32 %v6891_v59, %v1524_v12  ;;  %v1539_v44 = vsub.f32 %v1507_v29, %v1521_v30 }
 0x452   :  { %v1551_v25 = vmul.f32 1.442695, %v1540_v53  ;;  %v1549_v45 = vmul.f32 1.442695, %v1539_v44 }
 0x453   :  { %v1530_v46 = vpop.xlane.xlu1 %1529  ;;  %v1527_v42 = vpop.xlane.xlu0 %1526 }
 0x454   :  { %v1542_v63 = vsub.f32 %v1510_v5, %v1530_v46  ;;  %v1541_v10 = vsub.f32 %v1509_v34, %v1527_v42  ;;  %5912 = vpow2.f32 %v1551_v25 }
 0x455   :  { %5914 = vpow2.f32 %v1549_v45 }
 0x456   :  { %v1555_v20 = vmul.f32 1.442695, %v1542_v63 }
 0x457   :  { %v1536_v61 = vpop.xlane.xlu1 %1535  ;;  %v1533_v40 = vpop.xlane.xlu0 %1532 }
 0x458   :  { %v1544_v27 = vsub.f32 %v1512_v26, %v1536_v61  ;;  %5916 = vpow2.f32 %v1555_v20 }
 0x45a   :  { %v1559_v37 = vmul.f32 1.442695, %v1544_v27 }
 0x45b   :  { %v6911_v50 = vpop.eup %5908  ;;  %v6913_v58 = vpop.permute.xlu0 %1888 }
 0x45c   :  { %5397 = vmatprep.subr.msk.mxu0 %vm933_vm1, %v6913_v58  ;;  %v1564_v54 = vsel %vm933_vm1, %v6911_v50, 0.0  ;;  %v6921_v52 = vpop.permute.xlu1 %1886 }
 0x45d   :  { %v6919_v4 = vpop.eup %5910  ;;  %1565 = vadd.xlane.f32.xlu1 %v1564_v54  ;;  %5398 = vmatpush3.xpose.msk.msra.mxu0 %vm933_vm1, %v6913_v58  ;;  %v1553_v54 = vmul.f32 1.442695, %v1541_v10 }
 0x45e   :  { %5399 = vmatprep.subr.msk.mxu0 %vm933_vm1, %v6921_v52  ;;  %v1561_v35 = vsel %vm933_vm1, %v6919_v4, 0.0 }
 0x45f   :  { %1562 = vadd.xlane.f32.xlu0 %v1561_v35  ;;  %v1543_v35 = vsub.f32 %v1511_v41, %v1533_v40  ;;  %5918 = vpow2.f32 %v1553_v54 }
 0x460   :  { %5920 = vpow2.f32 %v1559_v37 }
 0x461   :  { %5400 = vmatpush3.xpose.msk.msra.mxu0 %vm933_vm1, %v6921_v52 }
 0x46e   :  { %1882 = vrot.lane.b32.xlu1 %v6650_v3, %s6295_s10  ;;  %v1557_v3 = vmul.f32 1.442695, %v1543_v35 }
 0x470   :  { %5922 = vpow2.f32 %v1557_v3 }
 0x475   :  { %1884 = vrot.lane.b32.xlu0 %v6638_v6, %s6295_s10  ;;  %v6936_v6 = vpop.eup %5912 }
 0x476   :  { %v6938_v59 = vpop.eup %5914  ;;  %v1570_v29 = vsel %vm933_vm1, %v6936_v6, 0.0 }
 0x477   :  { %v6942_v5 = vpop.eup %5916  ;;  %v1567_v34 = vsel %vm933_vm1, %v6938_v59, 0.0 }
 0x478   :  { %v6946_v26 = vpop.eup %5918  ;;  %v1576_v37 = vsel %vm933_vm1, %v6942_v5, 0.0 }
 0x479   :  { %v6950_v41 = vpop.eup %5920  ;;  %v1573_v12 = vsel %vm933_vm1, %v6946_v26, 0.0 }
 0x47a   :  { %v1582_v46 = vsel %vm933_vm1, %v6950_v41, 0.0 }
 0x47d   :  { %v6954_v30 = vpop.eup %5922 }
 0x47e   :  { %v1579_v42 = vsel %vm933_vm1, %v6954_v30, 0.0 }
 0x492   :  { %1571 = vadd.xlane.f32.xlu1 %v1570_v29  ;;  %v7035_v29 = vld [vmem:[#allocation17 + $0x38] sm:$0xff] }
 0x494   :  { %1568 = vadd.xlane.f32.xlu0 %v1567_v34 }
 0x496   :  { %1577 = vadd.xlane.f32.xlu1 %v1576_v37 }
 0x498   :  { %1574 = vadd.xlane.f32.xlu0 %v1573_v12 }
 0x49a   :  { %1583 = vadd.xlane.f32.xlu1 %v1582_v46  ;;  %v7047_v46 = vld [vmem:[#allocation17 + $0x30] sm:$0xff] }
 0x49c   :  { %1580 = vadd.xlane.f32.xlu0 %v1579_v42 }
 0x4ab   :  { %1864 = vrot.lane.b32.xlu1 %v6468_v38, %s6295_s10 }
 0x4af   :  { %1868 = vrot.lane.b32.xlu1 %v6487_v48, %s6295_s10 }
 0x4b2   :  { %1880 = vrot.lane.b32.xlu0 %v6656_v14, %s6295_s10 }
 0x4b3   :  { %1872 = vrot.lane.b32.xlu1 %v6513_v2, %s6295_s10 }
 0x4b6   :  { %1866 = vrot.lane.b32.xlu0 %v6477_v43, %s6295_s10 }
 0x4b7   :  { %1876 = vrot.lane.b32.xlu1 %v6536_v16, %s6295_s10 }
 0x4ba   :  { %1870 = vrot.lane.b32.xlu0 %v6500_v0, %s6295_s10 }
 0x4bb   :  { %2155 = vrot.lane.b32.xlu1 %v6873_v51, %s6295_s10 }
 0x4be   :  { %1874 = vrot.lane.b32.xlu0 %v6526_v9, %s6295_s10 }
 0x4bf   :  { %2421 = vrot.lane.b32.xlu1 %v6742_v22, %s6295_s10 }
 0x4c2   :  { %1878 = vrot.lane.b32.xlu0 %v6553_v23, %s6295_s10 }
 0x4c3   :  { %2417 = vrot.lane.b32.xlu1 %v6751_v47, %s6295_s10 }
 0x4c6   :  { %2419 = vrot.lane.b32.xlu0 %v6746_v57, %s6295_s10 }
 0x4c7   :  { %2415 = vrot.lane.b32.xlu1 %v6756_v33, %s6295_s10 }
 0x4e6   :  { %v1566_v38 = vpop.xlane.xlu1 %1565 }
 0x4e7   :  { %5924 = vrcp.f32 %v1566_v38 }
 0x4e8   :  { %v1563_v14 = vpop.xlane.xlu0 %1562 }
 0x4e9   :  { %5926 = vrcp.f32 %v1563_v14  ;;  %v7063_v14 = vld [vmem:[#allocation17 + $0x28] sm:$0xff] }
 0x4ea   :  { %v1883_v22 = vpop.permute.xlu1 %1882 }
 0x4ec   :  { %v1885_v51 = vpop.permute.xlu0 %1884 }
 0x4ed   :  { %5401 = vmatprep.subr.msk.mxu0 %vm933_vm1, %v1885_v51 }
 0x4ee   :  { %5402 = vmatpush3.xpose.msk.msra.mxu0 %vm933_vm1, %v1885_v51 }
 0x4ef   :  { %5403 = vmatprep.subr.msk.mxu0 %vm933_vm1, %v1883_v22 }
 0x4f2   :  { %5404 = vmatpush3.xpose.msk.msra.mxu0 %vm933_vm1, %v1883_v22 }
 0x4f4   :  { %v5925_v47 = vpop.eup %5924 }
 0x4f5   :  { %v1588_v33 = vmul.f32 %v5925_v47, %v6911_v50 }
 0x4f6   :  { %v5927_v61 = vpop.eup %5926 }
 0x4f7   :  { %v1586_v57 = vmul.f32 %v5927_v61, %v6919_v4  ;;  %v7088_v61 = vld [vmem:[#allocation17 + $0x18] sm:$0xff] }
 0x4f9   :  { %5323 = vmatprep.mubr.msk.f32.mxu1 %vm933_vm1, %v1586_v57 }
 0x4fa   :  { %5324 = vmatmul.mubr.msk.f32.vlgmr.msra.gmra.mxu1 %vm933_vm1, %v1588_v33 }
 0x4fb   :  { %5364 = vmatpush3.xpose.msk.msra.mxu1 %vm933_vm1, %v6789_v60  ;;  %v7015_v60 = vpop.f32.mrf.mxu0 }
 0x4fc   :  { %5365 = vmatprep.subr.msk.mxu1 %vm933_vm1, %v6846_v11 }
 0x4ff   :  { %5366 = vmatpush3.xpose.msk.msra.mxu1 %vm933_vm1, %v6846_v11  ;;  %v7019_v11 = vpop.f32.mrf.mxu0 }
 0x500   :  { %5367 = vmatprep.subr.msk.mxu1 %vm933_vm1, %v6855_v24 }
 0x503   :  { %5368 = vmatpush3.xpose.msk.msra.mxu1 %vm933_vm1, %v6855_v24  ;;  %v7022_v24 = vpop.f32.mrf.mxu0 }
 0x504   :  { %5369 = vmatprep.subr.msk.mxu1 %vm933_vm1, %v6913_v58  ;;  %v1851_v33 = vmul.f32 0.015625, %v7022_v24  ;;  %v1849_v24 = vmul.f32 0.015625, %v7015_v60 }
 0x505   :  { %v7024_v40 = vpop.f32.mrf.mxu0 }
 0x507   :  { %5370 = vmatpush3.xpose.msk.msra.mxu1 %vm933_vm1, %v6913_v58  ;;  %v7026_v4 = vpop.f32.mrf.mxu0 }
 0x508   :  { %5371 = vmatprep.subr.msk.mxu1 %vm933_vm1, %v6921_v52 }
 0x509   :  { %v7028_v44 = vpop.f32.mrf.mxu0 }
 0x50b   :  { %5372 = vmatpush3.xpose.msk.msra.mxu1 %vm933_vm1, %v6921_v52  ;;  %v5362_v45 = vpop.f32.mrf.mxu0 }
 0x50c   :  { %5373 = vmatprep.subr.msk.mxu1 %vm933_vm1, %v1885_v51  ;;  %v1855_v27 = vmul.f32 0.015625, %v5362_v45 }
 0x50f   :  { %5374 = vmatpush3.xpose.msk.msra.mxu1 %vm933_vm1, %v1885_v51 }
 0x510   :  { %5375 = vmatprep.subr.msk.mxu1 %vm933_vm1, %v1883_v22 }
 0x513   :  { %5376 = vmatpush3.xpose.msk.msra.mxu1 %vm933_vm1, %v1883_v22  ;;  %v1853_v22 = vmul.f32 0.015625, %v7026_v4 }
 0x51b   :  { %v1572_v50 = vpop.xlane.xlu1 %1571 }
 0x51c   :  { %5928 = vrcp.f32 %v1572_v50  ;;  %v7096_v50 = vld [vmem:[#allocation17 + $0x10] sm:$0xff] }
 0x51d   :  { %v1569_v58 = vpop.xlane.xlu0 %1568 }
 0x51e   :  { %5930 = vrcp.f32 %v1569_v58  ;;  %v1850_v58 = vmul.f32 0.015625, %v7024_v40  ;;  %v1848_v40 = vmul.f32 0.015625, %v7019_v11 }
 0x51f   :  { %v1578_v52 = vpop.xlane.xlu1 %1577 }
 0x520   :  { %5932 = vrcp.f32 %v1578_v52 }
 0x521   :  { %v1575_v53 = vpop.xlane.xlu0 %1574 }
 0x522   :  { %5934 = vrcp.f32 %v1575_v53  ;;  %v7106_v53 = vld [vmem:[#allocation17 + $0x8] sm:$0xff] }
 0x523   :  { %v1584_v25 = vpop.xlane.xlu1 %1583 }
 0x524   :  { %5936 = vrcp.f32 %v1584_v25 }
 0x525   :  { %v1581_v63 = vpop.xlane.xlu0 %1580 }
 0x526   :  { %5938 = vrcp.f32 %v1581_v63 }
 0x527   :  { %v1865_v35 = vpop.permute.xlu1 %1864 }
 0x529   :  { %v1881_v10 = vpop.permute.xlu0 %1880  ;;  %v5929_v20 = vpop.eup %5928 }
 0x52a   :  { %5377 = vmatprep.subr.msk.mxu1 %vm933_vm1, %v1881_v10  ;;  %5405 = vmatprep.subr.msk.mxu0 %vm933_vm1, %v1881_v10  ;;  %v1592_v34 = vmul.f32 %v5929_v20, %v6936_v6 }
 0x52b   :  { %v5931_v54 = vpop.eup %5930  ;;  %5378 = vmatpush3.xpose.msk.msra.mxu1 %vm933_vm1, %v1881_v10  ;;  %5406 = vmatpush3.xpose.msk.msra.mxu0 %vm933_vm1, %v1881_v10  ;;  %v1869_v38 = vpop.permute.xlu1 %1868 }
 0x52c   :  { %5419 = vmatprep.subr.mxu1 %v1855_v27  ;;  %v1590_v3 = vmul.f32 %v5931_v54, %v6938_v59  ;;  %5475 = vmatprep.subr.mxu0 %v7035_v29 }
 0x52d   :  { %v5933_v37 = vpop.eup %5932 }
 0x52e   :  { %5326 = vmatprep.mubr.msk.f32.mxu1 %vm933_vm1, %v1590_v3  ;;  %5408 = vmatmul.mubr.msk.f32.vlgmr.msra.gmra.mxu0 %vm933_vm1, %v6477_v43  ;;  %v1596_v6 = vmul.f32 %v5933_v37, %v6942_v5  ;;  %v7061_v5 = vrot.slane %v6686_v28, %v6456_v31  ;;  %v7075_v28 = vld [vmem:[#allocation17 + $0x20] sm:$0xff] }
 0x52f   :  { %v5935_v12 = vpop.eup %5934  ;;  %5327 = vmatmul.mubr.msk.f32.gmra.mxu1 %vm933_vm1, %v1592_v34  ;;  %5410 = vmatprep.mubr.msk.f32.mxu0 %vm933_vm1, %v6487_v48  ;;  %v1867_v48 = vpop.permute.xlu0 %1866  ;;  %v7952_v34 = vld [vmem:[#allocation36_spill] sm:$0xff] }
 0x530   :  { %5476 = vmatpush3.xpose.msra.mxu0 %v7035_v29  ;;  %v1594_v59 = vmul.f32 %v5935_v12, %v6946_v26  ;;  %v2605_v11 = vmul.f32 %v7106_v53, %v7061_v5  ;;  %v2606_v63 = vmul.f32 %v7096_v50, %v7061_v5  ;;  %v2608_v10 = vmul.f32 %v7075_v28, %v7061_v5 }
 0x531   :  { %5477 = vmatprep.subr.mxu0 %v7047_v46  ;;  %v5937_v42 = vpop.eup %5936 }
 0x532   :  { %5329 = vmatprep.mubr.msk.f32.mxu1 %vm933_vm1, %v1594_v59  ;;  %5411 = vmatmul.mubr.msk.f32.gmra.mxu0 %vm933_vm1, %v6500_v0  ;;  %v1600_v0 = vmul.f32 %v5937_v42, %v6950_v41  ;;  %v7078_v41 = vld [vmem:[#allocation17] sm:$0xff] }
 0x533   :  { %v5939_v43 = vpop.eup %5938  ;;  %5330 = vmatmul.mubr.msk.f32.gmra.mxu1 %vm933_vm1, %v1596_v6  ;;  %5413 = vmatprep.mubr.msk.f32.mxu0 %vm933_vm1, %v6513_v2  ;;  %v1839_v2 = vpop.f32.mrf.mxu0 }
 0x534   :  { %5478 = vmatpush3.xpose.msra.mxu0 %v7047_v46  ;;  %v1598_v26 = vmul.f32 %v5939_v43, %v6954_v30  ;;  %v1873_v30 = vpop.permute.xlu1 %1872  ;;  %v1871_v51 = vpop.permute.xlu0 %1870  ;;  %v7953_v43 = vld [vmem:[#allocation27_spill] sm:$0xff] }
 0x535   :  { %5479 = vmatprep.subr.mxu0 %v7063_v14 }
 0x536   :  { %5332 = vmatprep.mubr.msk.f32.mxu1 %vm933_vm1, %v1598_v26  ;;  %5414 = vmatmul.mubr.msk.f32.gmra.mxu0 %vm933_vm1, %v6526_v9  ;;  %v2604_v9 = vmul.f32 %v7078_v41, %v7061_v5 }
 0x537   :  { %5333 = vmatmul.mubr.msk.f32.gmra.mxu1 %vm933_vm1, %v1600_v0  ;;  %5416 = vmatprep.mubr.msk.f32.mxu0 %vm933_vm1, %v6536_v16  ;;  %v1854_v16 = vmul.f32 0.015625, %v1839_v2 }
 0x538   :  { %5480 = vmatpush3.xpose.msra.mxu0 %v7063_v14  ;;  %5379 = vmatprep.mubr.msk.f32.mxu1 %vm933_vm1, %v1865_v35  ;;  %v1877_v47 = vpop.permute.xlu1 %1876  ;;  %v1875_v57 = vpop.permute.xlu0 %1874 }
 0x539   :  { %5481 = vmatprep.subr.mxu0 %v7075_v28 }
 0x53a   :  { %5417 = vmatmul.mubr.msk.f32.gmra.mxu0 %vm933_vm1, %v6553_v23  ;;  %v1852_v23 = vmul.f32 0.015625, %v7028_v44  ;;  %v6044_v44 = vld [vmem:[%s7913_s11] ss:$0 sm:$0xff] }
 0x53b   :  { %5380 = vmatmul.mubr.msk.f32.vlgmr.msra.gmra.mxu1 %vm933_vm1, %v1867_v48  ;;  %5491 = vmatprep.mubr.f32.mxu0 %v2604_v9  ;;  %v7119_v25 = vadd.f32 %v6044_v44, %v6679_v21  ;;  %v7130_v45 = vadd.f32 %v6044_v44, %v6690_v62  ;;  %v2607_v21 = vmul.f32 %v7088_v61, %v7061_v5  ;;  %v7954_v48 = vld [vmem:[#allocation28_spill] sm:$0xff] }
 0x53c   :  { %5420 = vmatpush3.msra.mxu1 %v1855_v27  ;;  %5482 = vmatpush3.xpose.msra.mxu0 %v7075_v28  ;;  %v7101_v4 = vpop.permute.xlu1 %2155  ;;  %v1879_v52 = vpop.permute.xlu0 %1878  ;;  %v7141_v20 = vadd.f32 %v6044_v44, %v6675_v15  ;;  %v2609_v62 = vmul.f32 %v7063_v14, %v7061_v5  ;;  %v2610_v27 = vmul.f32 %v7047_v46, %v7061_v5 }
 0x53d   :  { %5382 = vmatprep.mubr.msk.f32.mxu1 %vm933_vm1, %v1869_v38  ;;  %5421 = vmatprep.subr.mxu1 %v1854_v16  ;;  %v7152_v54 = vadd.f32 %v6044_v44, %v6677_v19  ;;  %v2611_v15 = vmul.f32 %v7035_v29, %v7061_v5  ;;  %v7161_v35 = vadd.f32 %v6044_v44, %v6671_v8 }
 0x53e   :  { %5422 = vmatpush3.msra.mxu1 %v1854_v16  ;;  %5483 = vmatprep.subr.mxu0 %v7088_v61  ;;  %v7170_v19 = vadd.f32 %v6044_v44, %v6673_v13  ;;  %v7177_v8 = vadd.f32 %v6044_v44, %v6667_v32  ;;  %v7184_v3 = vadd.f32 %v6044_v44, %v6669_v18  ;;  %v7951_v18 = vld [vmem:[#allocation34_spill] sm:$0xff] }
 0x53f   :  { %5423 = vmatprep.subr.mxu1 %v1853_v22  ;;  %5383 = vmatmul.mubr.msk.f32.gmra.mxu1 %vm933_vm1, %v1871_v51  ;;  %v3398_v32 = vrot.slane %v6820_v1, %v6456_v31  ;;  %v7234_v26 = vadd.f32 %v7954_v48, %v7953_v43 }
 0x540   :  { %5424 = vmatpush3.msra.mxu1 %v1853_v22  ;;  %5484 = vmatpush3.xpose.msra.mxu0 %v7088_v61  ;;  %v7113_v60 = vpop.permute.xlu1 %2421  ;;  %v2420_v22 = vpop.permute.xlu0 %2419 }
 0x541   :  { %5385 = vmatprep.mubr.msk.f32.mxu1 %vm933_vm1, %v1873_v30  ;;  %5425 = vmatprep.subr.mxu1 %v1852_v23  ;;  %v3399_v13 = vmul.f32 %v7078_v41, %v3398_v32  ;;  %v3400_v1 = vmul.f32 %v7106_v53, %v3398_v32  ;;  %v3401_v37 = vmul.f32 %v7096_v50, %v3398_v32 }
 0x542   :  { %5426 = vmatpush3.msra.mxu1 %v1852_v23  ;;  %5485 = vmatprep.subr.mxu0 %v7096_v50  ;;  %v3402_v12 = vmul.f32 %v7088_v61, %v3398_v32  ;;  %v3403_v59 = vmul.f32 %v7075_v28, %v3398_v32  ;;  %v3404_v6 = vmul.f32 %v7063_v14, %v3398_v32 }
 0x543   :  { %5427 = vmatprep.subr.mxu1 %v1851_v33  ;;  %5386 = vmatmul.mubr.msk.f32.gmra.mxu1 %vm933_vm1, %v1875_v57  ;;  %v3405_v42 = vmul.f32 %v7047_v46, %v3398_v32  ;;  %v3406_v38 = vmul.f32 %v7035_v29, %v3398_v32 }
 0x544   :  { %5428 = vmatpush3.msra.mxu1 %v1851_v33  ;;  %5486 = vmatpush3.xpose.msra.mxu0 %v7096_v50  ;;  %v2418_v51 = vpop.permute.xlu1 %2417 }
 0x545   :  { %5388 = vmatprep.mubr.msk.f32.mxu1 %vm933_vm1, %v1877_v47  ;;  %5429 = vmatprep.subr.mxu1 %v1850_v58 }
 0x546   :  { %5430 = vmatpush3.msra.mxu1 %v1850_v58  ;;  %5487 = vmatprep.subr.mxu0 %v7106_v53 }
 0x547   :  { %5431 = vmatprep.subr.mxu1 %v1849_v24  ;;  %5389 = vmatmul.mubr.msk.f32.gmra.mxu1 %vm933_vm1, %v1879_v52 }
 0x548   :  { %5432 = vmatpush3.msra.mxu1 %v1849_v24  ;;  %5488 = vmatpush3.xpose.msra.mxu0 %v7106_v53  ;;  %v2416_v23 = vpop.permute.xlu1 %2415 }
 0x549   :  { %5433 = vmatprep.subr.mxu1 %v1848_v40  ;;  %5489 = vmatprep.subr.mxu0 %v7078_v41 }
 0x54a   :  { %5434 = vmatpush3.msra.mxu1 %v1848_v40 }
 0x54b   :  { %5447 = vmatprep.subr.mxu1 %v7113_v60 }
 0x54c   :  { %5490 = vmatpush3.xpose.msra.mxu0 %v7078_v41 }
 0x54d   :  { %5531 = vmatprep.subr.msk.mxu0 %vm933_vm1, %v7119_v25 }
 0x54f   :  { %5492 = vmatmul.mubr.f32.vlgmr.msra.gmra.mxu0 %v2605_v11 }
 0x550   :  { %5494 = vmatprep.mubr.f32.mxu0 %v2606_v63  ;;  %5532 = vmatpush3.xpose.msk.msra.mxu0 %vm933_vm1, %v7119_v25 }
 0x551   :  { %5533 = vmatprep.subr.msk.mxu0 %vm933_vm1, %v7130_v45 }
 0x553   :  { %5495 = vmatmul.mubr.f32.gmra.mxu0 %v2607_v21 }
 0x554   :  { %5497 = vmatprep.mubr.f32.mxu0 %v2608_v10  ;;  %5534 = vmatpush3.xpose.msk.msra.mxu0 %vm933_vm1, %v7130_v45 }
 0x555   :  { %5535 = vmatprep.subr.msk.mxu0 %vm933_vm1, %v7141_v20 }
 0x557   :  { %5498 = vmatmul.mubr.f32.gmra.mxu0 %v2609_v62 }
 0x558   :  { %5500 = vmatprep.mubr.f32.mxu0 %v2610_v27  ;;  %5536 = vmatpush3.xpose.msk.msra.mxu0 %vm933_vm1, %v7141_v20 }
 0x559   :  { %5537 = vmatprep.subr.msk.mxu0 %vm933_vm1, %v7152_v54 }
 0x55b   :  { %5501 = vmatmul.mubr.f32.gmra.mxu0 %v2611_v15 }
 0x55c   :  { %5538 = vmatpush3.xpose.msk.msra.mxu0 %vm933_vm1, %v7152_v54  ;;  %5547 = vmatprep.mubr.msk.f32.mxu0 %vm933_vm1, %v6471_v39 }
 0x55d   :  { %5539 = vmatprep.subr.msk.mxu0 %vm933_vm1, %v7161_v35 }
 0x560   :  { %5540 = vmatpush3.xpose.msk.msra.mxu0 %vm933_vm1, %v7161_v35 }
 0x561   :  { %5541 = vmatprep.subr.msk.mxu0 %vm933_vm1, %v7170_v19 }
 0x564   :  { %5542 = vmatpush3.xpose.msk.msra.mxu0 %vm933_vm1, %v7170_v19 }
 0x565   :  { %5543 = vmatprep.subr.msk.mxu0 %vm933_vm1, %v7177_v8 }
 0x568   :  { %5544 = vmatpush3.xpose.msk.msra.mxu0 %vm933_vm1, %v7177_v8 }
 0x569   :  { %5545 = vmatprep.subr.msk.mxu0 %vm933_vm1, %v7184_v3 }
 0x56c   :  { %5546 = vmatpush3.xpose.msk.msra.mxu0 %vm933_vm1, %v7184_v3 }
 0x56d   :  { %5615 = vmatprep.subr.mxu0 %v7035_v29 }
 0x56f   :  { %5548 = vmatmul.mubr.msk.f32.vlgmr.msra.gmra.mxu0 %vm933_vm1, %v6503_v56 }
 0x570   :  { %5550 = vmatprep.mubr.msk.f32.mxu0 %vm933_vm1, %v6541_v17  ;;  %5616 = vmatpush3.xpose.msra.mxu0 %v7035_v29 }
 0x571   :  { %5617 = vmatprep.subr.mxu0 %v7047_v46 }
 0x573   :  { %5551 = vmatmul.mubr.msk.f32.gmra.mxu0 %vm933_vm1, %v6563_v36 }
 0x574   :  { %5553 = vmatprep.mubr.msk.f32.mxu0 %vm933_vm1, %v6572_v49  ;;  %5618 = vmatpush3.xpose.msra.mxu0 %v7047_v46 }
 0x575   :  { %5619 = vmatprep.subr.mxu0 %v7063_v14 }
 0x577   :  { %5554 = vmatmul.mubr.msk.f32.gmra.mxu0 %vm933_vm1, %v6579_v55 }
 0x578   :  { %5556 = vmatprep.mubr.msk.f32.mxu0 %vm933_vm1, %v7951_v18  ;;  %5620 = vmatpush3.xpose.msra.mxu0 %v7063_v14 }
 0x579   :  { %5621 = vmatprep.subr.mxu0 %v7075_v28 }
 0x57b   :  { %5557 = vmatmul.mubr.msk.f32.gmra.mxu0 %vm933_vm1, %v7952_v34 }
 0x57c   :  { %5622 = vmatpush3.xpose.msra.mxu0 %v7075_v28  ;;  %5631 = vmatprep.mubr.f32.mxu0 %v3399_v13 }
 0x57d   :  { %5623 = vmatprep.subr.mxu0 %v7088_v61 }
 0x580   :  { %5624 = vmatpush3.xpose.msra.mxu0 %v7088_v61 }
 0x581   :  { %5625 = vmatprep.subr.mxu0 %v7096_v50 }
 0x584   :  { %5626 = vmatpush3.xpose.msra.mxu0 %v7096_v50 }
 0x585   :  { %5627 = vmatprep.subr.mxu0 %v7106_v53 }
 0x588   :  { %5628 = vmatpush3.xpose.msra.mxu0 %v7106_v53 }
 0x589   :  { %5629 = vmatprep.subr.mxu0 %v7078_v41 }
 0x58c   :  { %5630 = vmatpush3.xpose.msra.mxu0 %v7078_v41 }
 0x58f   :  { %5632 = vmatmul.mubr.f32.vlgmr.msra.gmra.mxu0 %v3400_v1 }
 0x590   :  { %5634 = vmatprep.mubr.f32.mxu0 %v3401_v37 }
 0x593   :  { %5635 = vmatmul.mubr.f32.gmra.mxu0 %v3402_v12 }
 0x594   :  { %5637 = vmatprep.mubr.f32.mxu0 %v3403_v59 }
 0x597   :  { %5638 = vmatmul.mubr.f32.gmra.mxu0 %v3404_v6 }
 0x598   :  { %5640 = vmatprep.mubr.f32.mxu0 %v3405_v42 }
 0x59b   :  { %5641 = vmatmul.mubr.f32.gmra.mxu0 %v3406_v38 }
 0x59c   :  { %5687 = vmatprep.mubr.msk.f32.mxu0 %vm933_vm1, %v7234_v26 }
 0x5ba   :  { %v7238_v5 = vpop.f32.mrf.mxu1 }
 0x5bc   :  { %v7240_v0 = vpop.f32.mrf.mxu1 }
 0x5ee   :  { %v5409_v58 = vpop.f32.mrf.mxu0 }
 0x5ef   :  { %v7242_v2 = vpop.f32.mrf.mxu1 }
 0x5f0   :  { %v2115_v24 = vpop.f32.mrf.mxu0 }
 0x5f1   :  { %v7244_v14 = vpop.f32.mrf.mxu1  ;;  %v2158_v11 = vmul.f32 %v7101_v4, %v2115_v24 }
 0x5f2   :  { %v5412_v52 = vpop.f32.mrf.mxu0 }
 0x5f3   :  { %v7246_v46 = vpop.f32.mrf.mxu1  ;;  %v2161_v62 = vmul.f32 %v5412_v52, %v7101_v4 }
 0x5f4   :  { %v2125_v53 = vpop.f32.mrf.mxu0 }
 0x5f5   :  { %v7248_v30 = vpop.f32.mrf.mxu1  ;;  %v2160_v13 = vmul.f32 %v7101_v4, %v2125_v53 }
 0x5f6   :  { %v5415_v40 = vpop.f32.mrf.mxu0 }
 0x5f7   :  { %v7250_v29 = vpop.f32.mrf.mxu1  ;;  %v2163_v6 = vmul.f32 %v5415_v40, %v7101_v4 }
 0x5f8   :  { %v2135_v63 = vpop.f32.mrf.mxu0 }
 0x5f9   :  { %v7252_v28 = vpop.f32.mrf.mxu1 }
 0x5fa   :  { %v5418_v1 = vpop.f32.mrf.mxu0 }
 0x5fb   :  { %v5381_v41 = vpop.f32.mrf.mxu1 }
 0x5fd   :  { %v1994_v9 = vpop.f32.mrf.mxu1 }
 0x5fe   :  { %5435 = vmatprep.mubr.msk.f32.mxu1 %vm933_vm1, %v1994_v9 }
 0x5ff   :  { %v5384_v16 = vpop.f32.mrf.mxu1  ;;  %5436 = vmatmul.mubr.msk.f32.vlgmr.msra.gmra.mxu1 %vm933_vm1, %v5381_v41 }
 0x600   :  { %5448 = vmatpush3.msra.mxu1 %v7113_v60  ;;  %v2159_v60 = vmul.f32 %v5409_v58, %v7101_v4 }
 0x601   :  { %5449 = vmatprep.subr.mxu1 %v2420_v22  ;;  %v2004_v47 = vpop.f32.mrf.mxu1 }
 0x602   :  { %5450 = vmatpush3.msra.mxu1 %v2420_v22  ;;  %5438 = vmatprep.mubr.msk.f32.mxu1 %vm933_vm1, %v2004_v47  ;;  %v2145_v22 = vpop.f32.mrf.mxu0 }
 0x603   :  { %5451 = vmatprep.subr.mxu1 %v2418_v51  ;;  %v5387_v61 = vpop.f32.mrf.mxu1  ;;  %5439 = vmatmul.mubr.msk.f32.gmra.mxu1 %vm933_vm1, %v5384_v16  ;;  %v2164_v24 = vmul.f32 %v7101_v4, %v2145_v22 }
 0x604   :  { %5452 = vmatpush3.msra.mxu1 %v2418_v51  ;;  %v2162_v51 = vmul.f32 %v7101_v4, %v2135_v63 }
 0x605   :  { %5453 = vmatprep.subr.mxu1 %v2416_v23  ;;  %v2014_v57 = vpop.f32.mrf.mxu1 }
 0x606   :  { %5454 = vmatpush3.msra.mxu1 %v2416_v23  ;;  %5441 = vmatprep.mubr.msk.f32.mxu1 %vm933_vm1, %v2014_v57 }
 0x607   :  { %v5390_v33 = vpop.f32.mrf.mxu1  ;;  %5442 = vmatmul.mubr.msk.f32.gmra.mxu1 %vm933_vm1, %v5387_v61 }
 0x609   :  { %v2024_v50 = vpop.f32.mrf.mxu1 }
 0x60a   :  { %5444 = vmatprep.mubr.msk.f32.mxu1 %vm933_vm1, %v2024_v50  ;;  %v2165_v50 = vmul.f32 %v5418_v1, %v7101_v4 }
 0x60b   :  { %5445 = vmatmul.mubr.msk.f32.gmra.mxu1 %vm933_vm1, %v5390_v33 }
 0x6bf   :  { %v5437_v44 = vpop.f32.mrf.mxu1 }
 0x6c0   :  { %v2262_v21 = vadd.f32 %v5437_v44, %v2159_v60 }
 0x6c1   :  { %v2256_v10 = vpop.f32.mrf.mxu1 }
 0x6c2   :  { %v2296_v27 = vmul.f32 0.125, %v2262_v21  ;;  %v2257_v15 = vadd.f32 %v2256_v10, %v2158_v11 }
 0x6c3   :  { %v5440_v32 = vpop.f32.mrf.mxu1 }
 0x6c4   :  { %v2295_v37 = vmul.f32 0.125, %v2257_v15  ;;  %v2272_v12 = vadd.f32 %v5440_v32, %v2161_v62  ;;  %v2304_v59 = vadd.f32 %v6880_v7, %v2296_v27 }
 0x6c5   :  { %v2266_v42 = vpop.f32.mrf.mxu1 }
 0x6c6   :  { %v2298_v38 = vmul.f32 0.125, %v2272_v12  ;;  %v2267_v48 = vadd.f32 %v2266_v42, %v2160_v13  ;;  %v2314_v41 = vsel %vm933_vm1, %v2304_v59, -inf  ;;  %v2303_v9 = vadd.f32 %v6880_v7, %v2295_v37  ;;  %v7955_v42 = vld [vmem:[#allocation39_spill] sm:$0xff] }
 0x6c7   :  { %2315 = vmax.xlane.f32.xlu1 %v2314_v41  ;;  %v5443_v16 = vpop.f32.mrf.mxu1 }
 0x6c8   :  { %v2297_v47 = vmul.f32 0.125, %v2267_v48  ;;  %v2282_v61 = vadd.f32 %v5443_v16, %v2163_v6  ;;  %v2311_v23 = vsel %vm933_vm1, %v2303_v9, -inf  ;;  %v7274_v57 = vadd.f32 %v6880_v7, %v2298_v38  ;;  %v7956_v38 = vld [vmem:[#allocation38_spill] sm:$0xff] }
 0x6c9   :  { %v2276_v33 = vpop.f32.mrf.mxu1  ;;  %2312 = vmax.xlane.f32.xlu0 %v2311_v23 }
 0x6ca   :  { %v2277_v58 = vadd.f32 %v2276_v33, %v2162_v51  ;;  %v2305_v53 = vadd.f32 %v6880_v7, %v2297_v47  ;;  %v2300_v40 = vmul.f32 0.125, %v2282_v61  ;;  %v2320_v11 = vsel %vm933_vm1, %v7274_v57, -inf }
 0x6cb   :  { %v5446_v52 = vpop.f32.mrf.mxu1 }
 0x6cc   :  { %v2299_v60 = vmul.f32 0.125, %v2277_v58  ;;  %v2292_v44 = vadd.f32 %v5446_v52, %v2165_v50  ;;  %v2317_v62 = vsel %vm933_vm1, %v2305_v53, -inf  ;;  %v2308_v32 = vadd.f32 %v6880_v7, %v2300_v40 }
 0x6cd   :  { %v2286_v63 = vpop.f32.mrf.mxu1  ;;  %2321 = vmax.xlane.f32.xlu0 %v2320_v11  ;;  %v7958_v11 = vld [vmem:[#allocation40_spill] sm:$0xff] }
 0x6ce   :  { %v2287_v21 = vadd.f32 %v2286_v63, %v2164_v24  ;;  %v2307_v10 = vadd.f32 %v6880_v7, %v2299_v60  ;;  %v2302_v27 = vmul.f32 0.125, %v2292_v44  ;;  %v2326_v37 = vsel %vm933_vm1, %v2308_v32, -inf  ;;  %v7957_v44 = vld [vmem:[#allocation41_spill] sm:$0xff] }
 0x6d0   :  { %v2301_v15 = vmul.f32 0.125, %v2287_v21  ;;  %v2323_v4 = vsel %vm933_vm1, %v2307_v10, -inf  ;;  %v2310_v12 = vadd.f32 %v6880_v7, %v2302_v27 }
 0x6d1   :  { %2324 = vmax.xlane.f32.xlu1 %v2323_v4  ;;  %2318 = vmax.xlane.f32.xlu0 %v2317_v62 }
 0x6d2   :  { %v2309_v13 = vadd.f32 %v6880_v7, %v2301_v15  ;;  %v2332_v6 = vsel %vm933_vm1, %v2310_v12, -inf }
 0x6d4   :  { %v2329_v1 = vsel %vm933_vm1, %v2309_v13, -inf }
 0x6d5   :  { %2330 = vmax.xlane.f32.xlu1 %v2329_v1  ;;  %2327 = vmax.xlane.f32.xlu0 %v2326_v37 }
 0x6d9   :  { %2333 = vmax.xlane.f32.xlu0 %v2332_v6 }
 0x6e6   :  { %2411 = vrot.lane.b32.xlu1 %v7955_v42, %s6295_s10 }
 0x6ef   :  { %2413 = vrot.lane.b32.xlu0 %v7956_v38, %s6295_s10 }
 0x750   :  { %v2316_v48 = vpop.xlane.xlu1 %2315 }
 0x751   :  { %v2336_v41 = vsub.f32 %v2304_v59, %v2316_v48 }
 0x752   :  { %v2313_v51 = vpop.xlane.xlu0 %2312 }
 0x753   :  { %v2345_v16 = vmul.f32 1.442695, %v2336_v41  ;;  %v2335_v22 = vsub.f32 %v2303_v9, %v2313_v51 }
 0x755   :  { %5940 = vpow2.f32 %v2345_v16  ;;  %v2343_v47 = vmul.f32 1.442695, %v2335_v22 }
 0x756   :  { %v2322_v61 = vpop.xlane.xlu0 %2321 }
 0x757   :  { %5942 = vpow2.f32 %v2343_v47  ;;  %v2338_v21 = vsub.f32 %v7274_v57, %v2322_v61 }
 0x759   :  { %v2349_v15 = vmul.f32 1.442695, %v2338_v21 }
 0x75a   :  { %v2319_v7 = vpop.xlane.xlu0 %2318  ;;  %v2325_v23 = vpop.xlane.xlu1 %2324 }
 0x75b   :  { %v2337_v63 = vsub.f32 %v2305_v53, %v2319_v7  ;;  %v2339_v62 = vsub.f32 %v2307_v10, %v2325_v23  ;;  %v7361_v7 = vpop.f32.mrf.mxu0 }
 0x75d   :  { %v2347_v27 = vmul.f32 1.442695, %v2337_v63  ;;  %v2351_v1 = vmul.f32 1.442695, %v2339_v62  ;;  %v7367_v23 = vpop.f32.mrf.mxu0 }
 0x75e   :  { %v2328_v33 = vpop.xlane.xlu0 %2327  ;;  %v2331_v58 = vpop.xlane.xlu1 %2330 }
 0x75f   :  { %v2340_v4 = vsub.f32 %v2308_v32, %v2328_v33  ;;  %5944 = vpow2.f32 %v2347_v27  ;;  %v2341_v37 = vsub.f32 %v2309_v13, %v2331_v58  ;;  %v7373_v33 = vpop.f32.mrf.mxu0 }
 0x760   :  { %5946 = vpow2.f32 %v2349_v15 }
 0x761   :  { %v2353_v6 = vmul.f32 1.442695, %v2340_v4  ;;  %5948 = vpow2.f32 %v2351_v1  ;;  %v2355_v38 = vmul.f32 1.442695, %v2341_v37 }
 0x762   :  { %v7294_v50 = vpop.eup %5940  ;;  %v2334_v24 = vpop.xlane.xlu0 %2333 }
 0x763   :  { %v2362_v52 = vsel %vm933_vm1, %v7294_v50, 0.0  ;;  %v2412_v60 = vpop.permute.xlu1 %2411  ;;  %v2342_v42 = vsub.f32 %v2310_v12, %v2334_v24  ;;  %5950 = vpow2.f32 %v2353_v6 }
 0x764   :  { %v7298_v40 = vpop.eup %5942  ;;  %2363 = vadd.xlane.f32.xlu0 %v2362_v52  ;;  %5952 = vpow2.f32 %v2355_v38 }
 0x765   :  { %v2359_v59 = vsel %vm933_vm1, %v7298_v40, 0.0  ;;  %v2357_v48 = vmul.f32 1.442695, %v2342_v42 }
 0x766   :  { %2360 = vadd.xlane.f32.xlu1 %v2359_v59  ;;  %v2414_v9 = vpop.permute.xlu0 %2413 }
 0x767   :  { %5455 = vmatprep.subr.mxu1 %v2414_v9  ;;  %5954 = vpow2.f32 %v2357_v48 }
 0x768   :  { %5456 = vmatpush3.msra.mxu1 %v2414_v9 }
 0x769   :  { %5457 = vmatprep.subr.mxu1 %v2412_v60 }
 0x76a   :  { %5458 = vmatpush3.msra.mxu1 %v2412_v60 }
 0x76c   :  { %v7307_v41 = vpop.eup %5944 }
 0x76d   :  { %v7309_v53 = vpop.eup %5946  ;;  %v2365_v57 = vsel %vm933_vm1, %v7307_v41, 0.0 }
 0x76e   :  { %v7313_v10 = vpop.eup %5948  ;;  %v2368_v32 = vsel %vm933_vm1, %v7309_v53, 0.0 }
 0x76f   :  { %v2371_v12 = vsel %vm933_vm1, %v7313_v10, 0.0 }
 0x770   :  { %v7317_v13 = vpop.eup %5950 }
 0x771   :  { %v7321_v51 = vpop.eup %5952  ;;  %v2374_v16 = vsel %vm933_vm1, %v7317_v13, 0.0 }
 0x772   :  { %v2377_v47 = vsel %vm933_vm1, %v7321_v51, 0.0 }
 0x774   :  { %v7325_v22 = vpop.eup %5954 }
 0x775   :  { %v2380_v61 = vsel %vm933_vm1, %v7325_v22, 0.0 }
 0x777   :  { %2407 = vrot.lane.b32.xlu1 %v7957_v44, %s6295_s10 }
 0x77a   :  { %2409 = vrot.lane.b32.xlu0 %v7958_v11, %s6295_s10 }
 0x799   :  { %2366 = vadd.xlane.f32.xlu0 %v2365_v57 }
 0x79b   :  { %2369 = vadd.xlane.f32.xlu1 %v2368_v32 }
 0x79d   :  { %2372 = vadd.xlane.f32.xlu0 %v2371_v12 }
 0x79f   :  { %2375 = vadd.xlane.f32.xlu1 %v2374_v16 }
 0x7a1   :  { %2378 = vadd.xlane.f32.xlu0 %v2377_v47 }
 0x7a3   :  { %2381 = vadd.xlane.f32.xlu1 %v2380_v61 }
 0x7b4   :  { %2735 = vrot.lane.b32.xlu1 %v6503_v56, %s6295_s10 }
 0x7b7   :  { %2733 = vrot.lane.b32.xlu0 %v6471_v39, %s6295_s10 }
 0x7b8   :  { %2739 = vrot.lane.b32.xlu1 %v6563_v36, %s6295_s10 }
 0x7bb   :  { %2737 = vrot.lane.b32.xlu0 %v6541_v17, %s6295_s10 }
 0x7bc   :  { %2743 = vrot.lane.b32.xlu1 %v6579_v55, %s6295_s10 }
 0x7bf   :  { %2741 = vrot.lane.b32.xlu0 %v6572_v49, %s6295_s10 }
 0x7c0   :  { %2747 = vrot.lane.b32.xlu1 %v7952_v34, %s6295_s10 }
 0x7c3   :  { %2745 = vrot.lane.b32.xlu0 %v7951_v18, %s6295_s10 }
 0x7c4   :  { %3558 = vrot.lane.b32.xlu1 %v7119_v25, %s6295_s10 }
 0x7c7   :  { %3556 = vrot.lane.b32.xlu0 %v7130_v45, %s6295_s10 }
 0x7c8   :  { %3554 = vrot.lane.b32.xlu1 %v7141_v20, %s6295_s10 }
 0x7cc   :  { %3552 = vrot.lane.b32.xlu1 %v7152_v54, %s6295_s10 }
 0x7ed   :  { %v2364_v39 = vpop.xlane.xlu0 %2363 }
 0x7ee   :  { %5956 = vrcp.f32 %v2364_v39  ;;  %v2720_v39 = vmul.f32 0.015625, %v7373_v33 }
 0x7ef   :  { %v2361_v56 = vpop.xlane.xlu1 %2360 }
 0x7f0   :  { %5958 = vrcp.f32 %v2361_v56 }
 0x7f1   :  { %v2410_v17 = vpop.permute.xlu0 %2409 }
 0x7f2   :  { %5459 = vmatprep.subr.mxu1 %v2410_v17 }
 0x7f3   :  { %v2408_v36 = vpop.permute.xlu1 %2407  ;;  %5460 = vmatpush3.msra.mxu1 %v2410_v17  ;;  %v2718_v17 = vmul.f32 0.015625, %v7361_v7 }
 0x7f4   :  { %5461 = vmatprep.subr.mxu1 %v2408_v36 }
 0x7f5   :  { %5462 = vmatpush3.msra.mxu1 %v2408_v36 }
 0x7f6   :  { %5503 = vmatprep.subr.msk.mxu1 %vm933_vm1, %v7119_v25 }
 0x7fb   :  { %v5957_v49 = vpop.eup %5956 }
 0x7fc   :  { %v2386_v34 = vmul.f32 %v5957_v49, %v7294_v50  ;;  %v2717_v49 = vmul.f32 0.015625, %v7367_v23 }
 0x7fd   :  { %v5959_v55 = vpop.eup %5958 }
 0x7fe   :  { %v2384_v18 = vmul.f32 %v5959_v55, %v7298_v40  ;;  %v6045_v55 = vld [vmem:[%s7913_s11 + $0x1] ss:$0 sm:$0xff] }
 0x800   :  { %5463 = vmatprep.mubr.msk.f32.mxu1 %vm933_vm1, %v2384_v18  ;;  %v7959_v18 = vld [vmem:[#allocation48_spill] sm:$0xff] }
 0x801   :  { %5464 = vmatmul.mubr.msk.f32.vlgmr.msra.gmra.mxu1 %vm933_vm1, %v2386_v34  ;;  %v7449_v34 = vadd.f32 %v6045_v55, %v7959_v18 }
 0x802   :  { %5504 = vmatpush3.xpose.msk.msra.mxu1 %vm933_vm1, %v7119_v25  ;;  %v7379_v25 = vpop.f32.mrf.mxu0 }
 0x803   :  { %5505 = vmatprep.subr.msk.mxu1 %vm933_vm1, %v7130_v45  ;;  %v2719_v56 = vmul.f32 0.015625, %v7379_v25 }
 0x806   :  { %5506 = vmatpush3.xpose.msk.msra.mxu1 %vm933_vm1, %v7130_v45  ;;  %v5499_v45 = vpop.f32.mrf.mxu0 }
 0x807   :  { %5507 = vmatprep.subr.msk.mxu1 %vm933_vm1, %v7141_v20 }
 0x808   :  { %v2698_v50 = vpop.f32.mrf.mxu0 }
 0x809   :  { %v2721_v47 = vmul.f32 0.015625, %v2698_v50 }
 0x80a   :  { %5508 = vmatpush3.xpose.msk.msra.mxu1 %vm933_vm1, %v7141_v20  ;;  %v5502_v20 = vpop.f32.mrf.mxu0 }
 0x80b   :  { %5509 = vmatprep.subr.msk.mxu1 %vm933_vm1, %v7152_v54 }
 0x80e   :  { %5510 = vmatpush3.xpose.msk.msra.mxu1 %vm933_vm1, %v7152_v54  ;;  %v2724_v54 = vmul.f32 0.015625, %v5502_v20 }
 0x80f   :  { %5511 = vmatprep.subr.msk.mxu1 %vm933_vm1, %v7161_v35 }
 0x812   :  { %5512 = vmatpush3.xpose.msk.msra.mxu1 %vm933_vm1, %v7161_v35 }
 0x813   :  { %5513 = vmatprep.subr.msk.mxu1 %vm933_vm1, %v7170_v19 }
 0x816   :  { %5514 = vmatpush3.xpose.msk.msra.mxu1 %vm933_vm1, %v7170_v19 }
 0x817   :  { %5515 = vmatprep.subr.msk.mxu1 %vm933_vm1, %v7177_v8 }
 0x81a   :  { %5516 = vmatpush3.xpose.msk.msra.mxu1 %vm933_vm1, %v7177_v8 }
 0x81b   :  { %5517 = vmatprep.subr.msk.mxu1 %vm933_vm1, %v7184_v3 }
 0x81e   :  { %5518 = vmatpush3.xpose.msk.msra.mxu1 %vm933_vm1, %v7184_v3 }
 0x81f   :  { %5559 = vmatprep.subr.mxu1 %v2724_v54 }
 0x822   :  { %v2367_v58 = vpop.xlane.xlu0 %2366 }
 0x823   :  { %5960 = vrcp.f32 %v2367_v58 }
 0x824   :  { %v2370_v24 = vpop.xlane.xlu1 %2369 }
 0x825   :  { %5962 = vrcp.f32 %v2370_v24 }
 0x826   :  { %v2373_v52 = vpop.xlane.xlu0 %2372 }
 0x827   :  { %5964 = vrcp.f32 %v2373_v52 }
 0x828   :  { %v2376_v40 = vpop.xlane.xlu1 %2375 }
 0x829   :  { %5966 = vrcp.f32 %v2376_v40 }
 0x82a   :  { %v2379_v59 = vpop.xlane.xlu0 %2378 }
 0x82b   :  { %5968 = vrcp.f32 %v2379_v59 }
 0x82c   :  { %v2382_v9 = vpop.xlane.xlu1 %2381 }
 0x82d   :  { %5970 = vrcp.f32 %v2382_v9 }
 0x82e   :  { %v2734_v60 = vpop.permute.xlu0 %2733 }
 0x830   :  { %v5961_v44 = vpop.eup %5960  ;;  %v2736_v11 = vpop.permute.xlu1 %2735 }
 0x831   :  { %v2388_v63 = vmul.f32 %v5961_v44, %v7307_v41 }
 0x832   :  { %v5963_v21 = vpop.eup %5962  ;;  %v2738_v62 = vpop.permute.xlu0 %2737 }
 0x833   :  { %5466 = vmatprep.mubr.msk.f32.mxu1 %vm933_vm1, %v2388_v63  ;;  %v2390_v27 = vmul.f32 %v5963_v21, %v7309_v53  ;;  %v7961_v63 = vld [vmem:[#allocation46_spill] sm:$0xff] }
 0x834   :  { %v5965_v15 = vpop.eup %5964  ;;  %v2740_v4 = vpop.permute.xlu1 %2739  ;;  %v7485_v21 = vadd.f32 %v6045_v55, %v7961_v63 }
 0x835   :  { %5467 = vmatmul.mubr.msk.f32.gmra.mxu1 %vm933_vm1, %v2390_v27  ;;  %v2392_v1 = vmul.f32 %v5965_v15, %v7313_v10  ;;  %v2708_v10 = vpop.f32.mrf.mxu0  ;;  %v7962_v27 = vld [vmem:[#allocation47_spill] sm:$0xff] }
 0x836   :  { %v5967_v37 = vpop.eup %5966  ;;  %v2742_v6 = vpop.permute.xlu0 %2741  ;;  %v7491_v15 = vadd.f32 %v6045_v55, %v7962_v27 }
 0x837   :  { %5469 = vmatprep.mubr.msk.f32.mxu1 %vm933_vm1, %v2392_v1  ;;  %v2394_v42 = vmul.f32 %v5967_v37, %v7317_v13  ;;  %v2723_v13 = vmul.f32 0.015625, %v2708_v10  ;;  %v7963_v1 = vld [vmem:[#allocation44_spill] sm:$0xff]  ;;  %v5549_v10 = vpop.f32.mrf.mxu0 }
 0x838   :  { %v5969_v38 = vpop.eup %5968  ;;  %v2744_v48 = vpop.permute.xlu1 %2743  ;;  %v7497_v37 = vadd.f32 %v6045_v55, %v7963_v1 }
 0x839   :  { %5470 = vmatmul.mubr.msk.f32.gmra.mxu1 %vm933_vm1, %v2394_v42  ;;  %v2396_v41 = vmul.f32 %v5969_v38, %v7321_v51  ;;  %v2722_v51 = vmul.f32 0.015625, %v5499_v45  ;;  %v7964_v42 = vld [vmem:[#allocation45_spill] sm:$0xff] }
 0x83a   :  { %v5971_v57 = vpop.eup %5970  ;;  %v2746_v12 = vpop.permute.xlu0 %2745  ;;  %v7503_v38 = vadd.f32 %v6045_v55, %v7964_v42 }
 0x83b   :  { %5472 = vmatprep.mubr.msk.f32.mxu1 %vm933_vm1, %v2396_v41  ;;  %v2398_v53 = vmul.f32 %v5971_v57, %v7325_v22  ;;  %v7965_v41 = vld [vmem:[#allocation42_spill] sm:$0xff] }
 0x83c   :  { %v2748_v32 = vpop.permute.xlu1 %2747  ;;  %v7509_v57 = vadd.f32 %v6045_v55, %v7965_v41 }
 0x83d   :  { %5473 = vmatmul.mubr.msk.f32.gmra.mxu1 %vm933_vm1, %v2398_v53 }
 0x83e   :  { %5519 = vmatprep.mubr.msk.f32.mxu1 %vm933_vm1, %v2734_v60  ;;  %v7418_v22 = vpop.permute.xlu0 %3556  ;;  %v7960_v60 = vld [vmem:[#allocation49_spill] sm:$0xff] }
 0x83f   :  { %v7480_v44 = vadd.f32 %v6045_v55, %v7960_v60 }
 0x840   :  { %v7412_v16 = vpop.permute.xlu1 %3558 }
 0x841   :  { %5520 = vmatmul.mubr.msk.f32.vlgmr.msra.gmra.mxu1 %vm933_vm1, %v2736_v11  ;;  %5671 = vmatprep.subr.msk.mxu0 %vm933_vm1, %v7412_v16 }
 0x842   :  { %5560 = vmatpush3.msra.mxu1 %v2724_v54  ;;  %5522 = vmatprep.mubr.msk.f32.mxu1 %vm933_vm1, %v2738_v62 }
 0x843   :  { %5561 = vmatprep.subr.mxu1 %v2723_v13  ;;  %5672 = vmatpush3.xpose.msk.msra.mxu0 %vm933_vm1, %v7412_v16 }
 0x844   :  { %5562 = vmatpush3.msra.mxu1 %v2723_v13  ;;  %5673 = vmatprep.subr.msk.mxu0 %vm933_vm1, %v7418_v22  ;;  %v7424_v61 = vpop.permute.xlu1 %3554  ;;  %v2976_v13 = vpop.f32.mrf.mxu0 }
 0x845   :  { %5563 = vmatprep.subr.mxu1 %v2722_v51  ;;  %5523 = vmatmul.mubr.msk.f32.gmra.mxu1 %vm933_vm1, %v2740_v4 }
 0x846   :  { %5564 = vmatpush3.msra.mxu1 %v2722_v51  ;;  %5525 = vmatprep.mubr.msk.f32.mxu1 %vm933_vm1, %v2742_v6  ;;  %v5552_v51 = vpop.f32.mrf.mxu0 }
 0x847   :  { %5565 = vmatprep.subr.mxu1 %v2721_v47  ;;  %5674 = vmatpush3.xpose.msk.msra.mxu0 %vm933_vm1, %v7418_v22 }
 0x848   :  { %5566 = vmatpush3.msra.mxu1 %v2721_v47  ;;  %5675 = vmatprep.subr.msk.mxu0 %vm933_vm1, %v7424_v61  ;;  %v7437_v36 = vpop.permute.xlu1 %3552  ;;  %v2986_v47 = vpop.f32.mrf.mxu0 }
 0x849   :  { %5567 = vmatprep.subr.mxu1 %v2720_v39  ;;  %5526 = vmatmul.mubr.msk.f32.gmra.mxu1 %vm933_vm1, %v2744_v48 }
 0x84a   :  { %5568 = vmatpush3.msra.mxu1 %v2720_v39  ;;  %5528 = vmatprep.mubr.msk.f32.mxu1 %vm933_vm1, %v2746_v12  ;;  %v7967_v39 = vld [vmem:[#allocation50_spill] sm:$0xff] }
 0x84b   :  { %5569 = vmatprep.subr.mxu1 %v2719_v56  ;;  %5676 = vmatpush3.xpose.msk.msra.mxu0 %vm933_vm1, %v7424_v61 }
 0x84c   :  { %5570 = vmatpush3.msra.mxu1 %v2719_v56  ;;  %5677 = vmatprep.subr.msk.mxu0 %vm933_vm1, %v7437_v36  ;;  %v7526_v56 = vrot.slane %v7967_v39, %v6456_v31 }
 0x84d   :  { %5571 = vmatprep.subr.mxu1 %v2718_v17  ;;  %5529 = vmatmul.mubr.msk.f32.gmra.mxu1 %vm933_vm1, %v2748_v32  ;;  %v7966_v32 = vld [vmem:[#allocation43_spill] sm:$0xff] }
 0x84e   :  { %5572 = vmatpush3.msra.mxu1 %v2718_v17  ;;  %v7515_v12 = vadd.f32 %v6045_v55, %v7966_v32  ;;  %v5555_v17 = vpop.f32.mrf.mxu0  ;;  %v3019_v18 = vmul.f32 %v7526_v56, %v2976_v13  ;;  %v3022_v63 = vmul.f32 %v5552_v51, %v7526_v56 }
 0x84f   :  { %5573 = vmatprep.subr.mxu1 %v2717_v49  ;;  %5678 = vmatpush3.xpose.msk.msra.mxu0 %vm933_vm1, %v7437_v36  ;;  %v3024_v41 = vmul.f32 %v5555_v17, %v7526_v56 }
 0x850   :  { %5574 = vmatpush3.msra.mxu1 %v2717_v49  ;;  %v3020_v49 = vmul.f32 %v5549_v10, %v7526_v56 }
 0x851   :  { %5587 = vmatprep.subr.mxu1 %v7449_v34 }
 0x8c1   :  { %v7454_v7 = vpop.f32.mrf.mxu1 }
 0x8c3   :  { %v7456_v23 = vpop.f32.mrf.mxu1 }
 0x8c4   :  { %v5860_v33 = vpack.i.bf16 %v7454_v7, %v7456_v23  ;;  %v4264_v7 = vld [vmem:[#allocation13] sm:$0xff] }
 0x8f5   :  { %v7460_v25 = vpop.f32.mrf.mxu1 }
 0x8f7   :  { %v7462_v45 = vpop.f32.mrf.mxu1 }
 0x8f8   :  { %v5865_v50 = vpack.i.bf16 %v7460_v25, %v7462_v45 }
 0x8f9   :  { %v7466_v20 = vpop.f32.mrf.mxu1 }
 0x8fb   :  { %v7468_v54 = vpop.f32.mrf.mxu1 }
 0x8fc   :  { %v5870_v58 = vpack.i.bf16 %v7466_v20, %v7468_v54 }
 0x8fd   :  { %v7472_v24 = vpop.f32.mrf.mxu1 }
 0x8ff   :  { %v7474_v52 = vpop.f32.mrf.mxu1 }
 0x900   :  { %v7975_v23 = vpack.i.bf16 %v7472_v24, %v7474_v52 }
 0x901   :  { %v5521_v59 = vpop.f32.mrf.mxu1 }
 0x903   :  { %v2855_v9 = vpop.f32.mrf.mxu1 }
 0x904   :  { %5575 = vmatprep.mubr.msk.f32.mxu1 %vm933_vm1, %v2855_v9 }
 0x905   :  { %v5524_v11 = vpop.f32.mrf.mxu1  ;;  %5576 = vmatmul.mubr.msk.f32.vlgmr.msra.gmra.mxu1 %vm933_vm1, %v5521_v59  ;;  %v2996_v59 = vpop.f32.mrf.mxu0 }
 0x906   :  { %5588 = vmatpush3.msra.mxu1 %v7449_v34  ;;  %v3023_v51 = vmul.f32 %v7526_v56, %v2996_v59 }
 0x907   :  { %5589 = vmatprep.subr.mxu1 %v7480_v44  ;;  %v2865_v62 = vpop.f32.mrf.mxu1  ;;  %v5558_v1 = vpop.f32.mrf.mxu0 }
 0x908   :  { %5590 = vmatpush3.msra.mxu1 %v7480_v44  ;;  %5578 = vmatprep.mubr.msk.f32.mxu1 %vm933_vm1, %v2865_v62 }
 0x909   :  { %5591 = vmatprep.subr.mxu1 %v7485_v21  ;;  %v5527_v4 = vpop.f32.mrf.mxu1  ;;  %5579 = vmatmul.mubr.msk.f32.gmra.mxu1 %vm933_vm1, %v5524_v11  ;;  %v7533_v11 = vld [vmem:[%s7906_s4 + $0x1] ss:$0 sm:$0xff] }
 0x90a   :  { %5592 = vmatpush3.msra.mxu1 %v7485_v21 }
 0x90b   :  { %5593 = vmatprep.subr.mxu1 %v7491_v15  ;;  %v2875_v6 = vpop.f32.mrf.mxu1 }
 0x90c   :  { %5594 = vmatpush3.msra.mxu1 %v7491_v15  ;;  %5581 = vmatprep.mubr.msk.f32.mxu1 %vm933_vm1, %v2875_v6 }
 0x90d   :  { %5595 = vmatprep.subr.mxu1 %v7497_v37  ;;  %v5530_v48 = vpop.f32.mrf.mxu1  ;;  %5582 = vmatmul.mubr.msk.f32.gmra.mxu1 %vm933_vm1, %v5527_v4  ;;  %v3021_v4 = vmul.f32 %v7526_v56, %v2986_v47 }
 0x90e   :  { %5596 = vmatpush3.msra.mxu1 %v7497_v37 }
 0x90f   :  { %5597 = vmatprep.subr.mxu1 %v7503_v38  ;;  %v2885_v53 = vpop.f32.mrf.mxu1 }
 0x910   :  { %5598 = vmatpush3.msra.mxu1 %v7503_v38  ;;  %5584 = vmatprep.mubr.msk.f32.mxu1 %vm933_vm1, %v2885_v53 }
 0x911   :  { %5599 = vmatprep.subr.mxu1 %v7509_v57  ;;  %5585 = vmatmul.mubr.msk.f32.gmra.mxu1 %vm933_vm1, %v5530_v48 }
 0x912   :  { %5600 = vmatpush3.msra.mxu1 %v7509_v57 }
 0x913   :  { %5601 = vmatprep.subr.mxu1 %v7515_v12 }
 0x914   :  { %5602 = vmatpush3.msra.mxu1 %v7515_v12 }
 0x915   :  { %5643 = vmatprep.subr.msk.mxu1 %vm933_vm1, %v7412_v16 }
 0x9c5   :  { %v5577_v55 = vpop.f32.mrf.mxu1 }
 0x9c6   :  { %v3123_v9 = vadd.f32 %v5577_v55, %v3020_v49  ;;  %v3006_v55 = vpop.f32.mrf.mxu0 }
 0x9c7   :  { %v3117_v60 = vpop.f32.mrf.mxu1 }
 0x9c8   :  { %v3157_v62 = vmul.f32 0.125, %v3123_v9  ;;  %v3118_v27 = vadd.f32 %v3117_v60, %v3019_v18 }
 0x9c9   :  { %v5580_v31 = vpop.f32.mrf.mxu1 }
 0x9ca   :  { %v3156_v6 = vmul.f32 0.125, %v3118_v27  ;;  %v3133_v42 = vadd.f32 %v5580_v31, %v3022_v63  ;;  %v3171_v48 = vadd.f32 %v7533_v11, %v3157_v62  ;;  %v3026_v63 = vmul.f32 %v5558_v1, %v7526_v56 }
 0x9cb   :  { %v3127_v53 = vpop.f32.mrf.mxu1  ;;  %v3025_v27 = vmul.f32 %v7526_v56, %v3006_v55 }
 0x9cc   :  { %v3159_v32 = vmul.f32 0.125, %v3133_v42  ;;  %v3128_v10 = vadd.f32 %v3127_v53, %v3021_v4  ;;  %v3181_v13 = vsel %vm933_vm1, %v3171_v48, -inf  ;;  %v3170_v39 = vadd.f32 %v7533_v11, %v3156_v6 }
 0x9cd   :  { %3182 = vmax.xlane.f32.xlu1 %v3181_v13  ;;  %v5583_v49 = vpop.f32.mrf.mxu1 }
 0x9ce   :  { %v3158_v47 = vmul.f32 0.125, %v3128_v10  ;;  %v3143_v18 = vadd.f32 %v5583_v49, %v3024_v41  ;;  %v3178_v9 = vsel %vm933_vm1, %v3170_v39, -inf  ;;  %v7544_v60 = vadd.f32 %v7533_v11, %v3159_v32 }
 0x9cf   :  { %v3137_v17 = vpop.f32.mrf.mxu1  ;;  %3179 = vmax.xlane.f32.xlu0 %v3178_v9 }
 0x9d0   :  { %v3138_v62 = vadd.f32 %v3137_v17, %v3023_v51  ;;  %v3172_v59 = vadd.f32 %v7533_v11, %v3158_v47  ;;  %v3161_v4 = vmul.f32 0.125, %v3143_v18  ;;  %v3187_v41 = vsel %vm933_vm1, %v7544_v60, -inf }
 0x9d1   :  { %v5586_v31 = vpop.f32.mrf.mxu1 }
 0x9d2   :  { %v3160_v6 = vmul.f32 0.125, %v3138_v62  ;;  %v3153_v42 = vadd.f32 %v5586_v31, %v3026_v63  ;;  %v3184_v13 = vsel %vm933_vm1, %v3172_v59, -inf  ;;  %v3175_v55 = vadd.f32 %v7533_v11, %v3161_v4 }
 0x9d3   :  { %v3147_v53 = vpop.f32.mrf.mxu1  ;;  %3188 = vmax.xlane.f32.xlu0 %v3187_v41 }
 0x9d4   :  { %v3148_v32 = vadd.f32 %v3147_v53, %v3025_v27  ;;  %v3174_v10 = vadd.f32 %v7533_v11, %v3160_v6  ;;  %v3163_v1 = vmul.f32 0.125, %v3153_v42  ;;  %v3193_v9 = vsel %vm933_vm1, %v3175_v55, -inf }
 0x9d6   :  { %v3162_v51 = vmul.f32 0.125, %v3148_v32  ;;  %v3190_v49 = vsel %vm933_vm1, %v3174_v10, -inf  ;;  %v3177_v17 = vadd.f32 %v7533_v11, %v3163_v1 }
 0x9d7   :  { %3191 = vmax.xlane.f32.xlu1 %v3190_v49  ;;  %3185 = vmax.xlane.f32.xlu0 %v3184_v13 }
 0x9d8   :  { %v3176_v47 = vadd.f32 %v7533_v11, %v3162_v51  ;;  %v3199_v63 = vsel %vm933_vm1, %v3177_v17, -inf }
 0x9da   :  { %v3196_v18 = vsel %vm933_vm1, %v3176_v47, -inf }
 0x9db   :  { %3197 = vmax.xlane.f32.xlu1 %v3196_v18  ;;  %3194 = vmax.xlane.f32.xlu0 %v3193_v9 }
 0x9df   :  { %3200 = vmax.xlane.f32.xlu0 %v3199_v63 }
 0x9ec   :  { %3548 = vrot.lane.b32.xlu1 %v7170_v19, %s6295_s10 }
 0x9f5   :  { %3550 = vrot.lane.b32.xlu0 %v7161_v35, %s6295_s10 }
 0xa56   :  { %v3183_v62 = vpop.xlane.xlu1 %3182 }
 0xa57   :  { %v3203_v27 = vsub.f32 %v3171_v48, %v3183_v62 }
 0xa58   :  { %v3180_v31 = vpop.xlane.xlu0 %3179 }
 0xa59   :  { %v3212_v4 = vmul.f32 1.442695, %v3203_v27  ;;  %v3202_v6 = vsub.f32 %v3170_v39, %v3180_v31 }
 0xa5b   :  { %5972 = vpow2.f32 %v3212_v4  ;;  %v3210_v42 = vmul.f32 1.442695, %v3202_v6 }
 0xa5c   :  { %v3189_v41 = vpop.xlane.xlu0 %3188 }
 0xa5d   :  { %5974 = vpow2.f32 %v3210_v42  ;;  %v3205_v9 = vsub.f32 %v7544_v60, %v3189_v41 }
 0xa5f   :  { %v3216_v62 = vmul.f32 1.442695, %v3205_v9  ;;  %v7969_v9 = vld [vmem:[#allocation31_spill] sm:$0xff] }
 0xa60   :  { %v3186_v53 = vpop.xlane.xlu0 %3185  ;;  %v3192_v32 = vpop.xlane.xlu1 %3191 }
 0xa61   :  { %v3204_v63 = vsub.f32 %v3172_v59, %v3186_v53  ;;  %v3206_v31 = vsub.f32 %v3174_v10, %v3192_v32  ;;  %5976 = vpow2.f32 %v3216_v62  ;;  %v7970_v62 = vld [vmem:[#allocation30_spill] sm:$0xff] }
 0xa63   :  { %v3214_v4 = vmul.f32 1.442695, %v3204_v63  ;;  %v412_v63 = vadd.f32 %v7969_v9, %v7953_v43 }
 0xa64   :  { %v3195_v13 = vpop.xlane.xlu0 %3194  ;;  %v3198_v51 = vpop.xlane.xlu1 %3197 }
 0xa65   :  { %v3207_v27 = vsub.f32 %v3175_v55, %v3195_v13  ;;  %5978 = vpow2.f32 %v3214_v4 }
 0xa67   :  { %v3220_v6 = vmul.f32 1.442695, %v3207_v27  ;;  %v406_v27 = vadd.f32 %v7970_v62, %v7953_v43 }
 0xa68   :  { %v7564_v1 = vpop.eup %5972  ;;  %v3201_v49 = vpop.xlane.xlu0 %3200 }
 0xa69   :  { %v3229_v19 = vsel %vm933_vm1, %v7564_v1, 0.0  ;;  %v7576_v18 = vpop.permute.xlu1 %3548  ;;  %v3209_v42 = vsub.f32 %v3177_v17, %v3201_v49  ;;  %5980 = vpow2.f32 %v3220_v6  ;;  %v7972_v6 = vld [vmem:[#allocation32_spill] sm:$0xff] }
 0xa6a   :  { %v7568_v35 = vpop.eup %5974  ;;  %3230 = vadd.xlane.f32.xlu0 %v3229_v19  ;;  %v3218_v19 = vmul.f32 1.442695, %v3206_v31  ;;  %v7971_v31 = vld [vmem:[#allocation33_spill] sm:$0xff] }
 0xa6b   :  { %v3226_v48 = vsel %vm933_vm1, %v7568_v35, 0.0  ;;  %v3224_v40 = vmul.f32 1.442695, %v3209_v42  ;;  %v424_v4 = vadd.f32 %v7971_v31, %v7953_v43  ;;  %v418_v42 = vadd.f32 %v7972_v6, %v7953_v43 }
 0xa6c   :  { %3227 = vadd.xlane.f32.xlu1 %v3226_v48  ;;  %v7572_v39 = vpop.permute.xlu0 %3550  ;;  %v3208_v48 = vsub.f32 %v3176_v47, %v3198_v51  ;;  %5982 = vpow2.f32 %v3218_v19  ;;  %v7968_v51 = vld [vmem:[#allocation29_spill] sm:$0xff] }
 0xa6d   :  { %5679 = vmatprep.subr.msk.mxu0 %vm933_vm1, %v7572_v39  ;;  %5984 = vpow2.f32 %v3224_v40  ;;  %v400_v49 = vadd.f32 %v7968_v51, %v7953_v43  ;;  %v7973_v19 = vld [vmem:[#allocation37_spill] sm:$0xff]  ;;  %v7650_v51 = vpop.f32.mrf.mxu0 }
 0xa6e   :  { %5680 = vmatpush3.xpose.msk.msra.mxu0 %vm933_vm1, %v7572_v39 }
 0xa6f   :  { %5681 = vmatprep.subr.msk.mxu0 %vm933_vm1, %v7576_v18 }
 0xa72   :  { %5682 = vmatpush3.xpose.msk.msra.mxu0 %vm933_vm1, %v7576_v18 }
 0xa7d   :  { %3544 = vrot.lane.b32.xlu1 %v7184_v3, %s6295_s10  ;;  %v3222_v3 = vmul.f32 1.442695, %v3208_v48  ;;  %v436_v48 = vadd.f32 %v7973_v19, %v7953_v43 }
 0xa7f   :  { %5986 = vpow2.f32 %v3222_v3 }
 0xa80   :  { %3546 = vrot.lane.b32.xlu0 %v7177_v8, %s6295_s10  ;;  %v7589_v8 = vpop.eup %5976 }
 0xa81   :  { %v7591_v60 = vpop.eup %5978  ;;  %v3235_v59 = vsel %vm933_vm1, %v7589_v8, 0.0 }
 0xa82   :  { %v7595_v10 = vpop.eup %5980  ;;  %v3232_v55 = vsel %vm933_vm1, %v7591_v60, 0.0 }
 0xa83   :  { %v7599_v47 = vpop.eup %5982  ;;  %v3241_v40 = vsel %vm933_vm1, %v7595_v10, 0.0 }
 0xa84   :  { %v7603_v17 = vpop.eup %5984  ;;  %v3238_v41 = vsel %vm933_vm1, %v7599_v47, 0.0 }
 0xa85   :  { %v3247_v32 = vsel %vm933_vm1, %v7603_v17, 0.0 }
 0xa8c   :  { %v7607_v53 = vpop.eup %5986 }
 0xa8d   :  { %v3244_v13 = vsel %vm933_vm1, %v7607_v53, 0.0 }
 0xa9f   :  { %3236 = vadd.xlane.f32.xlu0 %v3235_v59 }
 0xaa1   :  { %3233 = vadd.xlane.f32.xlu1 %v3232_v55 }
 0xaa3   :  { %3242 = vadd.xlane.f32.xlu0 %v3241_v40 }
 0xaa5   :  { %3239 = vadd.xlane.f32.xlu1 %v3238_v41 }
 0xaa7   :  { %3248 = vadd.xlane.f32.xlu0 %v3247_v32 }
 0xaa9   :  { %3245 = vadd.xlane.f32.xlu1 %v3244_v13 }
 0xaba   :  { %3530 = vrot.lane.b32.xlu1 %v400_v49, %s6295_s10 }
 0xabd   :  { %3528 = vrot.lane.b32.xlu0 %v7234_v26, %s6295_s10  ;;  %v7974_v26 = vld [vmem:[#allocation35_spill] sm:$0xff] }
 0xabe   :  { %3534 = vrot.lane.b32.xlu1 %v412_v63, %s6295_s10  ;;  %v430_v3 = vadd.f32 %v7974_v26, %v7953_v43 }
 0xac1   :  { %3532 = vrot.lane.b32.xlu0 %v406_v27, %s6295_s10 }
 0xac2   :  { %3538 = vrot.lane.b32.xlu1 %v424_v4, %s6295_s10 }
 0xac5   :  { %3536 = vrot.lane.b32.xlu0 %v418_v42, %s6295_s10 }
 0xac6   :  { %3542 = vrot.lane.b32.xlu1 %v436_v48, %s6295_s10 }
 0xac9   :  { %3540 = vrot.lane.b32.xlu0 %v430_v3, %s6295_s10 }
 0xacd   :  { %3819 = vrot.lane.b32.xlu0 %v7526_v56, %s6295_s10 }
 0xaf3   :  { %v3231_v59 = vpop.xlane.xlu0 %3230 }
 0xaf4   :  { %5988 = vrcp.f32 %v3231_v59 }
 0xaf5   :  { %v3228_v55 = vpop.xlane.xlu1 %3227 }
 0xaf6   :  { %5990 = vrcp.f32 %v3228_v55 }
 0xaf7   :  { %v3547_v40 = vpop.permute.xlu0 %3546 }
 0xaf8   :  { %5683 = vmatprep.subr.msk.mxu0 %vm933_vm1, %v3547_v40 }
 0xaf9   :  { %v3545_v41 = vpop.permute.xlu1 %3544  ;;  %5684 = vmatpush3.xpose.msk.msra.mxu0 %vm933_vm1, %v3547_v40 }
 0xafa   :  { %5685 = vmatprep.subr.msk.mxu0 %vm933_vm1, %v3545_v41 }
 0xafd   :  { %5686 = vmatpush3.xpose.msk.msra.mxu0 %vm933_vm1, %v3545_v41 }
 0xb00   :  { %5688 = vmatmul.mubr.msk.f32.vlgmr.msra.gmra.mxu0 %vm933_vm1, %v400_v49 }
 0xb01   :  { %5690 = vmatprep.mubr.msk.f32.mxu0 %vm933_vm1, %v406_v27  ;;  %v5989_v43 = vpop.eup %5988 }
 0xb02   :  { %v3253_v13 = vmul.f32 %v5989_v43, %v7564_v1 }
 0xb03   :  { %v5991_v56 = vpop.eup %5990 }
 0xb04   :  { %5691 = vmatmul.mubr.msk.f32.gmra.mxu0 %vm933_vm1, %v412_v63  ;;  %v3251_v32 = vmul.f32 %v5991_v56, %v7568_v35  ;;  %v7658_v35 = vpop.f32.mrf.mxu0 }
 0xb05   :  { %5693 = vmatprep.mubr.msk.f32.mxu0 %vm933_vm1, %v418_v42 }
 0xb06   :  { %5603 = vmatprep.mubr.msk.f32.mxu1 %vm933_vm1, %v3251_v32  ;;  %v7665_v1 = vpop.f32.mrf.mxu0 }
 0xb07   :  { %5604 = vmatmul.mubr.msk.f32.vlgmr.msra.gmra.mxu1 %vm933_vm1, %v3253_v13 }
 0xb08   :  { %5644 = vmatpush3.xpose.msk.msra.mxu1 %vm933_vm1, %v7412_v16  ;;  %5694 = vmatmul.mubr.msk.f32.gmra.mxu0 %vm933_vm1, %v424_v4  ;;  %v7671_v16 = vpop.f32.mrf.mxu0 }
 0xb09   :  { %5645 = vmatprep.subr.msk.mxu1 %vm933_vm1, %v7418_v22  ;;  %5696 = vmatprep.mubr.msk.f32.mxu0 %vm933_vm1, %v430_v3 }
 0xb0c   :  { %5646 = vmatpush3.xpose.msk.msra.mxu1 %vm933_vm1, %v7418_v22  ;;  %5697 = vmatmul.mubr.msk.f32.gmra.mxu0 %vm933_vm1, %v436_v48  ;;  %v5639_v22 = vpop.f32.mrf.mxu0 }
 0xb0d   :  { %5647 = vmatprep.subr.msk.mxu1 %vm933_vm1, %v7424_v61  ;;  %v3517_v32 = vmul.f32 0.015625, %v5639_v22  ;;  %v3513_v22 = vmul.f32 0.015625, %v7650_v51 }
 0xb0e   :  { %v3493_v49 = vpop.f32.mrf.mxu0 }
 0xb10   :  { %5648 = vmatpush3.xpose.msk.msra.mxu1 %vm933_vm1, %v7424_v61  ;;  %v5642_v61 = vpop.f32.mrf.mxu0 }
 0xb11   :  { %5649 = vmatprep.subr.msk.mxu1 %vm933_vm1, %v7437_v36 }
 0xb14   :  { %5650 = vmatpush3.xpose.msk.msra.mxu1 %vm933_vm1, %v7437_v36  ;;  %v3519_v36 = vmul.f32 0.015625, %v5642_v61  ;;  %v3515_v61 = vmul.f32 0.015625, %v7665_v1 }
 0xb15   :  { %5651 = vmatprep.subr.msk.mxu1 %vm933_vm1, %v7572_v39 }
 0xb18   :  { %5652 = vmatpush3.xpose.msk.msra.mxu1 %vm933_vm1, %v7572_v39 }
 0xb19   :  { %5653 = vmatprep.subr.msk.mxu1 %vm933_vm1, %v7576_v18 }
 0xb1c   :  { %5654 = vmatpush3.xpose.msk.msra.mxu1 %vm933_vm1, %v7576_v18 }
 0xb1d   :  { %5655 = vmatprep.subr.msk.mxu1 %vm933_vm1, %v3547_v40 }
 0xb20   :  { %5656 = vmatpush3.xpose.msk.msra.mxu1 %vm933_vm1, %v3547_v40 }
 0xb21   :  { %5657 = vmatprep.subr.msk.mxu1 %vm933_vm1, %v3545_v41 }
 0xb24   :  { %5658 = vmatpush3.xpose.msk.msra.mxu1 %vm933_vm1, %v3545_v41 }
 0xb25   :  { %5699 = vmatprep.subr.mxu1 %v3519_v36 }
 0xb28   :  { %v3237_v9 = vpop.xlane.xlu0 %3236 }
 0xb29   :  { %5992 = vrcp.f32 %v3237_v9 }
 0xb2a   :  { %v3234_v39 = vpop.xlane.xlu1 %3233 }
 0xb2b   :  { %5994 = vrcp.f32 %v3234_v39  ;;  %v3512_v39 = vmul.f32 0.015625, %v7658_v35 }
 0xb2c   :  { %v3243_v63 = vpop.xlane.xlu0 %3242 }
 0xb2d   :  { %5996 = vrcp.f32 %v3243_v63 }
 0xb2e   :  { %v3240_v62 = vpop.xlane.xlu1 %3239 }
 0xb2f   :  { %5998 = vrcp.f32 %v3240_v62 }
 0xb30   :  { %v3249_v18 = vpop.xlane.xlu0 %3248 }
 0xb31   :  { %6000 = vrcp.f32 %v3249_v18 }
 0xb32   :  { %v3246_v27 = vpop.xlane.xlu1 %3245 }
 0xb33   :  { %6002 = vrcp.f32 %v3246_v27 }
 0xb34   :  { %v3529_v3 = vpop.permute.xlu0 %3528 }
 0xb36   :  { %v5993_v31 = vpop.eup %5992 }
 0xb37   :  { %v3257_v42 = vmul.f32 %v5993_v31, %v7589_v8 }
 0xb38   :  { %v5995_v4 = vpop.eup %5994  ;;  %v3533_v43 = vpop.permute.xlu0 %3532 }
 0xb39   :  { %v3255_v6 = vmul.f32 %v5995_v4, %v7591_v60  ;;  %v3531_v60 = vpop.permute.xlu1 %3530 }
 0xb3a   :  { %v5997_v19 = vpop.eup %5996 }
 0xb3b   :  { %5606 = vmatprep.mubr.msk.f32.mxu1 %vm933_vm1, %v3255_v6  ;;  %v3261_v59 = vmul.f32 %v5997_v19, %v7595_v10 }
 0xb3c   :  { %v5999_v48 = vpop.eup %5998  ;;  %5607 = vmatmul.mubr.msk.f32.gmra.mxu1 %vm933_vm1, %v3257_v42  ;;  %v3537_v13 = vpop.permute.xlu0 %3536 }
 0xb3d   :  { %v3259_v26 = vmul.f32 %v5999_v48, %v7599_v47  ;;  %v3503_v47 = vpop.f32.mrf.mxu0  ;;  %v3535_v10 = vpop.permute.xlu1 %3534 }
 0xb3e   :  { %v6001_v55 = vpop.eup %6000  ;;  %v3518_v56 = vmul.f32 0.015625, %v3503_v47 }
 0xb3f   :  { %5609 = vmatprep.mubr.msk.f32.mxu1 %vm933_vm1, %v3259_v26  ;;  %v3265_v41 = vmul.f32 %v6001_v55, %v7603_v17  ;;  %v3516_v17 = vmul.f32 0.015625, %v3493_v49 }
 0xb40   :  { %v6003_v40 = vpop.eup %6002  ;;  %5610 = vmatmul.mubr.msk.f32.gmra.mxu1 %vm933_vm1, %v3261_v59  ;;  %v3541_v9 = vpop.permute.xlu0 %3540 }
 0xb41   :  { %v3263_v8 = vmul.f32 %v6003_v40, %v7607_v53  ;;  %v3539_v53 = vpop.permute.xlu1 %3538 }
 0xb43   :  { %5612 = vmatprep.mubr.msk.f32.mxu1 %vm933_vm1, %v3263_v8 }
 0xb44   :  { %5613 = vmatmul.mubr.msk.f32.gmra.mxu1 %vm933_vm1, %v3265_v41  ;;  %v3820_v41 = vpop.permute.xlu0 %3819 }
 0xb45   :  { %5659 = vmatprep.mubr.msk.f32.mxu1 %vm933_vm1, %v3529_v3  ;;  %v3543_v49 = vpop.permute.xlu1 %3542 }
 0xb48   :  { %5660 = vmatmul.mubr.msk.f32.vlgmr.msra.gmra.mxu1 %vm933_vm1, %v3531_v60 }
 0xb49   :  { %5700 = vmatpush3.msra.mxu1 %v3519_v36  ;;  %5662 = vmatprep.mubr.msk.f32.mxu1 %vm933_vm1, %v3533_v43  ;;  %v3514_v36 = vmul.f32 0.015625, %v7671_v16 }
 0xb4a   :  { %5701 = vmatprep.subr.mxu1 %v3518_v56 }
 0xb4b   :  { %5702 = vmatpush3.msra.mxu1 %v3518_v56 }
 0xb4c   :  { %5703 = vmatprep.subr.mxu1 %v3517_v32  ;;  %5663 = vmatmul.mubr.msk.f32.gmra.mxu1 %vm933_vm1, %v3535_v10 }
 0xb4d   :  { %5704 = vmatpush3.msra.mxu1 %v3517_v32  ;;  %5665 = vmatprep.mubr.msk.f32.mxu1 %vm933_vm1, %v3537_v13 }
 0xb4e   :  { %5705 = vmatprep.subr.mxu1 %v3516_v17 }
 0xb4f   :  { %5706 = vmatpush3.msra.mxu1 %v3516_v17 }
 0xb50   :  { %5707 = vmatprep.subr.mxu1 %v3515_v61  ;;  %5666 = vmatmul.mubr.msk.f32.gmra.mxu1 %vm933_vm1, %v3539_v53 }
 0xb51   :  { %5708 = vmatpush3.msra.mxu1 %v3515_v61  ;;  %5668 = vmatprep.mubr.msk.f32.mxu1 %vm933_vm1, %v3541_v9 }
 0xb52   :  { %5709 = vmatprep.subr.mxu1 %v3514_v36 }
 0xb53   :  { %5710 = vmatpush3.msra.mxu1 %v3514_v36 }
 0xb54   :  { %5711 = vmatprep.subr.mxu1 %v3513_v22  ;;  %5669 = vmatmul.mubr.msk.f32.gmra.mxu1 %vm933_vm1, %v3543_v49 }
 0xb55   :  { %5712 = vmatpush3.msra.mxu1 %v3513_v22 }
 0xb56   :  { %5713 = vmatprep.subr.mxu1 %v3512_v39 }
 0xb57   :  { %5714 = vmatpush3.msra.mxu1 %v3512_v39 }
 0xbc0   :  { %v5689_v59 = vpop.f32.mrf.mxu0 }
 0xbc1   :  { %v3823_v43 = vmul.f32 %v5689_v59, %v3820_v41 }
 0xbc2   :  { %v3779_v55 = vpop.f32.mrf.mxu0 }
 0xbc3   :  { %v3822_v10 = vmul.f32 %v3820_v41, %v3779_v55 }
 0xbc4   :  { %v5692_v40 = vpop.f32.mrf.mxu0 }
 0xbc5   :  { %v3825_v17 = vmul.f32 %v5692_v40, %v3820_v41 }
 0xbc6   :  { %v3789_v60 = vpop.f32.mrf.mxu0 }
 0xbc7   :  { %v7711_v1 = vpop.f32.mrf.mxu1  ;;  %v3824_v9 = vmul.f32 %v3820_v41, %v3789_v60 }
 0xbc8   :  { %v5695_v8 = vpop.f32.mrf.mxu0 }
 0xbc9   :  { %v7713_v16 = vpop.f32.mrf.mxu1 }
 0xbca   :  { %v3799_v56 = vpop.f32.mrf.mxu0 }
 0xbcc   :  { %v5698_v22 = vpop.f32.mrf.mxu0 }
 0xbce   :  { %v3809_v55 = vpop.f32.mrf.mxu0 }
 0xbfc   :  { %v7715_v63 = vpop.f32.mrf.mxu1 }
 0xbfe   :  { %v7717_v62 = vpop.f32.mrf.mxu1 }
 0xc00   :  { %v7719_v51 = vpop.f32.mrf.mxu1 }
 0xc02   :  { %v7721_v18 = vpop.f32.mrf.mxu1 }
 0xc04   :  { %v7723_v27 = vpop.f32.mrf.mxu1 }
 0xc06   :  { %v7725_v35 = vpop.f32.mrf.mxu1 }
 0xc08   :  { %v5661_v31 = vpop.f32.mrf.mxu1 }
 0xc0a   :  { %v3658_v4 = vpop.f32.mrf.mxu1 }
 0xc0b   :  { %5715 = vmatprep.mubr.msk.f32.mxu1 %vm933_vm1, %v3658_v4  ;;  %v3827_v4 = vmul.f32 %v5695_v8, %v3820_v41 }
 0xc0c   :  { %v5664_v6 = vpop.f32.mrf.mxu1  ;;  %5716 = vmatmul.mubr.msk.f32.vlgmr.msra.gmra.mxu1 %vm933_vm1, %v5661_v31 }
 0xc0e   :  { %v3668_v42 = vpop.f32.mrf.mxu1 }
 0xc0f   :  { %5718 = vmatprep.mubr.msk.f32.mxu1 %vm933_vm1, %v3668_v42 }
 0xc10   :  { %v5667_v19 = vpop.f32.mrf.mxu1  ;;  %5719 = vmatmul.mubr.msk.f32.gmra.mxu1 %vm933_vm1, %v5664_v6 }
 0xc12   :  { %v3678_v48 = vpop.f32.mrf.mxu1 }
 0xc13   :  { %5721 = vmatprep.mubr.msk.f32.mxu1 %vm933_vm1, %v3678_v48 }
 0xc14   :  { %v5670_v26 = vpop.f32.mrf.mxu1  ;;  %5722 = vmatmul.mubr.msk.f32.gmra.mxu1 %vm933_vm1, %v5667_v19 }
 0xc16   :  { %v3688_v3 = vpop.f32.mrf.mxu1 }
 0xc17   :  { %5724 = vmatprep.mubr.msk.f32.mxu1 %vm933_vm1, %v3688_v3  ;;  %v3826_v3 = vmul.f32 %v3820_v41, %v3799_v56 }
 0xc18   :  { %5725 = vmatmul.mubr.msk.f32.gmra.mxu1 %vm933_vm1, %v5670_v26 }
 0xccc   :  { %v5717_v47 = vpop.f32.mrf.mxu1 }
 0xccd   :  { %v3926_v32 = vadd.f32 %v5717_v47, %v3823_v43 }
 0xcce   :  { %v3920_v13 = vpop.f32.mrf.mxu1 }
 0xccf   :  { %v3960_v53 = vmul.f32 0.125, %v3926_v32  ;;  %v3921_v61 = vadd.f32 %v3920_v13, %v3822_v10  ;;  %v3829_v10 = vmul.f32 %v5698_v22, %v3820_v41 }
 0xcd0   :  { %v5720_v36 = vpop.f32.mrf.mxu1 }
 0xcd1   :  { %v7736_v49 = vadd.f32 %v7533_v11, %v3960_v53  ;;  %v3959_v39 = vmul.f32 0.125, %v3921_v61  ;;  %v3936_v31 = vadd.f32 %v5720_v36, %v3825_v17  ;;  %v3828_v53 = vmul.f32 %v3820_v41, %v3809_v55 }
 0xcd2   :  { %v3930_v6 = vpop.f32.mrf.mxu1 }
 0xcd3   :  { %v7739_v42 = vadd.f32 %v7533_v11, %v3959_v39  ;;  %v3962_v19 = vmul.f32 0.125, %v3936_v31  ;;  %v3931_v48 = vadd.f32 %v3930_v6, %v3824_v9  ;;  %v3978_v26 = vsel %vm933_vm1, %v7736_v49, -inf }
 0xcd4   :  { %v5723_v59 = vpop.f32.mrf.mxu1  ;;  %3979 = vmax.xlane.f32.xlu0 %v3978_v26 }
 0xcd5   :  { %v3970_v40 = vadd.f32 %v7533_v11, %v3962_v19  ;;  %v3961_v60 = vmul.f32 0.125, %v3931_v48  ;;  %v3946_v43 = vadd.f32 %v5723_v59, %v3827_v4  ;;  %v3975_v8 = vsel %vm933_vm1, %v7739_v42, -inf }
 0xcd6   :  { %v3940_v47 = vpop.f32.mrf.mxu1  ;;  %3976 = vmax.xlane.f32.xlu1 %v3975_v8 }
 0xcd7   :  { %v3969_v32 = vadd.f32 %v7533_v11, %v3961_v60  ;;  %v3964_v13 = vmul.f32 0.125, %v3946_v43  ;;  %v3941_v17 = vadd.f32 %v3940_v47, %v3826_v3  ;;  %v3984_v56 = vsel %vm933_vm1, %v3970_v40, -inf  ;;  %v4278_v43 = vld [vmem:[#allocation13 + $0x70] sm:$0xff] }
 0xcd8   :  { %v5726_v61 = vpop.f32.mrf.mxu1 }
 0xcd9   :  { %v3972_v36 = vadd.f32 %v7533_v11, %v3964_v13  ;;  %v3963_v9 = vmul.f32 0.125, %v3941_v17  ;;  %v3956_v39 = vadd.f32 %v5726_v61, %v3829_v10  ;;  %v3981_v31 = vsel %vm933_vm1, %v3969_v32, -inf }
 0xcda   :  { %v3950_v4 = vpop.f32.mrf.mxu1  ;;  %3982 = vmax.xlane.f32.xlu0 %v3981_v31  ;;  %3985 = vmax.xlane.f32.xlu1 %v3984_v56 }
 0xcdb   :  { %v3971_v6 = vadd.f32 %v7533_v11, %v3963_v9  ;;  %v3966_v22 = vmul.f32 0.125, %v3956_v39  ;;  %v3951_v19 = vadd.f32 %v3950_v4, %v3828_v53  ;;  %v3990_v3 = vsel %vm933_vm1, %v3972_v36, -inf }
 0xcdd   :  { %v3974_v48 = vadd.f32 %v7533_v11, %v3966_v22  ;;  %v3965_v26 = vmul.f32 0.125, %v3951_v19  ;;  %v3987_v41 = vsel %vm933_vm1, %v3971_v6, -inf }
 0xcde   :  { %3988 = vmax.xlane.f32.xlu0 %v3987_v41  ;;  %3991 = vmax.xlane.f32.xlu1 %v3990_v3 }
 0xcdf   :  { %v3973_v59 = vadd.f32 %v7533_v11, %v3965_v26  ;;  %v3996_v60 = vsel %vm933_vm1, %v3974_v48, -inf  ;;  %v4279_v11 = vld [vmem:[#allocation13 + $0x78] sm:$0xff] }
 0xce0   :  { %5755 = vmatprep.subr.mxu0 %v4279_v11 }
 0xce1   :  { %v3993_v55 = vsel %vm933_vm1, %v3973_v59, -inf  ;;  %5756 = vmatpush3.msra.mxu0 %v4279_v11 }
 0xce2   :  { %3994 = vmax.xlane.f32.xlu0 %v3993_v55  ;;  %3997 = vmax.xlane.f32.xlu1 %v3996_v60 }
 0xce3   :  { %5757 = vmatprep.subr.mxu0 %v4278_v43 }
 0xce4   :  { %5758 = vmatpush3.msra.mxu0 %v4278_v43 }
 0xcf3   :  { %4083 = vrot.lane.b32.xlu1 %v7480_v44, %s6295_s10  ;;  %v4277_v44 = vld [vmem:[#allocation13 + $0x68] sm:$0xff] }
 0xcf4   :  { %5759 = vmatprep.subr.mxu0 %v4277_v44 }
 0xcf5   :  { %5760 = vmatpush3.msra.mxu0 %v4277_v44 }
 0xcf7   :  { %4081 = vrot.lane.b32.xlu1 %v7485_v21, %s6295_s10 }
 0xcf8   :  { %4085 = vrot.lane.b32.xlu0 %v7449_v34, %s6295_s10 }
 0xcfb   :  { %4077 = vrot.lane.b32.xlu1 %v7497_v37, %s6295_s10 }
 0xcfc   :  { %4079 = vrot.lane.b32.xlu0 %v7491_v15, %s6295_s10 }
 0xd00   :  { %4075 = vrot.lane.b32.xlu0 %v7503_v38, %s6295_s10 }
 0xd5d   :  { %v3980_v21 = vpop.xlane.xlu0 %3979 }
 0xd5e   :  { %v4000_v34 = vsub.f32 %v7736_v49, %v3980_v21 }
 0xd5f   :  { %v3977_v8 = vpop.xlane.xlu1 %3976 }
 0xd60   :  { %v4009_v37 = vmul.f32 1.442695, %v4000_v34  ;;  %v3999_v47 = vsub.f32 %v7739_v42, %v3977_v8 }
 0xd62   :  { %6004 = vpow2.f32 %v4009_v37  ;;  %v4007_v15 = vmul.f32 1.442695, %v3999_v47 }
 0xd63   :  { %v3983_v10 = vpop.xlane.xlu0 %3982  ;;  %v3986_v38 = vpop.xlane.xlu1 %3985 }
 0xd64   :  { %6006 = vpow2.f32 %v4007_v15  ;;  %v4001_v13 = vsub.f32 %v3969_v32, %v3983_v10  ;;  %v4002_v17 = vsub.f32 %v3970_v40, %v3986_v38 }
 0xd66   :  { %v4011_v53 = vmul.f32 1.442695, %v4001_v13  ;;  %v4013_v61 = vmul.f32 1.442695, %v4002_v17 }
 0xd67   :  { %v3989_v56 = vpop.xlane.xlu0 %3988  ;;  %v3992_v9 = vpop.xlane.xlu1 %3991 }
 0xd68   :  { %6008 = vpow2.f32 %v4011_v53  ;;  %v4003_v39 = vsub.f32 %v3971_v6, %v3989_v56  ;;  %v4004_v31 = vsub.f32 %v3972_v36, %v3992_v9  ;;  %v4275_v56 = vld [vmem:[#allocation13 + $0x58] sm:$0xff]  ;;  %v4274_v9 = vld [vmem:[#allocation13 + $0x50] sm:$0xff] }
 0xd69   :  { %6010 = vpow2.f32 %v4013_v61  ;;  %v4276_v61 = vld [vmem:[#allocation13 + $0x60] sm:$0xff] }
 0xd6a   :  { %v4015_v49 = vmul.f32 1.442695, %v4003_v39  ;;  %v4017_v4 = vmul.f32 1.442695, %v4004_v31  ;;  %5761 = vmatprep.subr.mxu0 %v4276_v61  ;;  %v4273_v39 = vld [vmem:[#allocation13 + $0x48] sm:$0xff]  ;;  %v4272_v31 = vld [vmem:[#allocation13 + $0x40] sm:$0xff] }
 0xd6b   :  { %v3995_v22 = vpop.xlane.xlu0 %3994  ;;  %v3998_v19 = vpop.xlane.xlu1 %3997  ;;  %5762 = vmatpush3.msra.mxu0 %v4276_v61 }
 0xd6c   :  { %6012 = vpow2.f32 %v4015_v49  ;;  %v4005_v42 = vsub.f32 %v3973_v59, %v3995_v22  ;;  %v4006_v26 = vsub.f32 %v3974_v48, %v3998_v19  ;;  %5763 = vmatprep.subr.mxu0 %v4275_v56  ;;  %v4271_v49 = vld [vmem:[#allocation13 + $0x38] sm:$0xff]  ;;  %v4269_v22 = vld [vmem:[#allocation13 + $0x28] sm:$0xff]  ;;  %v4268_v19 = vld [vmem:[#allocation13 + $0x20] sm:$0xff] }
 0xd6d   :  { %6014 = vpow2.f32 %v4017_v4  ;;  %5764 = vmatpush3.msra.mxu0 %v4275_v56  ;;  %v4270_v4 = vld [vmem:[#allocation13 + $0x30] sm:$0xff] }
 0xd6e   :  { %v4019_v41 = vmul.f32 1.442695, %v4005_v42  ;;  %v4021_v3 = vmul.f32 1.442695, %v4006_v26  ;;  %5765 = vmatprep.subr.mxu0 %v4274_v9  ;;  %v4267_v42 = vld [vmem:[#allocation13 + $0x18] sm:$0xff]  ;;  %v4266_v26 = vld [vmem:[#allocation13 + $0x10] sm:$0xff] }
 0xd6f   :  { %v7771_v32 = vpop.eup %6004  ;;  %v4086_v40 = vpop.permute.xlu0 %4085  ;;  %5766 = vmatpush3.msra.mxu0 %v4274_v9 }
 0xd70   :  { %v4084_v55 = vpop.permute.xlu1 %4083  ;;  %6016 = vpow2.f32 %v4019_v41  ;;  %5727 = vmatprep.subr.mxu1 %v4086_v40  ;;  %v4026_v36 = vsel %vm933_vm1, %v7771_v32, 0.0  ;;  %5767 = vmatprep.subr.mxu0 %v4273_v39 }
 0xd71   :  { %v7775_v6 = vpop.eup %6006  ;;  %6018 = vpow2.f32 %v4021_v3  ;;  %5728 = vmatpush3.msra.mxu1 %v4086_v40  ;;  %4027 = vadd.xlane.f32.xlu1 %v4026_v36 }
 0xd72   :  { %5729 = vmatprep.subr.mxu1 %v4084_v55  ;;  %v4023_v48 = vsel %vm933_vm1, %v7775_v6, 0.0  ;;  %5768 = vmatpush3.msra.mxu0 %v4273_v39 }
 0xd73   :  { %v4080_v59 = vpop.permute.xlu0 %4079  ;;  %4024 = vadd.xlane.f32.xlu0 %v4023_v48  ;;  %5730 = vmatpush3.msra.mxu1 %v4084_v55 }
 0xd74   :  { %v4082_v60 = vpop.permute.xlu1 %4081  ;;  %5769 = vmatprep.subr.mxu0 %v4272_v31 }
 0xd75   :  { %5731 = vmatprep.subr.mxu1 %v4082_v60  ;;  %v7779_v11 = vpop.eup %6008  ;;  %5770 = vmatpush3.msra.mxu0 %v4272_v31 }
 0xd76   :  { %5732 = vmatpush3.msra.mxu1 %v4082_v60  ;;  %v7781_v43 = vpop.eup %6010  ;;  %v4029_v44 = vsel %vm933_vm1, %v7779_v11, 0.0  ;;  %5771 = vmatprep.subr.mxu0 %v4271_v49 }
 0xd77   :  { %5733 = vmatprep.subr.mxu1 %v4080_v59  ;;  %4030 = vadd.xlane.f32.xlu0 %v4029_v44  ;;  %v4032_v21 = vsel %vm933_vm1, %v7781_v43, 0.0  ;;  %v4076_v37 = vpop.permute.xlu0 %4075 }
 0xd78   :  { %5734 = vmatpush3.msra.mxu1 %v4080_v59  ;;  %v4078_v34 = vpop.permute.xlu1 %4077  ;;  %4033 = vadd.xlane.f32.xlu1 %v4032_v21 }
 0xd79   :  { %5735 = vmatprep.subr.mxu1 %v4078_v34  ;;  %v7787_v8 = vpop.eup %6012  ;;  %5772 = vmatpush3.msra.mxu0 %v4271_v49 }
 0xd7a   :  { %5736 = vmatpush3.msra.mxu1 %v4078_v34  ;;  %v7789_v47 = vpop.eup %6014  ;;  %v4035_v15 = vsel %vm933_vm1, %v7787_v8, 0.0  ;;  %5773 = vmatprep.subr.mxu0 %v4270_v4 }
 0xd7b   :  { %5737 = vmatprep.subr.mxu1 %v4076_v37  ;;  %4036 = vadd.xlane.f32.xlu0 %v4035_v15  ;;  %v4038_v10 = vsel %vm933_vm1, %v7789_v47, 0.0 }
 0xd7c   :  { %5738 = vmatpush3.msra.mxu1 %v4076_v37  ;;  %4039 = vadd.xlane.f32.xlu1 %v4038_v10 }
 0xd7d   :  { %v7795_v38 = vpop.eup %6016  ;;  %5774 = vmatpush3.msra.mxu0 %v4270_v4 }
 0xd7e   :  { %v7797_v13 = vpop.eup %6018  ;;  %v4041_v17 = vsel %vm933_vm1, %v7795_v38, 0.0  ;;  %5775 = vmatprep.subr.mxu0 %v4269_v22 }
 0xd7f   :  { %4042 = vadd.xlane.f32.xlu0 %v4041_v17  ;;  %v4044_v53 = vsel %vm933_vm1, %v7797_v13, 0.0  ;;  %5776 = vmatpush3.msra.mxu0 %v4269_v22 }
 0xd80   :  { %4045 = vadd.xlane.f32.xlu1 %v4044_v53  ;;  %5777 = vmatprep.subr.mxu0 %v4268_v19 }
 0xd81   :  { %5778 = vmatpush3.msra.mxu0 %v4268_v19 }
 0xd82   :  { %5779 = vmatprep.subr.mxu0 %v4267_v42 }
 0xd83   :  { %5780 = vmatpush3.msra.mxu0 %v4267_v42 }
 0xd84   :  { %5781 = vmatprep.subr.mxu0 %v4266_v26 }
 0xd85   :  { %5782 = vmatpush3.msra.mxu0 %v4266_v26 }
 0xd91   :  { %4073 = vrot.lane.b32.xlu1 %v7509_v57, %s6295_s10  ;;  %v4265_v57 = vld [vmem:[#allocation13 + $0x8] sm:$0xff] }
 0xd92   :  { %5783 = vmatprep.subr.mxu0 %v4265_v57 }
 0xd93   :  { %5784 = vmatpush3.msra.mxu0 %v4265_v57 }
 0xd94   :  { %5785 = vmatprep.subr.mxu0 %v4264_v7 }
 0xd95   :  { %5861 = vrot.lane.b32.xlu1 %v5860_v33, %s6295_s10  ;;  %4071 = vrot.lane.b32.xlu0 %v7515_v12, %s6295_s10 }
 0xd96   :  { %5786 = vmatpush3.msra.mxu0 %v4264_v7 }
 0xd99   :  { %5871 = vrot.lane.b32.xlu1 %v5870_v58, %s6295_s10  ;;  %5866 = vrot.lane.b32.xlu0 %v5865_v50, %s6295_s10 }
 0xd9d   :  { %5876 = vrot.lane.b32.xlu0 %v7975_v23, %s6295_s10 }
 0xdfa   :  { %v4028_v20 = vpop.xlane.xlu1 %4027 }
 0xdfc   :  { %v4025_v33 = vpop.xlane.xlu0 %4024 }
 0xdfd   :  { %6020 = vrcp.f32 %v4025_v33 }
 0xdfe   :  { %6022 = vrcp.f32 %v4028_v20 }
 0xe00   :  { %v4031_v54 = vpop.xlane.xlu0 %4030 }
 0xe01   :  { %6024 = vrcp.f32 %v4031_v54  ;;  %v4034_v25 = vpop.xlane.xlu1 %4033 }
 0xe02   :  { %6026 = vrcp.f32 %v4034_v25 }
 0xe04   :  { %v4037_v45 = vpop.xlane.xlu0 %4036 }
 0xe05   :  { %6028 = vrcp.f32 %v4037_v45  ;;  %v4040_v50 = vpop.xlane.xlu1 %4039 }
 0xe06   :  { %6030 = vrcp.f32 %v4040_v50 }
 0xe08   :  { %v4043_v58 = vpop.xlane.xlu0 %4042 }
 0xe09   :  { %6032 = vrcp.f32 %v4043_v58  ;;  %v4046_v12 = vpop.xlane.xlu1 %4045 }
 0xe0a   :  { %v6021_v24 = vpop.eup %6020  ;;  %6034 = vrcp.f32 %v4046_v12 }
 0xe0b   :  { %v4048_v52 = vmul.f32 %v6021_v24, %v7775_v6  ;;  %v6023_v3 = vpop.eup %6022 }
 0xe0c   :  { %v4072_v41 = vpop.permute.xlu0 %4071  ;;  %v4050_v48 = vmul.f32 %v6023_v3, %v7771_v32 }
 0xe0d   :  { %v4074_v40 = vpop.permute.xlu1 %4073  ;;  %5743 = vmatprep.mubr.msk.f32.mxu1 %vm933_vm1, %v4048_v52 }
 0xe0e   :  { %v6025_v55 = vpop.eup %6024  ;;  %5739 = vmatprep.subr.mxu1 %v4074_v40 }
 0xe0f   :  { %5740 = vmatpush3.msra.mxu1 %v4074_v40  ;;  %v4052_v36 = vmul.f32 %v6025_v55, %v7779_v11  ;;  %v6027_v60 = vpop.eup %6026 }
 0xe10   :  { %5741 = vmatprep.subr.mxu1 %v4072_v41  ;;  %v5867_v59 = vpop.permute.xlu0 %5866  ;;  %v4054_v32 = vmul.f32 %v6027_v60, %v7781_v43 }
 0xe11   :  { %5742 = vmatpush3.msra.mxu1 %v4072_v41  ;;  %v5862_v44 = vpop.permute.xlu1 %5861  ;;  %v5868_v6 = vunpack.i.l.bf16 %v5867_v59  ;;  %v5869_v53 = vunpack.i.h.bf16 %v5867_v59 }
 0xe12   :  { %v6029_v21 = vpop.eup %6028  ;;  %v5864_v34 = vunpack.i.h.bf16 %v5862_v44  ;;  %v5863_v37 = vunpack.i.l.bf16 %v5862_v44  ;;  %5744 = vmatmul.mubr.msk.f32.vlgmr.msra.gmra.mxu1 %vm933_vm1, %v4050_v48 }
 0xe13   :  { %5746 = vmatprep.mubr.msk.f32.mxu1 %vm933_vm1, %v4052_v36  ;;  %v4056_v15 = vmul.f32 %v6029_v21, %v7787_v8  ;;  %v6031_v17 = vpop.eup %6030  ;;  %v2594_v8 = vsel %vm933_vm1, %v7244_v14, %v5868_v6  ;;  %v2595_v49 = vsel %vm933_vm1, %v7242_v2, %v5869_v53 }
 0xe14   :  { %v2592_v11 = vsel %vm933_vm1, %v7240_v0, %v5863_v37  ;;  %v2593_v10 = vsel %vm933_vm1, %v7238_v5, %v5864_v34  ;;  %v5877_v39 = vpop.permute.xlu0 %5876  ;;  %v4058_v5 = vmul.f32 %v6031_v17, %v7789_v47 }
 0xe15   :  { %v5872_v61 = vpop.permute.xlu1 %5871  ;;  %5787 = vmatprep.mubr.f32.mxu0 %v2592_v11  ;;  %v5878_v4 = vunpack.i.l.bf16 %v5877_v39 }
 0xe16   :  { %v6033_v56 = vpop.eup %6032  ;;  %v5873_v9 = vunpack.i.l.bf16 %v5872_v61  ;;  %5747 = vmatmul.mubr.msk.f32.gmra.mxu1 %vm933_vm1, %v4054_v32  ;;  %5788 = vmatmul.mubr.f32.vlgmr.msra.gmra.mxu0 %v2593_v10  ;;  %v5874_v31 = vunpack.i.h.bf16 %v5872_v61 }
 0xe17   :  { %5749 = vmatprep.mubr.msk.f32.mxu1 %vm933_vm1, %v4056_v15  ;;  %5790 = vmatprep.mubr.f32.mxu0 %v2594_v8  ;;  %v4060_v0 = vmul.f32 %v6033_v56, %v7795_v38  ;;  %v6035_v43 = vpop.eup %6034  ;;  %v5879_v38 = vunpack.i.h.bf16 %v5877_v39  ;;  %v2598_v2 = vsel %vm933_vm1, %v7252_v28, %v5878_v4 }
 0xe18   :  { %v2596_v14 = vsel %vm933_vm1, %v7248_v30, %v5873_v9  ;;  %v4062_v22 = vmul.f32 %v6035_v43, %v7797_v13  ;;  %v2597_v47 = vsel %vm933_vm1, %v7246_v46, %v5874_v31  ;;  %v7858_v13 = vld [vmem:[%s7914_s12] ss:$0 sm:$0xff]  ;;  %s6296_s12 = smov [#allocation19]  }
 0xe19   :  { %v2599_v19 = vsel %vm933_vm1, %v7250_v29, %v5879_v38  ;;  %s4453_s6 = sshll.u32 %s6296_s12, 4  ;;  %s4454_s6 = int_to_ptr.vmem [resolvable:$true] %s4453_s6 }
 0xe1a   :  { %5750 = vmatmul.mubr.msk.f32.gmra.mxu1 %vm933_vm1, %v4058_v5  ;;  %5791 = vmatmul.mubr.f32.gmra.mxu0 %v2595_v49  ;;  %s6246_s7 = scalar_lea.vmem %s4454_s6, 2048  ;;  %p6251_p9 = scmp.lt.s32.totalorder %s4454_s6, %s4454_s6 }
 0xe1b   :  { %5752 = vmatprep.mubr.msk.f32.mxu1 %vm933_vm1, %v4060_v0  ;;  %5793 = vmatprep.mubr.f32.mxu0 %v2596_v14  ;;  %p6247_p8 = scmp.ne.s32.totalorder %s4454_s6, %s6246_s7  ;;  %p6252_p10 = scmp.lt.s32.totalorder %s6246_s7, %s6246_s7 }
 0xe1d   :  { %p6253_p11 = por %p6252_p10, %p6251_p9 }
 0xe1e   :  { %5753 = vmatmul.mubr.msk.f32.gmra.mxu1 %vm933_vm1, %v4062_v22  ;;  %5794 = vmatmul.mubr.f32.gmra.mxu0 %v2597_v47 }
 0xe1f   :  { %5796 = vmatprep.mubr.f32.mxu0 %v2598_v2  ;;  %p6254_p12 = pnand %p6253_p11, %p6247_p8 }
 0xe22   :  { %5797 = vmatmul.mubr.f32.gmra.mxu0 %v2599_v19 }
 0xed2   :  { %v5745_v30 = vpop.f32.mrf.mxu1 }
 0xed4   :  { %v4185_v42 = vpop.f32.mrf.mxu1 }
 0xed5   :  { %v5880_v26 = vpack.i.bf16 %v5745_v30, %v4185_v42 }
 0xed6   :  { %v5748_v46 = vpop.f32.mrf.mxu1  ;;  %v5789_v57 = vpop.f32.mrf.mxu0 }
 0xed7   :  { %v4359_v7 = vadd.f32 %v5789_v57, %v7858_v13  ;;  %5881 = vrot.lane.b32.xlu1 %v5880_v26, %s6295_s10 }
 0xed8   :  { %v4195_v28 = vpop.f32.mrf.mxu1  ;;  %v4353_v23 = vpop.f32.mrf.mxu0 }
 0xed9   :  { %4433 = vst [vmem:[#allocation19 + $0x8] sm:$0xff] %v4359_v7  ;;  %v5885_v33 = vpack.i.bf16 %v5748_v46, %v4195_v28  ;;  %v4354_v29 = vadd.f32 %v7858_v13, %v4353_v23 }
 0xeda   :  { %v5751_v20 = vpop.f32.mrf.mxu1  ;;  %v5792_v54 = vpop.f32.mrf.mxu0 }
 0xedb   :  { %4432 = vst [vmem:[#allocation19] sm:$0xff] %v4354_v29  ;;  %v4369_v25 = vadd.f32 %v5792_v54, %v7858_v13  ;;  %5886 = vrot.lane.b32.xlu0 %v5885_v33, %s6295_s10 }
 0xedc   :  { %v4205_v45 = vpop.f32.mrf.mxu1  ;;  %v4363_v50 = vpop.f32.mrf.mxu0 }
 0xedd   :  { %4435 = vst [vmem:[#allocation19 + $0x18] sm:$0xff] %v4369_v25  ;;  %v5890_v58 = vpack.i.bf16 %v5751_v20, %v4205_v45  ;;  %v4364_v12 = vadd.f32 %v7858_v13, %v4363_v50 }
 0xede   :  { %v5754_v24 = vpop.f32.mrf.mxu1  ;;  %v5795_v52 = vpop.f32.mrf.mxu0 }
 0xedf   :  { %4434 = vst [vmem:[#allocation19 + $0x10] sm:$0xff] %v4364_v12  ;;  %v4379_v41 = vadd.f32 %v5795_v52, %v7858_v13  ;;  %5891 = vrot.lane.b32.xlu1 %v5890_v58, %s6295_s10 }
 0xee0   :  { %v4215_v3 = vpop.f32.mrf.mxu1  ;;  %v4373_v40 = vpop.f32.mrf.mxu0 }
 0xee1   :  { %4437 = vst [vmem:[#allocation19 + $0x28] sm:$0xff] %v4379_v41  ;;  %v5895_v55 = vpack.i.bf16 %v5754_v24, %v4215_v3  ;;  %v4374_v36 = vadd.f32 %v7858_v13, %v4373_v40 }
 0xee2   :  { %v5798_v48 = vpop.f32.mrf.mxu0 }
 0xee3   :  { %4436 = vst [vmem:[#allocation19 + $0x20] sm:$0xff] %v4374_v36  ;;  %v4389_v59 = vadd.f32 %v5798_v48, %v7858_v13  ;;  %5896 = vrot.lane.b32.xlu0 %v5895_v55, %s6295_s10 }
 0xee4   :  { %v4383_v60 = vpop.f32.mrf.mxu0 }
 0xee5   :  { %4439 = vst [vmem:[#allocation19 + $0x38] sm:$0xff] %v4389_v59  ;;  %v4384_v44 = vadd.f32 %v7858_v13, %v4383_v60 }
 0xee7   :  { %4438 = vst [vmem:[#allocation19 + $0x30] sm:$0xff] %v4384_v44 }
 0xf49   :  { %v5882_v21 = vpop.permute.xlu1 %5881 }
 0xf4a   :  { %v5884_v6 = vunpack.i.h.bf16 %v5882_v21  ;;  %v5883_v34 = vunpack.i.l.bf16 %v5882_v21 }
 0xf4c   :  { %v4256_v37 = vsel %vm933_vm1, %v7713_v16, %v5883_v34  ;;  %v4257_v15 = vsel %vm933_vm1, %v7711_v1, %v5884_v6 }
 0xf4d   :  { %v5887_v11 = vpop.permute.xlu0 %5886  ;;  %5799 = vmatprep.mubr.f32.mxu0 %v4256_v37 }
 0xf4e   :  { %v5889_v32 = vunpack.i.h.bf16 %v5887_v11  ;;  %v5888_v10 = vunpack.i.l.bf16 %v5887_v11  ;;  %5800 = vmatmul.mubr.f32.gmra.mxu0 %v4257_v15 }
 0xf50   :  { %v4258_v17 = vsel %vm933_vm1, %v7717_v62, %v5888_v10  ;;  %v4259_v53 = vsel %vm933_vm1, %v7715_v63, %v5889_v32 }
 0xf51   :  { %v5892_v61 = vpop.permute.xlu1 %5891  ;;  %5802 = vmatprep.mubr.f32.mxu0 %v4258_v17 }
 0xf52   :  { %v5894_v56 = vunpack.i.h.bf16 %v5892_v61  ;;  %v5893_v9 = vunpack.i.l.bf16 %v5892_v61  ;;  %5803 = vmatmul.mubr.f32.gmra.mxu0 %v4259_v53 }
 0xf54   :  { %v4260_v16 = vsel %vm933_vm1, %v7721_v18, %v5893_v9  ;;  %v4261_v1 = vsel %vm933_vm1, %v7719_v51, %v5894_v56 }
 0xf55   :  { %v5897_v8 = vpop.permute.xlu0 %5896  ;;  %5805 = vmatprep.mubr.f32.mxu0 %v4260_v16 }
 0xf56   :  { %v5899_v39 = vunpack.i.h.bf16 %v5897_v8  ;;  %v5898_v0 = vunpack.i.l.bf16 %v5897_v8  ;;  %5806 = vmatmul.mubr.f32.gmra.mxu0 %v4261_v1 }
 0xf58   :  { %v4262_v62 = vsel %vm933_vm1, %v7725_v35, %v5898_v0  ;;  %v4263_v63 = vsel %vm933_vm1, %v7723_v27, %v5899_v39 }
 0xf59   :  { %5808 = vmatprep.mubr.f32.mxu0 %v4262_v62 }
 0xf5a   :  { %5809 = vmatmul.mubr.f32.gmra.mxu0 %v4263_v63 }
0x100e   :  { %v5801_v5 = vpop.f32.mrf.mxu0 }
0x100f   :  { %v4399_v43 = vadd.f32 %v5801_v5, %v7858_v13 }
0x1010   :  { %v4393_v18 = vpop.f32.mrf.mxu0 }
0x1011   :  { %4441 = vst [vmem:[#allocation19 + $0x48] sm:$0xff] %v4399_v43  ;;  %v4394_v51 = vadd.f32 %v7858_v13, %v4393_v18 }
0x1012   :  { %v5804_v31 = vpop.f32.mrf.mxu0 }
0x1013   :  { %4440 = vst [vmem:[#allocation19 + $0x40] sm:$0xff] %v4394_v51  ;;  %v4409_v49 = vadd.f32 %v5804_v31, %v7858_v13 }
0x1014   :  { %v4403_v4 = vpop.f32.mrf.mxu0 }
0x1015   :  { %4443 = vst [vmem:[#allocation19 + $0x58] sm:$0xff] %v4409_v49  ;;  %v4404_v35 = vadd.f32 %v7858_v13, %v4403_v4 }
0x1016   :  { %v5807_v14 = vpop.f32.mrf.mxu0 }
0x1017   :  { %4442 = vst [vmem:[#allocation19 + $0x50] sm:$0xff] %v4404_v35  ;;  %v4419_v27 = vadd.f32 %v5807_v14, %v7858_v13 }
0x1018   :  { %v4413_v22 = vpop.f32.mrf.mxu0 }
0x1019   :  { %4445 = vst [vmem:[#allocation19 + $0x68] sm:$0xff] %v4419_v27  ;;  %v4414_v38 = vadd.f32 %v7858_v13, %v4413_v22 }
0x101a   :  { %v5810_v47 = vpop.f32.mrf.mxu0 }
0x101b   :  { %4444 = vst [vmem:[#allocation19 + $0x60] sm:$0xff] %v4414_v38  ;;  %v4429_v2 = vadd.f32 %v5810_v47, %v7858_v13 }
0x101c   :  { %v4423_v19 = vpop.f32.mrf.mxu0 }
0x101d   :  { %4447 = vst [vmem:[#allocation19 + $0x78] sm:$0xff] %v4429_v2  ;;  %v4424_v30 = vadd.f32 %v7858_v13, %v4423_v19 }
0x101f   :  { %4446 = vst [vmem:[#allocation19 + $0x70] sm:$0xff] %v4424_v30 }
0x1020   :  { %6257 = shalt.err (!%p6254_p12)
}
0x1021   :  { %4459 = dma.vmem_to_hbm [thread:$0]  %s4454_s6, 2048, %s7917_s15, [#allocation4], %s6282_s23, %s6282_s23, %s6283_s24  }
0x1022   :  { %6278 = dma.done.wait [#allocation4], 2048  }
0x1023   :  { %6279 = vsyncadd [#allocation4], 4294965248 }
0x1024   :  { %4463 = vsyncpa [#allocation3], 1 }
0x1025   :  { %4464 = vsyncpa [#allocation6], 1 }
0x1026   :  { %4465 = vsyncpa [#allocation9], 1 }
0x1027   :  { %4466 = vsyncpa [#allocation12], 1 }
0x1028   :  { %4467 = vsyncpa [#allocation15], 1 }
0x1029   :  { %4468 = vsyncpa [#allocation18], 1 }
0x102a   :  { %4469 = vsyncpa [#allocation4], 1 }

</bundles_post_ra>
